<compile_context>
chip_gen: v7x
topology: tpu7x:2x2x1
jax: 0.10.0
libtpu: 0.0.40
codegen_flags: <defaults>
</compile_context>

<pallas_src>
import jax
import jax.numpy as jnp
from jax import lax
from jax.experimental import pallas as pl
from jax.experimental.pallas import tpu as pltpu

LANE = 128
KER = 3
N_RES_BLOCKS = 8


# --------------------------------------------------------------------------
# wrapper-side helpers (plain JAX, run once)
# --------------------------------------------------------------------------
def _round_up(x, m):
    return ((x + m - 1) // m) * m


def _pad_last(a, target):
    pad = target - a.shape[-1]
    if pad == 0:
        return a
    cfg = [(0, 0)] * (a.ndim - 1) + [(0, pad)]
    return jnp.pad(a, cfg)


def _pad_bias(b, cp):
    return _pad_last(b.reshape(1, -1), cp)                      # (1, cp) f32


def _conv3_taps(w, cin_p, cout_p, dtype):
    """torch Conv1d weight (C_out, C_in, 3) -> (3, cin_p, cout_p) per-tap mats."""
    cout, cin, k = w.shape
    wt = jnp.transpose(w, (2, 1, 0))                            # (3, C_in, C_out)
    wt = jnp.pad(wt, ((0, 0), (0, cin_p - cin), (0, cout_p - cout)))
    return wt.astype(dtype)


def _vmem_limit_default():
    cap = 64 * 1024 * 1024
    try:
        info = pltpu.get_tpu_info()
        cap = int(getattr(info, "vmem_capacity_bytes", cap)) or cap
    except Exception:
        pass
    cap = max(cap, 32 * 1024 * 1024)
    return min(int(cap * 0.85), 100 * 1024 * 1024)


# --------------------------------------------------------------------------
# in-kernel helper: k=3, pad=1 conv = 3 shifted-slice matmuls (bf16 -> f32)
# --------------------------------------------------------------------------
def _conv3(a, w_taps, b):
    """a:(L, Cin_p) f32, w_taps[k]:(Cin_p, Cout_p) bf16, b:(1, Cout_p) f32."""
    L, cin = a.shape
    ab = a.astype(jnp.bfloat16)
    z = jnp.zeros((1, cin), jnp.bfloat16)
    ap = jnp.concatenate([z, ab, z], axis=0)                    # ap[1+t] = a[t]
    acc = jnp.dot(ap[0:L], w_taps[0], preferred_element_type=jnp.float32)
    acc = acc + jnp.dot(ap[1:L + 1], w_taps[1], preferred_element_type=jnp.float32)
    acc = acc + jnp.dot(ap[2:L + 2], w_taps[2], preferred_element_type=jnp.float32)
    return acc + b


# --------------------------------------------------------------------------
# the fused Decoder kernel (one batch sample per grid step)
# --------------------------------------------------------------------------
def decoder_kernel(u0_ref, rbw1_ref, rbb1_ref, rbw2_ref, rbb2_ref,
                   wrf_ref, brf_ref, wcf4_ref, bcf4_ref,
                   gc_ref, gd_ref, abias_ref, out_ref):
    L = u0_ref.shape[1]
    c4p = gc_ref.shape[1]
    nout = gc_ref.shape[2]                                      # lane-padded (128)

    u0 = u0_ref[0]                                              # (L, cp) f32

    # ---- 8 fused ResidualBlocks: conv3 -> tanh -> conv3 -> +residual ----
    def rb_body(i, u):
        h = jnp.tanh(_conv3(u, rbw1_ref[i], rbb1_ref[i]))
        return u + _conv3(h, rbw2_ref[i], rbb2_ref[i])

    u = lax.fori_loop(0, N_RES_BLOCKS, rb_body, u0)

    # ---- resStack final conv + skip with s1f1 output, then cf4 ----
    r = _conv3(u, wrf_ref, brf_ref[...]) + u0                   # (L, cp)
    c = _conv3(r, wcf4_ref, bcf4_ref[...])                      # (L, c4p) f32

    # ---- folded ConvTranspose1d(4C->3C, s=2) + (A1 + A2 + A4) ----
    # even[m] = c[m]@W1 ; odd[m] = c[m+1]@W0 + c[m]@W2 ; the A taps are folded
    # into gc (W1/W2 parts, applied to c[m+o]) and gd (W0 parts, applied to
    # d[m+o] where d[j] = c[j+1]).  Columns 0/1 of gc/gd are even/odd phase.
    z2 = jnp.zeros((2, c4p), jnp.float32)
    cpad = jnp.concatenate([z2, c, z2], axis=0)                 # cpad[2+j] = c[j]
    d = jnp.concatenate([c[1:], jnp.zeros((1, c4p), jnp.float32)], axis=0)
    dpad = jnp.concatenate([z2, d, z2], axis=0)                 # dpad[2+j] = c[j+1]

    acc = jnp.zeros((L, nout), jnp.float32)
    for t in range(5):                                          # offsets -2..+2
        acc = acc + jnp.dot(cpad[t:t + L], gc_ref[t],
                            preferred_element_type=jnp.float32)
        acc = acc + jnp.dot(dpad[t:t + L], gd_ref[t],
                            preferred_element_type=jnp.float32)

    # lane-dense (2, L) store: row 0 = even output phase, row 1 = odd phase
    out2 = acc.T[0:2, :] + abias_ref[...]
    out_ref[0] = out2.astype(out_ref.dtype)


# --------------------------------------------------------------------------
# host wrapper
# --------------------------------------------------------------------------
def decoder_forward(x_ncl, y_ncl, params, *, vmem_limit_bytes=None):
    """x: (N, 1, L), y: (N, C, L) in PyTorch NCL layout -> (N, 1, 2L)."""
    N, _, L = x_ncl.shape
    C = params["b_s1"].shape[0]
    cp = _round_up(C, LANE)
    c4p = _round_up(4 * C, LANE)
    f32, bf16 = jnp.float32, jnp.bfloat16
    if vmem_limit_bytes is None:
        vmem_limit_bytes = _vmem_limit_default()

    # ---- s1f1 folded into the activation prep: u0 = w_s1*x + b_s1 + y ----
    x_lc = jnp.transpose(x_ncl, (0, 2, 1)).astype(f32)                  # (N, L, 1)
    y_lc = jnp.transpose(y_ncl, (0, 2, 1)).astype(f32)                  # (N, L, C)
    u0 = (x_lc * params["w_s1"][:, 0, 0].astype(f32)[None, None, :]
          + params["b_s1"].astype(f32)[None, None, :] + y_lc)
    u0 = _pad_last(u0, cp)                                              # (N, L, cp)

    # ---- conv weights: per-tap (3, cin_p, cout_p) bf16 matrices ----
    rbw1 = jnp.stack([_conv3_taps(w.astype(f32), cp, cp, bf16) for w in params["rb_w1"]])
    rbb1 = jnp.stack([_pad_bias(b.astype(f32), cp) for b in params["rb_b1"]])
    rbw2 = jnp.stack([_conv3_taps(w.astype(f32), cp, cp, bf16) for w in params["rb_w2"]])
    rbb2 = jnp.stack([_pad_bias(b.astype(f32), cp) for b in params["rb_b2"]])
    wrf = _conv3_taps(params["w_rf"].astype(f32), cp, cp, bf16)
    brf = _pad_bias(params["b_rf"].astype(f32), cp)
    wcf4 = _conv3_taps(params["w_cf4"].astype(f32), cp, c4p, bf16)
    bcf4 = _pad_bias(params["b_cf4"].astype(f32), c4p)

    # ---- fold ConvTranspose1d(4C->3C, k=3, s=2, p=1, op=1) with A1/A2/A4 ----
    W0 = params["w_up"][:, :, 0].astype(f32)                            # (4C, 3C)
    W1 = params["w_up"][:, :, 1].astype(f32)
    W2 = params["w_up"][:, :, 2].astype(f32)
    wa1 = params["w_a1"].astype(f32)
    wa2 = params["w_a2"].astype(f32)
    wa4 = params["w_a4"].astype(f32)
    a_m4, a_m2, a_m1 = wa4[0, :, 0], wa2[0, :, 0], wa1[0, :, 0]
    a_0 = wa1[0, :, 1] + wa2[0, :, 1] + wa4[0, :, 1]
    a_p1, a_p2, a_p4 = wa1[0, :, 2], wa2[0, :, 2], wa4[0, :, 2]
    zero4 = jnp.zeros((4 * C,), f32)

    # gc[t] is applied to c[m + t-2]; gd[t] to c[m + t-1]; columns [even, odd]
    gc_rows = [
        (W1 @ a_m4,                 W2 @ a_m4),
        (W1 @ a_m2 + W2 @ a_m1,     W2 @ a_m2),
        (W1 @ a_0 + W2 @ a_p1,      W1 @ a_m1 + W2 @ a_0),
        (W1 @ a_p2,                 W1 @ a_p1 + W2 @ a_p2),
        (W1 @ a_p4,                 W2 @ a_p4),
    ]
    gd_rows = [
        (zero4,                     W0 @ a_m4),
        (W0 @ a_m1,                 W0 @ a_m2),
        (W0 @ a_p1,                 W0 @ a_0),
        (zero4,                     W0 @ a_p2),
        (zero4,                     W0 @ a_p4),
    ]
    gc = jnp.stack([jnp.stack(r, axis=-1) for r in gc_rows])            # (5, 4C, 2)
    gd = jnp.stack([jnp.stack(r, axis=-1) for r in gd_rows])
    gc = jnp.pad(gc, ((0, 0), (0, c4p - 4 * C), (0, LANE - 2)))         # (5, c4p, 128)
    gd = jnp.pad(gd, ((0, 0), (0, c4p - 4 * C), (0, LANE - 2)))

    # c-independent bias of the folded up-conv + A path, boundary-exact: (2, L)
    bup = params["b_up"].astype(f32)                                    # (3C,)
    b_tot = (params["b_a1"] + params["b_a2"] + params["b_a4"]).astype(f32)[0]
    offs = jnp.array([-4, -2, -1, 0, 1, 2, 4], jnp.int32)
    svals = jnp.stack([a_m4 @ bup, a_m2 @ bup, a_m1 @ bup, a_0 @ bup,
                       a_p1 @ bup, a_p2 @ bup, a_p4 @ bup])
    tpos = jnp.arange(2 * L, dtype=jnp.int32)
    inrng = (((tpos[None, :] + offs[:, None]) >= 0)
             & ((tpos[None, :] + offs[:, None]) < 2 * L))
    fs_bias = b_tot + jnp.sum(svals[:, None] * inrng.astype(f32), axis=0)   # (2L,)
    abias = fs_bias.reshape(L, 2).T                                     # (2, L)

    # ---- pallas_call --------------------------------------------------------
    def run(single_buffer_weights):
        def const(shape):
            nd = len(shape)
            kwargs = {}
            if single_buffer_weights:
                kwargs["pipeline_mode"] = pl.Buffered(1)   # grid-invariant weights
            return pl.BlockSpec(shape, lambda n, _nd=nd: (0,) * _nd, **kwargs)

        out = pl.pallas_call(
            decoder_kernel,
            out_shape=jax.ShapeDtypeStruct((N, 2, L), f32),
            grid=(N,),
            in_specs=[
                pl.BlockSpec((1, L, cp), lambda n: (n, 0, 0)),          # u0
                const(rbw1.shape), const(rbb1.shape),                   # rb conv1
                const(rbw2.shape), const(rbb2.shape),                   # rb conv2
                const(wrf.shape), const(brf.shape),                     # final res conv
                const(wcf4.shape), const(bcf4.shape),                   # cf4
                const(gc.shape), const(gd.shape),                       # folded up+A
                const(abias.shape),                                     # folded bias
            ],
            out_specs=pl.BlockSpec((1, 2, L), lambda n: (n, 0, 0)),
            compiler_params=pltpu.CompilerParams(
                dimension_semantics=("parallel",),
                vmem_limit_bytes=vmem_limit_bytes),
        )(u0, rbw1, rbb1, rbw2, rbb2, wrf, brf, wcf4, bcf4, gc, gd, abias)
        return jax.block_until_ready(out)

    try:
        out = run(True)          # single-buffered weights
    except Exception:
        out = run(False)         # fallback: default double-buffering

    # interleave even/odd rows: (N, 2, L) -> (N, 2L) -> (N, 1, 2L)
    fs = jnp.transpose(out, (0, 2, 1)).reshape(N, 2 * L)
    return fs[:, None, :]


# --------------------------------------------------------------------------
# pure-JAX reference of the PyTorch Decoder forward (NCL layout)
# --------------------------------------------------------------------------
def _conv1d_ref(x, w, b, *, padding, dilation=1):
    dn = ("NCH", "OIH", "NCH")
    out = lax.conv_general_dilated(
        x, w, window_strides=(1,), padding=((padding, padding),),
        rhs_dilation=(dilation,), dimension_numbers=dn)
    return out + b[None, :, None]


def _conv_transpose1d_ref(x, w, b):
    # PyTorch ConvTranspose1d(k=3, stride=2, padding=1, output_padding=1)
    dn = ("NCH", "OIH", "NCH")
    w_conv = jnp.flip(jnp.transpose(w, (1, 0, 2)), axis=2)      # (out, in, k) flipped
    out = lax.conv_general_dilated(
        x, w_conv, window_strides=(1,), padding=((1, 2),),
        lhs_dilation=(2,), dimension_numbers=dn)
    return out + b[None, :, None]


def decoder_ref(x, y, p):
    u0 = _conv1d_ref(x, p["w_s1"], p["b_s1"], padding=0) + y
    u = u0
    for w1, b1, w2, b2 in zip(p["rb_w1"], p["rb_b1"], p["rb_w2"], p["rb_b2"]):
        h = jnp.tanh(_conv1d_ref(u, w1, b1, padding=1))
        u = u + _conv1d_ref(h, w2, b2, padding=1)
    r = _conv1d_ref(u, p["w_rf"], p["b_rf"], padding=1)
    r = r + u0
    r = _conv1d_ref(r, p["w_cf4"], p["b_cf4"], padding=1)
    r = _conv_transpose1d_ref(r, p["w_up"], p["b_up"])
    a1 = _conv1d_ref(r, p["w_a1"], p["b_a1"], padding=1, dilation=1)
    a2 = _conv1d_ref(r, p["w_a2"], p["b_a2"], padding=2, dilation=2)
    a4 = _conv1d_ref(r, p["w_a4"], p["b_a4"], padding=4, dilation=4)
    return a1 + a2 + a4


# --------------------------------------------------------------------------
if __name__ == "__main__":
    N, C, L = 2, 4, 16  # batch, n_features, sequence length

    key = jax.random.PRNGKey(0)
    keys = iter(jax.random.split(key, 64))

    def nrm(k, shape, scale=0.1):
        return jax.random.normal(k, shape, dtype=jnp.float32) * scale

    x = jax.random.normal(next(keys), (N, 1, L), dtype=jnp.float32)
    y = jax.random.normal(next(keys), (N, C, L), dtype=jnp.float32)

    params = {
        "w_s1": nrm(next(keys), (C, 1, 1)), "b_s1": nrm(next(keys), (C,)),
        "rb_w1": [nrm(next(keys), (C, C, KER)) for _ in range(N_RES_BLOCKS)],
        "rb_b1": [nrm(next(keys), (C,)) for _ in range(N_RES_BLOCKS)],
        "rb_w2": [nrm(next(keys), (C, C, KER)) for _ in range(N_RES_BLOCKS)],
        "rb_b2": [nrm(next(keys), (C,)) for _ in range(N_RES_BLOCKS)],
        "w_rf": nrm(next(keys), (C, C, KER)), "b_rf": nrm(next(keys), (C,)),
        "w_cf4": nrm(next(keys), (4 * C, C, KER)), "b_cf4": nrm(next(keys), (4 * C,)),
        "w_up": nrm(next(keys), (4 * C, 3 * C, KER)), "b_up": nrm(next(keys), (3 * C,)),
        "w_a1": nrm(next(keys), (1, 3 * C, KER)), "b_a1": nrm(next(keys), (1,)),
        "w_a2": nrm(next(keys), (1, 3 * C, KER)), "b_a2": nrm(next(keys), (1,)),
        "w_a4": nrm(next(keys), (1, 3 * C, KER)), "b_a4": nrm(next(keys), (1,)),
    }

    out = decoder_forward(x, y, params)
    out = jax.block_until_ready(out)

    expected = jax.block_until_ready(decoder_ref(x, y, params))
    assert out.shape == (N, 1, 2 * L), f"bad output shape {out.shape}"
    err = float(jnp.max(jnp.abs(out - expected)))
    # bf16 matmul operands (f32 accumulation) -> slightly looser tolerance
    assert jnp.allclose(out, expected, rtol=2e-2, atol=2e-2), \
        f"mismatch vs reference, max abs err={err:.3e}"

    print("KERNEL_OK")
</pallas_src>

<mosaic_0001>
module attributes {stable_mosaic.version = 11 : i64} {
  func.func @decoder_kernel(%arg0: i32, %arg1: memref<1x16x128xf32, #tpu.memory_space<vmem>>, %arg2: memref<8x3x128x128xbf16, #tpu.memory_space<vmem>>, %arg3: memref<8x1x128xf32, #tpu.memory_space<vmem>>, %arg4: memref<8x3x128x128xbf16, #tpu.memory_space<vmem>>, %arg5: memref<8x1x128xf32, #tpu.memory_space<vmem>>, %arg6: memref<3x128x128xbf16, #tpu.memory_space<vmem>>, %arg7: memref<1x128xf32, #tpu.memory_space<vmem>>, %arg8: memref<3x128x128xbf16, #tpu.memory_space<vmem>>, %arg9: memref<1x128xf32, #tpu.memory_space<vmem>>, %arg10: memref<5x128x128xf32, #tpu.memory_space<vmem>>, %arg11: memref<5x128x128xf32, #tpu.memory_space<vmem>>, %arg12: memref<2x16xf32, #tpu.memory_space<vmem>>, %arg13: memref<1x2x16xf32, #tpu.memory_space<vmem>>) attributes {dimension_semantics = [#tpu.dimension_semantics<parallel>], iteration_bounds = array<i64: 2>, scalar_prefetch = 0 : i64, scratch_operands = 0 : i64, tpu.core_type = #tpu.core_type<tc>, window_params = [{transform_indices = @transform_0, window_bounds = array<i64: 1, 16, 128>}, {pipeline_mode = #tpu.pipeline_mode<synchronous>, transform_indices = @transform_1, window_bounds = array<i64: 8, 3, 128, 128>}, {pipeline_mode = #tpu.pipeline_mode<synchronous>, transform_indices = @transform_2, window_bounds = array<i64: 8, 1, 128>}, {pipeline_mode = #tpu.pipeline_mode<synchronous>, transform_indices = @transform_3, window_bounds = array<i64: 8, 3, 128, 128>}, {pipeline_mode = #tpu.pipeline_mode<synchronous>, transform_indices = @transform_4, window_bounds = array<i64: 8, 1, 128>}, {pipeline_mode = #tpu.pipeline_mode<synchronous>, transform_indices = @transform_5, window_bounds = array<i64: 3, 128, 128>}, {pipeline_mode = #tpu.pipeline_mode<synchronous>, transform_indices = @transform_6, window_bounds = array<i64: 1, 128>}, {pipeline_mode = #tpu.pipeline_mode<synchronous>, transform_indices = @transform_7, window_bounds = array<i64: 3, 128, 128>}, {pipeline_mode = #tpu.pipeline_mode<synchronous>, transform_indices = @transform_8, window_bounds = array<i64: 1, 128>}, {pipeline_mode = #tpu.pipeline_mode<synchronous>, transform_indices = @transform_9, window_bounds = array<i64: 5, 128, 128>}, {pipeline_mode = #tpu.pipeline_mode<synchronous>, transform_indices = @transform_10, window_bounds = array<i64: 5, 128, 128>}, {pipeline_mode = #tpu.pipeline_mode<synchronous>, transform_indices = @transform_11, window_bounds = array<i64: 2, 16>}, {transform_indices = @transform_12, window_bounds = array<i64: 1, 2, 16>}]} {
    %c0 = arith.constant 0 : index
    %c0_0 = arith.constant 0 : index
    %c0_1 = arith.constant 0 : index
    %0 = vector.load %arg1[%c0, %c0_0, %c0_1] : memref<1x16x128xf32, #tpu.memory_space<vmem>>, vector<1x16x128xf32>
    %1 = vector.shape_cast %0 : vector<1x16x128xf32> to vector<16x128xf32>
    %c0_i32 = arith.constant 0 : i32
    %c8_i32 = arith.constant 8 : i32
    %2 = arith.addi %c0_i32, %c8_i32 : i32
    %c1_i32 = arith.constant 1 : i32
    %3 = scf.for %arg14 = %c0_i32 to %2 step %c1_i32 iter_args(%arg15 = %1) -> (vector<16x128xf32>)  : i32 {
      %109 = arith.index_cast %arg14 : i32 to index
      %c0_76 = arith.constant 0 : index
      %c0_77 = arith.constant 0 : index
      %c0_78 = arith.constant 0 : index
      %110 = vector.load %arg2[%109, %c0_76, %c0_77, %c0_78] : memref<8x3x128x128xbf16, #tpu.memory_space<vmem>>, vector<1x3x128x128xbf16>
      %111 = vector.shape_cast %110 : vector<1x3x128x128xbf16> to vector<3x128x128xbf16>
      %112 = arith.index_cast %arg14 : i32 to index
      %c0_79 = arith.constant 0 : index
      %c0_80 = arith.constant 0 : index
      %113 = vector.load %arg3[%112, %c0_79, %c0_80] : memref<8x1x128xf32, #tpu.memory_space<vmem>>, vector<1x1x128xf32>
      %114 = vector.shape_cast %113 : vector<1x1x128xf32> to vector<1x128xf32>
      %115 = arith.truncf %arg15 : vector<16x128xf32> to vector<16x128xbf16>
      %cst_81 = arith.constant 0.000000e+00 : bf16
      %116 = vector.broadcast %cst_81 : bf16 to vector<1x128xbf16>
      %117 = tpu.concatenate %116, %115, %116 in 0 : vector<1x128xbf16>, vector<16x128xbf16>, vector<1x128xbf16> -> vector<18x128xbf16>
      %118 = vector.extract_strided_slice %117 {offsets = [0, 0], sizes = [16, 128], strides = [1, 1]} : vector<18x128xbf16> to vector<16x128xbf16>
      %119 = vector.extract_strided_slice %111 {offsets = [0, 0, 0], sizes = [1, 128, 128], strides = [1, 1, 1]} : vector<3x128x128xbf16> to vector<1x128x128xbf16>
      %120 = vector.shape_cast %119 : vector<1x128x128xbf16> to vector<128x128xbf16>
      %cst_82 = arith.constant dense<0.000000e+00> : vector<16x128xf32>
      %121 = tpu.matmul %118, %120, %cst_82 {dimension_numbers = #tpu.dot_dimension_numbers<[1], [0], [0], [1], [0, 0, 1, 1], [], []>} : vector<16x128xbf16>, vector<128x128xbf16>, vector<16x128xf32> -> vector<16x128xf32>
      %122 = vector.extract_strided_slice %117 {offsets = [1, 0], sizes = [16, 128], strides = [1, 1]} : vector<18x128xbf16> to vector<16x128xbf16>
      %123 = vector.extract_strided_slice %111 {offsets = [1, 0, 0], sizes = [1, 128, 128], strides = [1, 1, 1]} : vector<3x128x128xbf16> to vector<1x128x128xbf16>
      %124 = vector.shape_cast %123 : vector<1x128x128xbf16> to vector<128x128xbf16>
      %cst_83 = arith.constant dense<0.000000e+00> : vector<16x128xf32>
      %125 = tpu.matmul %122, %124, %cst_83 {dimension_numbers = #tpu.dot_dimension_numbers<[1], [0], [0], [1], [0, 0, 1, 1], [], []>} : vector<16x128xbf16>, vector<128x128xbf16>, vector<16x128xf32> -> vector<16x128xf32>
      %126 = arith.addf %121, %125 : vector<16x128xf32>
      %127 = vector.extract_strided_slice %117 {offsets = [2, 0], sizes = [16, 128], strides = [1, 1]} : vector<18x128xbf16> to vector<16x128xbf16>
      %128 = vector.extract_strided_slice %111 {offsets = [2, 0, 0], sizes = [1, 128, 128], strides = [1, 1, 1]} : vector<3x128x128xbf16> to vector<1x128x128xbf16>
      %129 = vector.shape_cast %128 : vector<1x128x128xbf16> to vector<128x128xbf16>
      %cst_84 = arith.constant dense<0.000000e+00> : vector<16x128xf32>
      %130 = tpu.matmul %127, %129, %cst_84 {dimension_numbers = #tpu.dot_dimension_numbers<[1], [0], [0], [1], [0, 0, 1, 1], [], []>} : vector<16x128xbf16>, vector<128x128xbf16>, vector<16x128xf32> -> vector<16x128xf32>
      %131 = arith.addf %126, %130 : vector<16x128xf32>
      %132 = vector.broadcast %114 : vector<1x128xf32> to vector<16x128xf32>
      %133 = arith.addf %131, %132 : vector<16x128xf32>
      %134 = math.tanh %133 : vector<16x128xf32>
      %135 = arith.index_cast %arg14 : i32 to index
      %c0_85 = arith.constant 0 : index
      %c0_86 = arith.constant 0 : index
      %c0_87 = arith.constant 0 : index
      %136 = vector.load %arg4[%135, %c0_85, %c0_86, %c0_87] : memref<8x3x128x128xbf16, #tpu.memory_space<vmem>>, vector<1x3x128x128xbf16>
      %137 = vector.shape_cast %136 : vector<1x3x128x128xbf16> to vector<3x128x128xbf16>
      %138 = arith.index_cast %arg14 : i32 to index
      %c0_88 = arith.constant 0 : index
      %c0_89 = arith.constant 0 : index
      %139 = vector.load %arg5[%138, %c0_88, %c0_89] : memref<8x1x128xf32, #tpu.memory_space<vmem>>, vector<1x1x128xf32>
      %140 = vector.shape_cast %139 : vector<1x1x128xf32> to vector<1x128xf32>
      %141 = arith.truncf %134 : vector<16x128xf32> to vector<16x128xbf16>
      %cst_90 = arith.constant 0.000000e+00 : bf16
      %142 = vector.broadcast %cst_90 : bf16 to vector<1x128xbf16>
      %143 = tpu.concatenate %142, %141, %142 in 0 : vector<1x128xbf16>, vector<16x128xbf16>, vector<1x128xbf16> -> vector<18x128xbf16>
      %144 = vector.extract_strided_slice %143 {offsets = [0, 0], sizes = [16, 128], strides = [1, 1]} : vector<18x128xbf16> to vector<16x128xbf16>
      %145 = vector.extract_strided_slice %137 {offsets = [0, 0, 0], sizes = [1, 128, 128], strides = [1, 1, 1]} : vector<3x128x128xbf16> to vector<1x128x128xbf16>
      %146 = vector.shape_cast %145 : vector<1x128x128xbf16> to vector<128x128xbf16>
      %cst_91 = arith.constant dense<0.000000e+00> : vector<16x128xf32>
      %147 = tpu.matmul %144, %146, %cst_91 {dimension_numbers = #tpu.dot_dimension_numbers<[1], [0], [0], [1], [0, 0, 1, 1], [], []>} : vector<16x128xbf16>, vector<128x128xbf16>, vector<16x128xf32> -> vector<16x128xf32>
      %148 = vector.extract_strided_slice %143 {offsets = [1, 0], sizes = [16, 128], strides = [1, 1]} : vector<18x128xbf16> to vector<16x128xbf16>
      %149 = vector.extract_strided_slice %137 {offsets = [1, 0, 0], sizes = [1, 128, 128], strides = [1, 1, 1]} : vector<3x128x128xbf16> to vector<1x128x128xbf16>
      %150 = vector.shape_cast %149 : vector<1x128x128xbf16> to vector<128x128xbf16>
      %cst_92 = arith.constant dense<0.000000e+00> : vector<16x128xf32>
      %151 = tpu.matmul %148, %150, %cst_92 {dimension_numbers = #tpu.dot_dimension_numbers<[1], [0], [0], [1], [0, 0, 1, 1], [], []>} : vector<16x128xbf16>, vector<128x128xbf16>, vector<16x128xf32> -> vector<16x128xf32>
      %152 = arith.addf %147, %151 : vector<16x128xf32>
      %153 = vector.extract_strided_slice %143 {offsets = [2, 0], sizes = [16, 128], strides = [1, 1]} : vector<18x128xbf16> to vector<16x128xbf16>
      %154 = vector.extract_strided_slice %137 {offsets = [2, 0, 0], sizes = [1, 128, 128], strides = [1, 1, 1]} : vector<3x128x128xbf16> to vector<1x128x128xbf16>
      %155 = vector.shape_cast %154 : vector<1x128x128xbf16> to vector<128x128xbf16>
      %cst_93 = arith.constant dense<0.000000e+00> : vector<16x128xf32>
      %156 = tpu.matmul %153, %155, %cst_93 {dimension_numbers = #tpu.dot_dimension_numbers<[1], [0], [0], [1], [0, 0, 1, 1], [], []>} : vector<16x128xbf16>, vector<128x128xbf16>, vector<16x128xf32> -> vector<16x128xf32>
      %157 = arith.addf %152, %156 : vector<16x128xf32>
      %158 = vector.broadcast %140 : vector<1x128xf32> to vector<16x128xf32>
      %159 = arith.addf %157, %158 : vector<16x128xf32>
      %160 = arith.addf %arg15, %159 : vector<16x128xf32>
      scf.yield %160 : vector<16x128xf32>
    }
    %c8_i32_2 = arith.constant 8 : i32
    %c0_3 = arith.constant 0 : index
    %c0_4 = arith.constant 0 : index
    %4 = vector.load %arg7[%c0_3, %c0_4] : memref<1x128xf32, #tpu.memory_space<vmem>>, vector<1x128xf32>
    %5 = arith.truncf %3 : vector<16x128xf32> to vector<16x128xbf16>
    %cst = arith.constant 0.000000e+00 : bf16
    %6 = vector.broadcast %cst : bf16 to vector<1x128xbf16>
    %7 = tpu.concatenate %6, %5, %6 in 0 : vector<1x128xbf16>, vector<16x128xbf16>, vector<1x128xbf16> -> vector<18x128xbf16>
    %8 = vector.extract_strided_slice %7 {offsets = [0, 0], sizes = [16, 128], strides = [1, 1]} : vector<18x128xbf16> to vector<16x128xbf16>
    %c0_5 = arith.constant 0 : index
    %c0_6 = arith.constant 0 : index
    %c0_7 = arith.constant 0 : index
    %9 = vector.load %arg6[%c0_5, %c0_6, %c0_7] : memref<3x128x128xbf16, #tpu.memory_space<vmem>>, vector<1x128x128xbf16>
    %10 = vector.shape_cast %9 : vector<1x128x128xbf16> to vector<128x128xbf16>
    %cst_8 = arith.constant dense<0.000000e+00> : vector<16x128xf32>
    %11 = tpu.matmul %8, %10, %cst_8 {dimension_numbers = #tpu.dot_dimension_numbers<[1], [0], [0], [1], [0, 0, 1, 1], [], []>} : vector<16x128xbf16>, vector<128x128xbf16>, vector<16x128xf32> -> vector<16x128xf32>
    %12 = vector.extract_strided_slice %7 {offsets = [1, 0], sizes = [16, 128], strides = [1, 1]} : vector<18x128xbf16> to vector<16x128xbf16>
    %c1 = arith.constant 1 : index
    %c0_9 = arith.constant 0 : index
    %c0_10 = arith.constant 0 : index
    %13 = vector.load %arg6[%c1, %c0_9, %c0_10] : memref<3x128x128xbf16, #tpu.memory_space<vmem>>, vector<1x128x128xbf16>
    %14 = vector.shape_cast %13 : vector<1x128x128xbf16> to vector<128x128xbf16>
    %cst_11 = arith.constant dense<0.000000e+00> : vector<16x128xf32>
    %15 = tpu.matmul %12, %14, %cst_11 {dimension_numbers = #tpu.dot_dimension_numbers<[1], [0], [0], [1], [0, 0, 1, 1], [], []>} : vector<16x128xbf16>, vector<128x128xbf16>, vector<16x128xf32> -> vector<16x128xf32>
    %16 = arith.addf %11, %15 : vector<16x128xf32>
    %17 = vector.extract_strided_slice %7 {offsets = [2, 0], sizes = [16, 128], strides = [1, 1]} : vector<18x128xbf16> to vector<16x128xbf16>
    %c2 = arith.constant 2 : index
    %c0_12 = arith.constant 0 : index
    %c0_13 = arith.constant 0 : index
    %18 = vector.load %arg6[%c2, %c0_12, %c0_13] : memref<3x128x128xbf16, #tpu.memory_space<vmem>>, vector<1x128x128xbf16>
    %19 = vector.shape_cast %18 : vector<1x128x128xbf16> to vector<128x128xbf16>
    %cst_14 = arith.constant dense<0.000000e+00> : vector<16x128xf32>
    %20 = tpu.matmul %17, %19, %cst_14 {dimension_numbers = #tpu.dot_dimension_numbers<[1], [0], [0], [1], [0, 0, 1, 1], [], []>} : vector<16x128xbf16>, vector<128x128xbf16>, vector<16x128xf32> -> vector<16x128xf32>
    %21 = arith.addf %16, %20 : vector<16x128xf32>
    %22 = vector.broadcast %4 : vector<1x128xf32> to vector<16x128xf32>
    %23 = arith.addf %21, %22 : vector<16x128xf32>
    %24 = arith.addf %23, %1 : vector<16x128xf32>
    %c0_15 = arith.constant 0 : index
    %c0_16 = arith.constant 0 : index
    %25 = vector.load %arg9[%c0_15, %c0_16] : memref<1x128xf32, #tpu.memory_space<vmem>>, vector<1x128xf32>
    %26 = arith.truncf %24 : vector<16x128xf32> to vector<16x128xbf16>
    %cst_17 = arith.constant 0.000000e+00 : bf16
    %27 = vector.broadcast %cst_17 : bf16 to vector<1x128xbf16>
    %28 = tpu.concatenate %27, %26, %27 in 0 : vector<1x128xbf16>, vector<16x128xbf16>, vector<1x128xbf16> -> vector<18x128xbf16>
    %29 = vector.extract_strided_slice %28 {offsets = [0, 0], sizes = [16, 128], strides = [1, 1]} : vector<18x128xbf16> to vector<16x128xbf16>
    %c0_18 = arith.constant 0 : index
    %c0_19 = arith.constant 0 : index
    %c0_20 = arith.constant 0 : index
    %30 = vector.load %arg8[%c0_18, %c0_19, %c0_20] : memref<3x128x128xbf16, #tpu.memory_space<vmem>>, vector<1x128x128xbf16>
    %31 = vector.shape_cast %30 : vector<1x128x128xbf16> to vector<128x128xbf16>
    %cst_21 = arith.constant dense<0.000000e+00> : vector<16x128xf32>
    %32 = tpu.matmul %29, %31, %cst_21 {dimension_numbers = #tpu.dot_dimension_numbers<[1], [0], [0], [1], [0, 0, 1, 1], [], []>} : vector<16x128xbf16>, vector<128x128xbf16>, vector<16x128xf32> -> vector<16x128xf32>
    %33 = vector.extract_strided_slice %28 {offsets = [1, 0], sizes = [16, 128], strides = [1, 1]} : vector<18x128xbf16> to vector<16x128xbf16>
    %c1_22 = arith.constant 1 : index
    %c0_23 = arith.constant 0 : index
    %c0_24 = arith.constant 0 : index
    %34 = vector.load %arg8[%c1_22, %c0_23, %c0_24] : memref<3x128x128xbf16, #tpu.memory_space<vmem>>, vector<1x128x128xbf16>
    %35 = vector.shape_cast %34 : vector<1x128x128xbf16> to vector<128x128xbf16>
    %cst_25 = arith.constant dense<0.000000e+00> : vector<16x128xf32>
    %36 = tpu.matmul %33, %35, %cst_25 {dimension_numbers = #tpu.dot_dimension_numbers<[1], [0], [0], [1], [0, 0, 1, 1], [], []>} : vector<16x128xbf16>, vector<128x128xbf16>, vector<16x128xf32> -> vector<16x128xf32>
    %37 = arith.addf %32, %36 : vector<16x128xf32>
    %38 = vector.extract_strided_slice %28 {offsets = [2, 0], sizes = [16, 128], strides = [1, 1]} : vector<18x128xbf16> to vector<16x128xbf16>
    %c2_26 = arith.constant 2 : index
    %c0_27 = arith.constant 0 : index
    %c0_28 = arith.constant 0 : index
    %39 = vector.load %arg8[%c2_26, %c0_27, %c0_28] : memref<3x128x128xbf16, #tpu.memory_space<vmem>>, vector<1x128x128xbf16>
    %40 = vector.shape_cast %39 : vector<1x128x128xbf16> to vector<128x128xbf16>
    %cst_29 = arith.constant dense<0.000000e+00> : vector<16x128xf32>
    %41 = tpu.matmul %38, %40, %cst_29 {dimension_numbers = #tpu.dot_dimension_numbers<[1], [0], [0], [1], [0, 0, 1, 1], [], []>} : vector<16x128xbf16>, vector<128x128xbf16>, vector<16x128xf32> -> vector<16x128xf32>
    %42 = arith.addf %37, %41 : vector<16x128xf32>
    %43 = vector.broadcast %25 : vector<1x128xf32> to vector<16x128xf32>
    %44 = arith.addf %42, %43 : vector<16x128xf32>
    %cst_30 = arith.constant 0.000000e+00 : f32
    %45 = vector.broadcast %cst_30 : f32 to vector<2x128xf32>
    %46 = tpu.concatenate %45, %44, %45 in 0 : vector<2x128xf32>, vector<16x128xf32>, vector<2x128xf32> -> vector<20x128xf32>
    %47 = vector.extract_strided_slice %44 {offsets = [1, 0], sizes = [15, 128], strides = [1, 1]} : vector<16x128xf32> to vector<15x128xf32>
    %cst_31 = arith.constant 0.000000e+00 : f32
    %48 = vector.broadcast %cst_31 : f32 to vector<1x128xf32>
    %49 = tpu.concatenate %47, %48 in 0 : vector<15x128xf32>, vector<1x128xf32> -> vector<16x128xf32>
    %50 = tpu.concatenate %45, %49, %45 in 0 : vector<2x128xf32>, vector<16x128xf32>, vector<2x128xf32> -> vector<20x128xf32>
    %cst_32 = arith.constant 0.000000e+00 : f32
    %51 = vector.broadcast %cst_32 : f32 to vector<16x128xf32>
    %52 = vector.extract_strided_slice %46 {offsets = [0, 0], sizes = [16, 128], strides = [1, 1]} : vector<20x128xf32> to vector<16x128xf32>
    %c0_33 = arith.constant 0 : index
    %c0_34 = arith.constant 0 : index
    %c0_35 = arith.constant 0 : index
    %53 = vector.load %arg10[%c0_33, %c0_34, %c0_35] : memref<5x128x128xf32, #tpu.memory_space<vmem>>, vector<1x128x128xf32>
    %54 = vector.shape_cast %53 : vector<1x128x128xf32> to vector<128x128xf32>
    %cst_36 = arith.constant dense<0.000000e+00> : vector<16x128xf32>
    %55 = tpu.matmul %52, %54, %cst_36 {dimension_numbers = #tpu.dot_dimension_numbers<[1], [0], [0], [1], [0, 0, 1, 1], [], []>} : vector<16x128xf32>, vector<128x128xf32>, vector<16x128xf32> -> vector<16x128xf32>
    %56 = arith.addf %51, %55 : vector<16x128xf32>
    %57 = vector.extract_strided_slice %50 {offsets = [0, 0], sizes = [16, 128], strides = [1, 1]} : vector<20x128xf32> to vector<16x128xf32>
    %c0_37 = arith.constant 0 : index
    %c0_38 = arith.constant 0 : index
    %c0_39 = arith.constant 0 : index
    %58 = vector.load %arg11[%c0_37, %c0_38, %c0_39] : memref<5x128x128xf32, #tpu.memory_space<vmem>>, vector<1x128x128xf32>
    %59 = vector.shape_cast %58 : vector<1x128x128xf32> to vector<128x128xf32>
    %cst_40 = arith.constant dense<0.000000e+00> : vector<16x128xf32>
    %60 = tpu.matmul %57, %59, %cst_40 {dimension_numbers = #tpu.dot_dimension_numbers<[1], [0], [0], [1], [0, 0, 1, 1], [], []>} : vector<16x128xf32>, vector<128x128xf32>, vector<16x128xf32> -> vector<16x128xf32>
    %61 = arith.addf %56, %60 : vector<16x128xf32>
    %62 = vector.extract_strided_slice %46 {offsets = [1, 0], sizes = [16, 128], strides = [1, 1]} : vector<20x128xf32> to vector<16x128xf32>
    %c1_41 = arith.constant 1 : index
    %c0_42 = arith.constant 0 : index
    %c0_43 = arith.constant 0 : index
    %63 = vector.load %arg10[%c1_41, %c0_42, %c0_43] : memref<5x128x128xf32, #tpu.memory_space<vmem>>, vector<1x128x128xf32>
    %64 = vector.shape_cast %63 : vector<1x128x128xf32> to vector<128x128xf32>
    %cst_44 = arith.constant dense<0.000000e+00> : vector<16x128xf32>
    %65 = tpu.matmul %62, %64, %cst_44 {dimension_numbers = #tpu.dot_dimension_numbers<[1], [0], [0], [1], [0, 0, 1, 1], [], []>} : vector<16x128xf32>, vector<128x128xf32>, vector<16x128xf32> -> vector<16x128xf32>
    %66 = arith.addf %61, %65 : vector<16x128xf32>
    %67 = vector.extract_strided_slice %50 {offsets = [1, 0], sizes = [16, 128], strides = [1, 1]} : vector<20x128xf32> to vector<16x128xf32>
    %c1_45 = arith.constant 1 : index
    %c0_46 = arith.constant 0 : index
    %c0_47 = arith.constant 0 : index
    %68 = vector.load %arg11[%c1_45, %c0_46, %c0_47] : memref<5x128x128xf32, #tpu.memory_space<vmem>>, vector<1x128x128xf32>
    %69 = vector.shape_cast %68 : vector<1x128x128xf32> to vector<128x128xf32>
    %cst_48 = arith.constant dense<0.000000e+00> : vector<16x128xf32>
    %70 = tpu.matmul %67, %69, %cst_48 {dimension_numbers = #tpu.dot_dimension_numbers<[1], [0], [0], [1], [0, 0, 1, 1], [], []>} : vector<16x128xf32>, vector<128x128xf32>, vector<16x128xf32> -> vector<16x128xf32>
    %71 = arith.addf %66, %70 : vector<16x128xf32>
    %72 = vector.extract_strided_slice %46 {offsets = [2, 0], sizes = [16, 128], strides = [1, 1]} : vector<20x128xf32> to vector<16x128xf32>
    %c2_49 = arith.constant 2 : index
    %c0_50 = arith.constant 0 : index
    %c0_51 = arith.constant 0 : index
    %73 = vector.load %arg10[%c2_49, %c0_50, %c0_51] : memref<5x128x128xf32, #tpu.memory_space<vmem>>, vector<1x128x128xf32>
    %74 = vector.shape_cast %73 : vector<1x128x128xf32> to vector<128x128xf32>
    %cst_52 = arith.constant dense<0.000000e+00> : vector<16x128xf32>
    %75 = tpu.matmul %72, %74, %cst_52 {dimension_numbers = #tpu.dot_dimension_numbers<[1], [0], [0], [1], [0, 0, 1, 1], [], []>} : vector<16x128xf32>, vector<128x128xf32>, vector<16x128xf32> -> vector<16x128xf32>
    %76 = arith.addf %71, %75 : vector<16x128xf32>
    %77 = vector.extract_strided_slice %50 {offsets = [2, 0], sizes = [16, 128], strides = [1, 1]} : vector<20x128xf32> to vector<16x128xf32>
    %c2_53 = arith.constant 2 : index
    %c0_54 = arith.constant 0 : index
    %c0_55 = arith.constant 0 : index
    %78 = vector.load %arg11[%c2_53, %c0_54, %c0_55] : memref<5x128x128xf32, #tpu.memory_space<vmem>>, vector<1x128x128xf32>
    %79 = vector.shape_cast %78 : vector<1x128x128xf32> to vector<128x128xf32>
    %cst_56 = arith.constant dense<0.000000e+00> : vector<16x128xf32>
    %80 = tpu.matmul %77, %79, %cst_56 {dimension_numbers = #tpu.dot_dimension_numbers<[1], [0], [0], [1], [0, 0, 1, 1], [], []>} : vector<16x128xf32>, vector<128x128xf32>, vector<16x128xf32> -> vector<16x128xf32>
    %81 = arith.addf %76, %80 : vector<16x128xf32>
    %82 = vector.extract_strided_slice %46 {offsets = [3, 0], sizes = [16, 128], strides = [1, 1]} : vector<20x128xf32> to vector<16x128xf32>
    %c3 = arith.constant 3 : index
    %c0_57 = arith.constant 0 : index
    %c0_58 = arith.constant 0 : index
    %83 = vector.load %arg10[%c3, %c0_57, %c0_58] : memref<5x128x128xf32, #tpu.memory_space<vmem>>, vector<1x128x128xf32>
    %84 = vector.shape_cast %83 : vector<1x128x128xf32> to vector<128x128xf32>
    %cst_59 = arith.constant dense<0.000000e+00> : vector<16x128xf32>
    %85 = tpu.matmul %82, %84, %cst_59 {dimension_numbers = #tpu.dot_dimension_numbers<[1], [0], [0], [1], [0, 0, 1, 1], [], []>} : vector<16x128xf32>, vector<128x128xf32>, vector<16x128xf32> -> vector<16x128xf32>
    %86 = arith.addf %81, %85 : vector<16x128xf32>
    %87 = vector.extract_strided_slice %50 {offsets = [3, 0], sizes = [16, 128], strides = [1, 1]} : vector<20x128xf32> to vector<16x128xf32>
    %c3_60 = arith.constant 3 : index
    %c0_61 = arith.constant 0 : index
    %c0_62 = arith.constant 0 : index
    %88 = vector.load %arg11[%c3_60, %c0_61, %c0_62] : memref<5x128x128xf32, #tpu.memory_space<vmem>>, vector<1x128x128xf32>
    %89 = vector.shape_cast %88 : vector<1x128x128xf32> to vector<128x128xf32>
    %cst_63 = arith.constant dense<0.000000e+00> : vector<16x128xf32>
    %90 = tpu.matmul %87, %89, %cst_63 {dimension_numbers = #tpu.dot_dimension_numbers<[1], [0], [0], [1], [0, 0, 1, 1], [], []>} : vector<16x128xf32>, vector<128x128xf32>, vector<16x128xf32> -> vector<16x128xf32>
    %91 = arith.addf %86, %90 : vector<16x128xf32>
    %92 = vector.extract_strided_slice %46 {offsets = [4, 0], sizes = [16, 128], strides = [1, 1]} : vector<20x128xf32> to vector<16x128xf32>
    %c4 = arith.constant 4 : index
    %c0_64 = arith.constant 0 : index
    %c0_65 = arith.constant 0 : index
    %93 = vector.load %arg10[%c4, %c0_64, %c0_65] : memref<5x128x128xf32, #tpu.memory_space<vmem>>, vector<1x128x128xf32>
    %94 = vector.shape_cast %93 : vector<1x128x128xf32> to vector<128x128xf32>
    %cst_66 = arith.constant dense<0.000000e+00> : vector<16x128xf32>
    %95 = tpu.matmul %92, %94, %cst_66 {dimension_numbers = #tpu.dot_dimension_numbers<[1], [0], [0], [1], [0, 0, 1, 1], [], []>} : vector<16x128xf32>, vector<128x128xf32>, vector<16x128xf32> -> vector<16x128xf32>
    %96 = arith.addf %91, %95 : vector<16x128xf32>
    %97 = vector.extract_strided_slice %50 {offsets = [4, 0], sizes = [16, 128], strides = [1, 1]} : vector<20x128xf32> to vector<16x128xf32>
    %c4_67 = arith.constant 4 : index
    %c0_68 = arith.constant 0 : index
    %c0_69 = arith.constant 0 : index
    %98 = vector.load %arg11[%c4_67, %c0_68, %c0_69] : memref<5x128x128xf32, #tpu.memory_space<vmem>>, vector<1x128x128xf32>
    %99 = vector.shape_cast %98 : vector<1x128x128xf32> to vector<128x128xf32>
    %cst_70 = arith.constant dense<0.000000e+00> : vector<16x128xf32>
    %100 = tpu.matmul %97, %99, %cst_70 {dimension_numbers = #tpu.dot_dimension_numbers<[1], [0], [0], [1], [0, 0, 1, 1], [], []>} : vector<16x128xf32>, vector<128x128xf32>, vector<16x128xf32> -> vector<16x128xf32>
    %101 = arith.addf %96, %100 : vector<16x128xf32>
    %102 = tpu.transpose %101, [1, 0] : vector<16x128xf32> -> vector<128x16xf32>
    %103 = vector.extract_strided_slice %102 {offsets = [0, 0], sizes = [2, 16], strides = [1, 1]} : vector<128x16xf32> to vector<2x16xf32>
    %c0_71 = arith.constant 0 : index
    %c0_72 = arith.constant 0 : index
    %104 = vector.load %arg12[%c0_71, %c0_72] : memref<2x16xf32, #tpu.memory_space<vmem>>, vector<2x16xf32>
    %105 = arith.addf %103, %104 : vector<2x16xf32>
    %c0_73 = arith.constant 0 : index
    %c0_74 = arith.constant 0 : index
    %c0_75 = arith.constant 0 : index
    %106 = vector.load %arg13[%c0_73, %c0_74, %c0_75] : memref<1x2x16xf32, #tpu.memory_space<vmem>>, vector<1x2x16xf32>
    %107 = vector.shape_cast %106 : vector<1x2x16xf32> to vector<2x16xf32>
    %108 = vector.shape_cast %105 : vector<2x16xf32> to vector<1x2x16xf32>
    tpu.vector_store %arg13[%c0_73, %c0_74, %c0_75], %108 {strides = array<i32>} : memref<1x2x16xf32, #tpu.memory_space<vmem>>, vector<1x2x16xf32>,
    return
  }
  func.func @transform_0(%arg0: i32) -> (i32, i32, i32) {
    %c0_i32 = arith.constant 0 : i32
    %c0_i32_0 = arith.constant 0 : i32
    %c0_i32_1 = arith.constant 0 : i32
    return %arg0, %c0_i32, %c0_i32_0 : i32, i32, i32
  }
  func.func @transform_1(%arg0: i32) -> (i32, i32, i32, i32) {
    %c0_i32 = arith.constant 0 : i32
    %c0_i32_0 = arith.constant 0 : i32
    %c0_i32_1 = arith.constant 0 : i32
    %c0_i32_2 = arith.constant 0 : i32
    %c0_i32_3 = arith.constant 0 : i32
    return %c0_i32, %c0_i32_0, %c0_i32_1, %c0_i32_2 : i32, i32, i32, i32
  }
  func.func @transform_2(%arg0: i32) -> (i32, i32, i32) {
    %c0_i32 = arith.constant 0 : i32
    %c0_i32_0 = arith.constant 0 : i32
    %c0_i32_1 = arith.constant 0 : i32
    %c0_i32_2 = arith.constant 0 : i32
    return %c0_i32, %c0_i32_0, %c0_i32_1 : i32, i32, i32
  }
  func.func @transform_3(%arg0: i32) -> (i32, i32, i32, i32) {
    %c0_i32 = arith.constant 0 : i32
    %c0_i32_0 = arith.constant 0 : i32
    %c0_i32_1 = arith.constant 0 : i32
    %c0_i32_2 = arith.constant 0 : i32
    %c0_i32_3 = arith.constant 0 : i32
    return %c0_i32, %c0_i32_0, %c0_i32_1, %c0_i32_2 : i32, i32, i32, i32
  }
  func.func @transform_4(%arg0: i32) -> (i32, i32, i32) {
    %c0_i32 = arith.constant 0 : i32
    %c0_i32_0 = arith.constant 0 : i32
    %c0_i32_1 = arith.constant 0 : i32
    %c0_i32_2 = arith.constant 0 : i32
    return %c0_i32, %c0_i32_0, %c0_i32_1 : i32, i32, i32
  }
  func.func @transform_5(%arg0: i32) -> (i32, i32, i32) {
    %c0_i32 = arith.constant 0 : i32
    %c0_i32_0 = arith.constant 0 : i32
    %c0_i32_1 = arith.constant 0 : i32
    %c0_i32_2 = arith.constant 0 : i32
    return %c0_i32, %c0_i32_0, %c0_i32_1 : i32, i32, i32
  }
  func.func @transform_6(%arg0: i32) -> (i32, i32) {
    %c0_i32 = arith.constant 0 : i32
    %c0_i32_0 = arith.constant 0 : i32
    %c0_i32_1 = arith.constant 0 : i32
    return %c0_i32, %c0_i32_0 : i32, i32
  }
  func.func @transform_7(%arg0: i32) -> (i32, i32, i32) {
    %c0_i32 = arith.constant 0 : i32
    %c0_i32_0 = arith.constant 0 : i32
    %c0_i32_1 = arith.constant 0 : i32
    %c0_i32_2 = arith.constant 0 : i32
    return %c0_i32, %c0_i32_0, %c0_i32_1 : i32, i32, i32
  }
  func.func @transform_8(%arg0: i32) -> (i32, i32) {
    %c0_i32 = arith.constant 0 : i32
    %c0_i32_0 = arith.constant 0 : i32
    %c0_i32_1 = arith.constant 0 : i32
    return %c0_i32, %c0_i32_0 : i32, i32
  }
  func.func @transform_9(%arg0: i32) -> (i32, i32, i32) {
    %c0_i32 = arith.constant 0 : i32
    %c0_i32_0 = arith.constant 0 : i32
    %c0_i32_1 = arith.constant 0 : i32
    %c0_i32_2 = arith.constant 0 : i32
    return %c0_i32, %c0_i32_0, %c0_i32_1 : i32, i32, i32
  }
  func.func @transform_10(%arg0: i32) -> (i32, i32, i32) {
    %c0_i32 = arith.constant 0 : i32
    %c0_i32_0 = arith.constant 0 : i32
    %c0_i32_1 = arith.constant 0 : i32
    %c0_i32_2 = arith.constant 0 : i32
    return %c0_i32, %c0_i32_0, %c0_i32_1 : i32, i32, i32
  }
  func.func @transform_11(%arg0: i32) -> (i32, i32) {
    %c0_i32 = arith.constant 0 : i32
    %c0_i32_0 = arith.constant 0 : i32
    %c0_i32_1 = arith.constant 0 : i32
    return %c0_i32, %c0_i32_0 : i32, i32
  }
  func.func @transform_12(%arg0: i32) -> (i32, i32, i32) {
    %c0_i32 = arith.constant 0 : i32
    %c0_i32_0 = arith.constant 0 : i32
    %c0_i32_1 = arith.constant 0 : i32
    return %arg0, %c0_i32, %c0_i32_0 : i32, i32, i32
  }
}

module attributes {stable_mosaic.version = 11 : i64} {
  func.func @decoder_kernel(%arg0: i32, %arg1: memref<1x16x128xf32, #tpu.memory_space<vmem>>, %arg2: memref<8x3x128x128xbf16, #tpu.memory_space<vmem>>, %arg3: memref<8x1x128xf32, #tpu.memory_space<vmem>>, %arg4: memref<8x3x128x128xbf16, #tpu.memory_space<vmem>>, %arg5: memref<8x1x128xf32, #tpu.memory_space<vmem>>, %arg6: memref<3x128x128xbf16, #tpu.memory_space<vmem>>, %arg7: memref<1x128xf32, #tpu.memory_space<vmem>>, %arg8: memref<3x128x128xbf16, #tpu.memory_space<vmem>>, %arg9: memref<1x128xf32, #tpu.memory_space<vmem>>, %arg10: memref<5x128x128xf32, #tpu.memory_space<vmem>>, %arg11: memref<5x128x128xf32, #tpu.memory_space<vmem>>, %arg12: memref<2x16xf32, #tpu.memory_space<vmem>>, %arg13: memref<1x2x16xf32, #tpu.memory_space<vmem>>) attributes {dimension_semantics = [#tpu.dimension_semantics<parallel>], iteration_bounds = array<i64: 2>, scalar_prefetch = 0 : i64, scratch_operands = 0 : i64, tpu.core_type = #tpu.core_type<tc>, window_params = [{transform_indices = @transform_0, window_bounds = array<i64: 1, 16, 128>}, {pipeline_mode = #tpu.pipeline_mode<synchronous>, transform_indices = @transform_1, window_bounds = array<i64: 8, 3, 128, 128>}, {pipeline_mode = #tpu.pipeline_mode<synchronous>, transform_indices = @transform_2, window_bounds = array<i64: 8, 1, 128>}, {pipeline_mode = #tpu.pipeline_mode<synchronous>, transform_indices = @transform_3, window_bounds = array<i64: 8, 3, 128, 128>}, {pipeline_mode = #tpu.pipeline_mode<synchronous>, transform_indices = @transform_4, window_bounds = array<i64: 8, 1, 128>}, {pipeline_mode = #tpu.pipeline_mode<synchronous>, transform_indices = @transform_5, window_bounds = array<i64: 3, 128, 128>}, {pipeline_mode = #tpu.pipeline_mode<synchronous>, transform_indices = @transform_6, window_bounds = array<i64: 1, 128>}, {pipeline_mode = #tpu.pipeline_mode<synchronous>, transform_indices = @transform_7, window_bounds = array<i64: 3, 128, 128>}, {pipeline_mode = #tpu.pipeline_mode<synchronous>, transform_indices = @transform_8, window_bounds = array<i64: 1, 128>}, {pipeline_mode = #tpu.pipeline_mode<synchronous>, transform_indices = @transform_9, window_bounds = array<i64: 5, 128, 128>}, {pipeline_mode = #tpu.pipeline_mode<synchronous>, transform_indices = @transform_10, window_bounds = array<i64: 5, 128, 128>}, {pipeline_mode = #tpu.pipeline_mode<synchronous>, transform_indices = @transform_11, window_bounds = array<i64: 2, 16>}, {transform_indices = @transform_12, window_bounds = array<i64: 1, 2, 16>}]} {
    %c0 = arith.constant 0 : index
    %c0_0 = arith.constant 0 : index
    %c0_1 = arith.constant 0 : index
    %0 = vector.load %arg1[%c0, %c0_0, %c0_1] : memref<1x16x128xf32, #tpu.memory_space<vmem>>, vector<1x16x128xf32>
    %1 = vector.shape_cast %0 : vector<1x16x128xf32> to vector<16x128xf32>
    %c0_i32 = arith.constant 0 : i32
    %c8_i32 = arith.constant 8 : i32
    %2 = arith.addi %c0_i32, %c8_i32 : i32
    %c1_i32 = arith.constant 1 : i32
    %3 = scf.for %arg14 = %c0_i32 to %2 step %c1_i32 iter_args(%arg15 = %1) -> (vector<16x128xf32>)  : i32 {
      %109 = arith.index_cast %arg14 : i32 to index
      %c0_76 = arith.constant 0 : index
      %c0_77 = arith.constant 0 : index
      %c0_78 = arith.constant 0 : index
      %110 = vector.load %arg2[%109, %c0_76, %c0_77, %c0_78] : memref<8x3x128x128xbf16, #tpu.memory_space<vmem>>, vector<1x3x128x128xbf16>
      %111 = vector.shape_cast %110 : vector<1x3x128x128xbf16> to vector<3x128x128xbf16>
      %112 = arith.index_cast %arg14 : i32 to index
      %c0_79 = arith.constant 0 : index
      %c0_80 = arith.constant 0 : index
      %113 = vector.load %arg3[%112, %c0_79, %c0_80] : memref<8x1x128xf32, #tpu.memory_space<vmem>>, vector<1x1x128xf32>
      %114 = vector.shape_cast %113 : vector<1x1x128xf32> to vector<1x128xf32>
      %115 = arith.truncf %arg15 : vector<16x128xf32> to vector<16x128xbf16>
      %cst_81 = arith.constant 0.000000e+00 : bf16
      %116 = vector.broadcast %cst_81 : bf16 to vector<1x128xbf16>
      %117 = tpu.concatenate %116, %115, %116 in 0 : vector<1x128xbf16>, vector<16x128xbf16>, vector<1x128xbf16> -> vector<18x128xbf16>
      %118 = vector.extract_strided_slice %117 {offsets = [0, 0], sizes = [16, 128], strides = [1, 1]} : vector<18x128xbf16> to vector<16x128xbf16>
      %119 = vector.extract_strided_slice %111 {offsets = [0, 0, 0], sizes = [1, 128, 128], strides = [1, 1, 1]} : vector<3x128x128xbf16> to vector<1x128x128xbf16>
      %120 = vector.shape_cast %119 : vector<1x128x128xbf16> to vector<128x128xbf16>
      %cst_82 = arith.constant dense<0.000000e+00> : vector<16x128xf32>
      %121 = tpu.matmul %118, %120, %cst_82 {dimension_numbers = #tpu.dot_dimension_numbers<[1], [0], [0], [1], [0, 0, 1, 1], [], []>} : vector<16x128xbf16>, vector<128x128xbf16>, vector<16x128xf32> -> vector<16x128xf32>
      %122 = vector.extract_strided_slice %117 {offsets = [1, 0], sizes = [16, 128], strides = [1, 1]} : vector<18x128xbf16> to vector<16x128xbf16>
      %123 = vector.extract_strided_slice %111 {offsets = [1, 0, 0], sizes = [1, 128, 128], strides = [1, 1, 1]} : vector<3x128x128xbf16> to vector<1x128x128xbf16>
      %124 = vector.shape_cast %123 : vector<1x128x128xbf16> to vector<128x128xbf16>
      %cst_83 = arith.constant dense<0.000000e+00> : vector<16x128xf32>
      %125 = tpu.matmul %122, %124, %cst_83 {dimension_numbers = #tpu.dot_dimension_numbers<[1], [0], [0], [1], [0, 0, 1, 1], [], []>} : vector<16x128xbf16>, vector<128x128xbf16>, vector<16x128xf32> -> vector<16x128xf32>
      %126 = arith.addf %121, %125 : vector<16x128xf32>
      %127 = vector.extract_strided_slice %117 {offsets = [2, 0], sizes = [16, 128], strides = [1, 1]} : vector<18x128xbf16> to vector<16x128xbf16>
      %128 = vector.extract_strided_slice %111 {offsets = [2, 0, 0], sizes = [1, 128, 128], strides = [1, 1, 1]} : vector<3x128x128xbf16> to vector<1x128x128xbf16>
      %129 = vector.shape_cast %128 : vector<1x128x128xbf16> to vector<128x128xbf16>
      %cst_84 = arith.constant dense<0.000000e+00> : vector<16x128xf32>
      %130 = tpu.matmul %127, %129, %cst_84 {dimension_numbers = #tpu.dot_dimension_numbers<[1], [0], [0], [1], [0, 0, 1, 1], [], []>} : vector<16x128xbf16>, vector<128x128xbf16>, vector<16x128xf32> -> vector<16x128xf32>
      %131 = arith.addf %126, %130 : vector<16x128xf32>
      %132 = vector.broadcast %114 : vector<1x128xf32> to vector<16x128xf32>
      %133 = arith.addf %131, %132 : vector<16x128xf32>
      %134 = math.tanh %133 : vector<16x128xf32>
      %135 = arith.index_cast %arg14 : i32 to index
      %c0_85 = arith.constant 0 : index
      %c0_86 = arith.constant 0 : index
      %c0_87 = arith.constant 0 : index
      %136 = vector.load %arg4[%135, %c0_85, %c0_86, %c0_87] : memref<8x3x128x128xbf16, #tpu.memory_space<vmem>>, vector<1x3x128x128xbf16>
      %137 = vector.shape_cast %136 : vector<1x3x128x128xbf16> to vector<3x128x128xbf16>
      %138 = arith.index_cast %arg14 : i32 to index
      %c0_88 = arith.constant 0 : index
      %c0_89 = arith.constant 0 : index
      %139 = vector.load %arg5[%138, %c0_88, %c0_89] : memref<8x1x128xf32, #tpu.memory_space<vmem>>, vector<1x1x128xf32>
      %140 = vector.shape_cast %139 : vector<1x1x128xf32> to vector<1x128xf32>
      %141 = arith.truncf %134 : vector<16x128xf32> to vector<16x128xbf16>
      %cst_90 = arith.constant 0.000000e+00 : bf16
      %142 = vector.broadcast %cst_90 : bf16 to vector<1x128xbf16>
      %143 = tpu.concatenate %142, %141, %142 in 0 : vector<1x128xbf16>, vector<16x128xbf16>, vector<1x128xbf16> -> vector<18x128xbf16>
      %144 = vector.extract_strided_slice %143 {offsets = [0, 0], sizes = [16, 128], strides = [1, 1]} : vector<18x128xbf16> to vector<16x128xbf16>
      %145 = vector.extract_strided_slice %137 {offsets = [0, 0, 0], sizes = [1, 128, 128], strides = [1, 1, 1]} : vector<3x128x128xbf16> to vector<1x128x128xbf16>
      %146 = vector.shape_cast %145 : vector<1x128x128xbf16> to vector<128x128xbf16>
      %cst_91 = arith.constant dense<0.000000e+00> : vector<16x128xf32>
      %147 = tpu.matmul %144, %146, %cst_91 {dimension_numbers = #tpu.dot_dimension_numbers<[1], [0], [0], [1], [0, 0, 1, 1], [], []>} : vector<16x128xbf16>, vector<128x128xbf16>, vector<16x128xf32> -> vector<16x128xf32>
      %148 = vector.extract_strided_slice %143 {offsets = [1, 0], sizes = [16, 128], strides = [1, 1]} : vector<18x128xbf16> to vector<16x128xbf16>
      %149 = vector.extract_strided_slice %137 {offsets = [1, 0, 0], sizes = [1, 128, 128], strides = [1, 1, 1]} : vector<3x128x128xbf16> to vector<1x128x128xbf16>
      %150 = vector.shape_cast %149 : vector<1x128x128xbf16> to vector<128x128xbf16>
      %cst_92 = arith.constant dense<0.000000e+00> : vector<16x128xf32>
      %151 = tpu.matmul %148, %150, %cst_92 {dimension_numbers = #tpu.dot_dimension_numbers<[1], [0], [0], [1], [0, 0, 1, 1], [], []>} : vector<16x128xbf16>, vector<128x128xbf16>, vector<16x128xf32> -> vector<16x128xf32>
      %152 = arith.addf %147, %151 : vector<16x128xf32>
      %153 = vector.extract_strided_slice %143 {offsets = [2, 0], sizes = [16, 128], strides = [1, 1]} : vector<18x128xbf16> to vector<16x128xbf16>
      %154 = vector.extract_strided_slice %137 {offsets = [2, 0, 0], sizes = [1, 128, 128], strides = [1, 1, 1]} : vector<3x128x128xbf16> to vector<1x128x128xbf16>
      %155 = vector.shape_cast %154 : vector<1x128x128xbf16> to vector<128x128xbf16>
      %cst_93 = arith.constant dense<0.000000e+00> : vector<16x128xf32>
      %156 = tpu.matmul %153, %155, %cst_93 {dimension_numbers = #tpu.dot_dimension_numbers<[1], [0], [0], [1], [0, 0, 1, 1], [], []>} : vector<16x128xbf16>, vector<128x128xbf16>, vector<16x128xf32> -> vector<16x128xf32>
      %157 = arith.addf %152, %156 : vector<16x128xf32>
      %158 = vector.broadcast %140 : vector<1x128xf32> to vector<16x128xf32>
      %159 = arith.addf %157, %158 : vector<16x128xf32>
      %160 = arith.addf %arg15, %159 : vector<16x128xf32>
      scf.yield %160 : vector<16x128xf32>
    }
    %c8_i32_2 = arith.constant 8 : i32
    %c0_3 = arith.constant 0 : index
    %c0_4 = arith.constant 0 : index
    %4 = vector.load %arg7[%c0_3, %c0_4] : memref<1x128xf32, #tpu.memory_space<vmem>>, vector<1x128xf32>
    %5 = arith.truncf %3 : vector<16x128xf32> to vector<16x128xbf16>
    %cst = arith.constant 0.000000e+00 : bf16
    %6 = vector.broadcast %cst : bf16 to vector<1x128xbf16>
    %7 = tpu.concatenate %6, %5, %6 in 0 : vector<1x128xbf16>, vector<16x128xbf16>, vector<1x128xbf16> -> vector<18x128xbf16>
    %8 = vector.extract_strided_slice %7 {offsets = [0, 0], sizes = [16, 128], strides = [1, 1]} : vector<18x128xbf16> to vector<16x128xbf16>
    %c0_5 = arith.constant 0 : index
    %c0_6 = arith.constant 0 : index
    %c0_7 = arith.constant 0 : index
    %9 = vector.load %arg6[%c0_5, %c0_6, %c0_7] : memref<3x128x128xbf16, #tpu.memory_space<vmem>>, vector<1x128x128xbf16>
    %10 = vector.shape_cast %9 : vector<1x128x128xbf16> to vector<128x128xbf16>
    %cst_8 = arith.constant dense<0.000000e+00> : vector<16x128xf32>
    %11 = tpu.matmul %8, %10, %cst_8 {dimension_numbers = #tpu.dot_dimension_numbers<[1], [0], [0], [1], [0, 0, 1, 1], [], []>} : vector<16x128xbf16>, vector<128x128xbf16>, vector<16x128xf32> -> vector<16x128xf32>
    %12 = vector.extract_strided_slice %7 {offsets = [1, 0], sizes = [16, 128], strides = [1, 1]} : vector<18x128xbf16> to vector<16x128xbf16>
    %c1 = arith.constant 1 : index
    %c0_9 = arith.constant 0 : index
    %c0_10 = arith.constant 0 : index
    %13 = vector.load %arg6[%c1, %c0_9, %c0_10] : memref<3x128x128xbf16, #tpu.memory_space<vmem>>, vector<1x128x128xbf16>
    %14 = vector.shape_cast %13 : vector<1x128x128xbf16> to vector<128x128xbf16>
    %cst_11 = arith.constant dense<0.000000e+00> : vector<16x128xf32>
    %15 = tpu.matmul %12, %14, %cst_11 {dimension_numbers = #tpu.dot_dimension_numbers<[1], [0], [0], [1], [0, 0, 1, 1], [], []>} : vector<16x128xbf16>, vector<128x128xbf16>, vector<16x128xf32> -> vector<16x128xf32>
    %16 = arith.addf %11, %15 : vector<16x128xf32>
    %17 = vector.extract_strided_slice %7 {offsets = [2, 0], sizes = [16, 128], strides = [1, 1]} : vector<18x128xbf16> to vector<16x128xbf16>
    %c2 = arith.constant 2 : index
    %c0_12 = arith.constant 0 : index
    %c0_13 = arith.constant 0 : index
    %18 = vector.load %arg6[%c2, %c0_12, %c0_13] : memref<3x128x128xbf16, #tpu.memory_space<vmem>>, vector<1x128x128xbf16>
    %19 = vector.shape_cast %18 : vector<1x128x128xbf16> to vector<128x128xbf16>
    %cst_14 = arith.constant dense<0.000000e+00> : vector<16x128xf32>
    %20 = tpu.matmul %17, %19, %cst_14 {dimension_numbers = #tpu.dot_dimension_numbers<[1], [0], [0], [1], [0, 0, 1, 1], [], []>} : vector<16x128xbf16>, vector<128x128xbf16>, vector<16x128xf32> -> vector<16x128xf32>
    %21 = arith.addf %16, %20 : vector<16x128xf32>
    %22 = vector.broadcast %4 : vector<1x128xf32> to vector<16x128xf32>
    %23 = arith.addf %21, %22 : vector<16x128xf32>
    %24 = arith.addf %23, %1 : vector<16x128xf32>
    %c0_15 = arith.constant 0 : index
    %c0_16 = arith.constant 0 : index
    %25 = vector.load %arg9[%c0_15, %c0_16] : memref<1x128xf32, #tpu.memory_space<vmem>>, vector<1x128xf32>
    %26 = arith.truncf %24 : vector<16x128xf32> to vector<16x128xbf16>
    %cst_17 = arith.constant 0.000000e+00 : bf16
    %27 = vector.broadcast %cst_17 : bf16 to vector<1x128xbf16>
    %28 = tpu.concatenate %27, %26, %27 in 0 : vector<1x128xbf16>, vector<16x128xbf16>, vector<1x128xbf16> -> vector<18x128xbf16>
    %29 = vector.extract_strided_slice %28 {offsets = [0, 0], sizes = [16, 128], strides = [1, 1]} : vector<18x128xbf16> to vector<16x128xbf16>
    %c0_18 = arith.constant 0 : index
    %c0_19 = arith.constant 0 : index
    %c0_20 = arith.constant 0 : index
    %30 = vector.load %arg8[%c0_18, %c0_19, %c0_20] : memref<3x128x128xbf16, #tpu.memory_space<vmem>>, vector<1x128x128xbf16>
    %31 = vector.shape_cast %30 : vector<1x128x128xbf16> to vector<128x128xbf16>
    %cst_21 = arith.constant dense<0.000000e+00> : vector<16x128xf32>
    %32 = tpu.matmul %29, %31, %cst_21 {dimension_numbers = #tpu.dot_dimension_numbers<[1], [0], [0], [1], [0, 0, 1, 1], [], []>} : vector<16x128xbf16>, vector<128x128xbf16>, vector<16x128xf32> -> vector<16x128xf32>
    %33 = vector.extract_strided_slice %28 {offsets = [1, 0], sizes = [16, 128], strides = [1, 1]} : vector<18x128xbf16> to vector<16x128xbf16>
    %c1_22 = arith.constant 1 : index
    %c0_23 = arith.constant 0 : index
    %c0_24 = arith.constant 0 : index
    %34 = vector.load %arg8[%c1_22, %c0_23, %c0_24] : memref<3x128x128xbf16, #tpu.memory_space<vmem>>, vector<1x128x128xbf16>
    %35 = vector.shape_cast %34 : vector<1x128x128xbf16> to vector<128x128xbf16>
    %cst_25 = arith.constant dense<0.000000e+00> : vector<16x128xf32>
    %36 = tpu.matmul %33, %35, %cst_25 {dimension_numbers = #tpu.dot_dimension_numbers<[1], [0], [0], [1], [0, 0, 1, 1], [], []>} : vector<16x128xbf16>, vector<128x128xbf16>, vector<16x128xf32> -> vector<16x128xf32>
    %37 = arith.addf %32, %36 : vector<16x128xf32>
    %38 = vector.extract_strided_slice %28 {offsets = [2, 0], sizes = [16, 128], strides = [1, 1]} : vector<18x128xbf16> to vector<16x128xbf16>
    %c2_26 = arith.constant 2 : index
    %c0_27 = arith.constant 0 : index
    %c0_28 = arith.constant 0 : index
    %39 = vector.load %arg8[%c2_26, %c0_27, %c0_28] : memref<3x128x128xbf16, #tpu.memory_space<vmem>>, vector<1x128x128xbf16>
    %40 = vector.shape_cast %39 : vector<1x128x128xbf16> to vector<128x128xbf16>
    %cst_29 = arith.constant dense<0.000000e+00> : vector<16x128xf32>
    %41 = tpu.matmul %38, %40, %cst_29 {dimension_numbers = #tpu.dot_dimension_numbers<[1], [0], [0], [1], [0, 0, 1, 1], [], []>} : vector<16x128xbf16>, vector<128x128xbf16>, vector<16x128xf32> -> vector<16x128xf32>
    %42 = arith.addf %37, %41 : vector<16x128xf32>
    %43 = vector.broadcast %25 : vector<1x128xf32> to vector<16x128xf32>
    %44 = arith.addf %42, %43 : vector<16x128xf32>
    %cst_30 = arith.constant 0.000000e+00 : f32
    %45 = vector.broadcast %cst_30 : f32 to vector<2x128xf32>
    %46 = tpu.concatenate %45, %44, %45 in 0 : vector<2x128xf32>, vector<16x128xf32>, vector<2x128xf32> -> vector<20x128xf32>
    %47 = vector.extract_strided_slice %44 {offsets = [1, 0], sizes = [15, 128], strides = [1, 1]} : vector<16x128xf32> to vector<15x128xf32>
    %cst_31 = arith.constant 0.000000e+00 : f32
    %48 = vector.broadcast %cst_31 : f32 to vector<1x128xf32>
    %49 = tpu.concatenate %47, %48 in 0 : vector<15x128xf32>, vector<1x128xf32> -> vector<16x128xf32>
    %50 = tpu.concatenate %45, %49, %45 in 0 : vector<2x128xf32>, vector<16x128xf32>, vector<2x128xf32> -> vector<20x128xf32>
    %cst_32 = arith.constant 0.000000e+00 : f32
    %51 = vector.broadcast %cst_32 : f32 to vector<16x128xf32>
    %52 = vector.extract_strided_slice %46 {offsets = [0, 0], sizes = [16, 128], strides = [1, 1]} : vector<20x128xf32> to vector<16x128xf32>
    %c0_33 = arith.constant 0 : index
    %c0_34 = arith.constant 0 : index
    %c0_35 = arith.constant 0 : index
    %53 = vector.load %arg10[%c0_33, %c0_34, %c0_35] : memref<5x128x128xf32, #tpu.memory_space<vmem>>, vector<1x128x128xf32>
    %54 = vector.shape_cast %53 : vector<1x128x128xf32> to vector<128x128xf32>
    %cst_36 = arith.constant dense<0.000000e+00> : vector<16x128xf32>
    %55 = tpu.matmul %52, %54, %cst_36 {dimension_numbers = #tpu.dot_dimension_numbers<[1], [0], [0], [1], [0, 0, 1, 1], [], []>} : vector<16x128xf32>, vector<128x128xf32>, vector<16x128xf32> -> vector<16x128xf32>
    %56 = arith.addf %51, %55 : vector<16x128xf32>
    %57 = vector.extract_strided_slice %50 {offsets = [0, 0], sizes = [16, 128], strides = [1, 1]} : vector<20x128xf32> to vector<16x128xf32>
    %c0_37 = arith.constant 0 : index
    %c0_38 = arith.constant 0 : index
    %c0_39 = arith.constant 0 : index
    %58 = vector.load %arg11[%c0_37, %c0_38, %c0_39] : memref<5x128x128xf32, #tpu.memory_space<vmem>>, vector<1x128x128xf32>
    %59 = vector.shape_cast %58 : vector<1x128x128xf32> to vector<128x128xf32>
    %cst_40 = arith.constant dense<0.000000e+00> : vector<16x128xf32>
    %60 = tpu.matmul %57, %59, %cst_40 {dimension_numbers = #tpu.dot_dimension_numbers<[1], [0], [0], [1], [0, 0, 1, 1], [], []>} : vector<16x128xf32>, vector<128x128xf32>, vector<16x128xf32> -> vector<16x128xf32>
    %61 = arith.addf %56, %60 : vector<16x128xf32>
    %62 = vector.extract_strided_slice %46 {offsets = [1, 0], sizes = [16, 128], strides = [1, 1]} : vector<20x128xf32> to vector<16x128xf32>
    %c1_41 = arith.constant 1 : index
    %c0_42 = arith.constant 0 : index
    %c0_43 = arith.constant 0 : index
    %63 = vector.load %arg10[%c1_41, %c0_42, %c0_43] : memref<5x128x128xf32, #tpu.memory_space<vmem>>, vector<1x128x128xf32>
    %64 = vector.shape_cast %63 : vector<1x128x128xf32> to vector<128x128xf32>
    %cst_44 = arith.constant dense<0.000000e+00> : vector<16x128xf32>
    %65 = tpu.matmul %62, %64, %cst_44 {dimension_numbers = #tpu.dot_dimension_numbers<[1], [0], [0], [1], [0, 0, 1, 1], [], []>} : vector<16x128xf32>, vector<128x128xf32>, vector<16x128xf32> -> vector<16x128xf32>
    %66 = arith.addf %61, %65 : vector<16x128xf32>
    %67 = vector.extract_strided_slice %50 {offsets = [1, 0], sizes = [16, 128], strides = [1, 1]} : vector<20x128xf32> to vector<16x128xf32>
    %c1_45 = arith.constant 1 : index
    %c0_46 = arith.constant 0 : index
    %c0_47 = arith.constant 0 : index
    %68 = vector.load %arg11[%c1_45, %c0_46, %c0_47] : memref<5x128x128xf32, #tpu.memory_space<vmem>>, vector<1x128x128xf32>
    %69 = vector.shape_cast %68 : vector<1x128x128xf32> to vector<128x128xf32>
    %cst_48 = arith.constant dense<0.000000e+00> : vector<16x128xf32>
    %70 = tpu.matmul %67, %69, %cst_48 {dimension_numbers = #tpu.dot_dimension_numbers<[1], [0], [0], [1], [0, 0, 1, 1], [], []>} : vector<16x128xf32>, vector<128x128xf32>, vector<16x128xf32> -> vector<16x128xf32>
    %71 = arith.addf %66, %70 : vector<16x128xf32>
    %72 = vector.extract_strided_slice %46 {offsets = [2, 0], sizes = [16, 128], strides = [1, 1]} : vector<20x128xf32> to vector<16x128xf32>
    %c2_49 = arith.constant 2 : index
    %c0_50 = arith.constant 0 : index
    %c0_51 = arith.constant 0 : index
    %73 = vector.load %arg10[%c2_49, %c0_50, %c0_51] : memref<5x128x128xf32, #tpu.memory_space<vmem>>, vector<1x128x128xf32>
    %74 = vector.shape_cast %73 : vector<1x128x128xf32> to vector<128x128xf32>
    %cst_52 = arith.constant dense<0.000000e+00> : vector<16x128xf32>
    %75 = tpu.matmul %72, %74, %cst_52 {dimension_numbers = #tpu.dot_dimension_numbers<[1], [0], [0], [1], [0, 0, 1, 1], [], []>} : vector<16x128xf32>, vector<128x128xf32>, vector<16x128xf32> -> vector<16x128xf32>
    %76 = arith.addf %71, %75 : vector<16x128xf32>
    %77 = vector.extract_strided_slice %50 {offsets = [2, 0], sizes = [16, 128], strides = [1, 1]} : vector<20x128xf32> to vector<16x128xf32>
    %c2_53 = arith.constant 2 : index
    %c0_54 = arith.constant 0 : index
    %c0_55 = arith.constant 0 : index
    %78 = vector.load %arg11[%c2_53, %c0_54, %c0_55] : memref<5x128x128xf32, #tpu.memory_space<vmem>>, vector<1x128x128xf32>
    %79 = vector.shape_cast %78 : vector<1x128x128xf32> to vector<128x128xf32>
    %cst_56 = arith.constant dense<0.000000e+00> : vector<16x128xf32>
    %80 = tpu.matmul %77, %79, %cst_56 {dimension_numbers = #tpu.dot_dimension_numbers<[1], [0], [0], [1], [0, 0, 1, 1], [], []>} : vector<16x128xf32>, vector<128x128xf32>, vector<16x128xf32> -> vector<16x128xf32>
    %81 = arith.addf %76, %80 : vector<16x128xf32>
    %82 = vector.extract_strided_slice %46 {offsets = [3, 0], sizes = [16, 128], strides = [1, 1]} : vector<20x128xf32> to vector<16x128xf32>
    %c3 = arith.constant 3 : index
    %c0_57 = arith.constant 0 : index
    %c0_58 = arith.constant 0 : index
    %83 = vector.load %arg10[%c3, %c0_57, %c0_58] : memref<5x128x128xf32, #tpu.memory_space<vmem>>, vector<1x128x128xf32>
    %84 = vector.shape_cast %83 : vector<1x128x128xf32> to vector<128x128xf32>
    %cst_59 = arith.constant dense<0.000000e+00> : vector<16x128xf32>
    %85 = tpu.matmul %82, %84, %cst_59 {dimension_numbers = #tpu.dot_dimension_numbers<[1], [0], [0], [1], [0, 0, 1, 1], [], []>} : vector<16x128xf32>, vector<128x128xf32>, vector<16x128xf32> -> vector<16x128xf32>
    %86 = arith.addf %81, %85 : vector<16x128xf32>
    %87 = vector.extract_strided_slice %50 {offsets = [3, 0], sizes = [16, 128], strides = [1, 1]} : vector<20x128xf32> to vector<16x128xf32>
    %c3_60 = arith.constant 3 : index
    %c0_61 = arith.constant 0 : index
    %c0_62 = arith.constant 0 : index
    %88 = vector.load %arg11[%c3_60, %c0_61, %c0_62] : memref<5x128x128xf32, #tpu.memory_space<vmem>>, vector<1x128x128xf32>
    %89 = vector.shape_cast %88 : vector<1x128x128xf32> to vector<128x128xf32>
    %cst_63 = arith.constant dense<0.000000e+00> : vector<16x128xf32>
    %90 = tpu.matmul %87, %89, %cst_63 {dimension_numbers = #tpu.dot_dimension_numbers<[1], [0], [0], [1], [0, 0, 1, 1], [], []>} : vector<16x128xf32>, vector<128x128xf32>, vector<16x128xf32> -> vector<16x128xf32>
    %91 = arith.addf %86, %90 : vector<16x128xf32>
    %92 = vector.extract_strided_slice %46 {offsets = [4, 0], sizes = [16, 128], strides = [1, 1]} : vector<20x128xf32> to vector<16x128xf32>
    %c4 = arith.constant 4 : index
    %c0_64 = arith.constant 0 : index
    %c0_65 = arith.constant 0 : index
    %93 = vector.load %arg10[%c4, %c0_64, %c0_65] : memref<5x128x128xf32, #tpu.memory_space<vmem>>, vector<1x128x128xf32>
    %94 = vector.shape_cast %93 : vector<1x128x128xf32> to vector<128x128xf32>
    %cst_66 = arith.constant dense<0.000000e+00> : vector<16x128xf32>
    %95 = tpu.matmul %92, %94, %cst_66 {dimension_numbers = #tpu.dot_dimension_numbers<[1], [0], [0], [1], [0, 0, 1, 1], [], []>} : vector<16x128xf32>, vector<128x128xf32>, vector<16x128xf32> -> vector<16x128xf32>
    %96 = arith.addf %91, %95 : vector<16x128xf32>
    %97 = vector.extract_strided_slice %50 {offsets = [4, 0], sizes = [16, 128], strides = [1, 1]} : vector<20x128xf32> to vector<16x128xf32>
    %c4_67 = arith.constant 4 : index
    %c0_68 = arith.constant 0 : index
    %c0_69 = arith.constant 0 : index
    %98 = vector.load %arg11[%c4_67, %c0_68, %c0_69] : memref<5x128x128xf32, #tpu.memory_space<vmem>>, vector<1x128x128xf32>
    %99 = vector.shape_cast %98 : vector<1x128x128xf32> to vector<128x128xf32>
    %cst_70 = arith.constant dense<0.000000e+00> : vector<16x128xf32>
    %100 = tpu.matmul %97, %99, %cst_70 {dimension_numbers = #tpu.dot_dimension_numbers<[1], [0], [0], [1], [0, 0, 1, 1], [], []>} : vector<16x128xf32>, vector<128x128xf32>, vector<16x128xf32> -> vector<16x128xf32>
    %101 = arith.addf %96, %100 : vector<16x128xf32>
    %102 = tpu.transpose %101, [1, 0] : vector<16x128xf32> -> vector<128x16xf32>
    %103 = vector.extract_strided_slice %102 {offsets = [0, 0], sizes = [2, 16], strides = [1, 1]} : vector<128x16xf32> to vector<2x16xf32>
    %c0_71 = arith.constant 0 : index
    %c0_72 = arith.constant 0 : index
    %104 = vector.load %arg12[%c0_71, %c0_72] : memref<2x16xf32, #tpu.memory_space<vmem>>, vector<2x16xf32>
    %105 = arith.addf %103, %104 : vector<2x16xf32>
    %c0_73 = arith.constant 0 : index
    %c0_74 = arith.constant 0 : index
    %c0_75 = arith.constant 0 : index
    %106 = vector.load %arg13[%c0_73, %c0_74, %c0_75] : memref<1x2x16xf32, #tpu.memory_space<vmem>>, vector<1x2x16xf32>
    %107 = vector.shape_cast %106 : vector<1x2x16xf32> to vector<2x16xf32>
    %108 = vector.shape_cast %105 : vector<2x16xf32> to vector<1x2x16xf32>
    tpu.vector_store %arg13[%c0_73, %c0_74, %c0_75], %108 {strides = array<i32>} : memref<1x2x16xf32, #tpu.memory_space<vmem>>, vector<1x2x16xf32>,
    return
  }
  func.func @transform_0(%arg0: i32) -> (i32, i32, i32) {
    %c0_i32 = arith.constant 0 : i32
    %c0_i32_0 = arith.constant 0 : i32
    %c0_i32_1 = arith.constant 0 : i32
    return %arg0, %c0_i32, %c0_i32_0 : i32, i32, i32
  }
  func.func @transform_1(%arg0: i32) -> (i32, i32, i32, i32) {
    %c0_i32 = arith.constant 0 : i32
    %c0_i32_0 = arith.constant 0 : i32
    %c0_i32_1 = arith.constant 0 : i32
    %c0_i32_2 = arith.constant 0 : i32
    %c0_i32_3 = arith.constant 0 : i32
    return %c0_i32, %c0_i32_0, %c0_i32_1, %c0_i32_2 : i32, i32, i32, i32
  }
  func.func @transform_2(%arg0: i32) -> (i32, i32, i32) {
    %c0_i32 = arith.constant 0 : i32
    %c0_i32_0 = arith.constant 0 : i32
    %c0_i32_1 = arith.constant 0 : i32
    %c0_i32_2 = arith.constant 0 : i32
    return %c0_i32, %c0_i32_0, %c0_i32_1 : i32, i32, i32
  }
  func.func @transform_3(%arg0: i32) -> (i32, i32, i32, i32) {
    %c0_i32 = arith.constant 0 : i32
    %c0_i32_0 = arith.constant 0 : i32
    %c0_i32_1 = arith.constant 0 : i32
    %c0_i32_2 = arith.constant 0 : i32
    %c0_i32_3 = arith.constant 0 : i32
    return %c0_i32, %c0_i32_0, %c0_i32_1, %c0_i32_2 : i32, i32, i32, i32
  }
  func.func @transform_4(%arg0: i32) -> (i32, i32, i32) {
    %c0_i32 = arith.constant 0 : i32
    %c0_i32_0 = arith.constant 0 : i32
    %c0_i32_1 = arith.constant 0 : i32
    %c0_i32_2 = arith.constant 0 : i32
    return %c0_i32, %c0_i32_0, %c0_i32_1 : i32, i32, i32
  }
  func.func @transform_5(%arg0: i32) -> (i32, i32, i32) {
    %c0_i32 = arith.constant 0 : i32
    %c0_i32_0 = arith.constant 0 : i32
    %c0_i32_1 = arith.constant 0 : i32
    %c0_i32_2 = arith.constant 0 : i32
    return %c0_i32, %c0_i32_0, %c0_i32_1 : i32, i32, i32
  }
  func.func @transform_6(%arg0: i32) -> (i32, i32) {
    %c0_i32 = arith.constant 0 : i32
    %c0_i32_0 = arith.constant 0 : i32
    %c0_i32_1 = arith.constant 0 : i32
    return %c0_i32, %c0_i32_0 : i32, i32
  }
  func.func @transform_7(%arg0: i32) -> (i32, i32, i32) {
    %c0_i32 = arith.constant 0 : i32
    %c0_i32_0 = arith.constant 0 : i32
    %c0_i32_1 = arith.constant 0 : i32
    %c0_i32_2 = arith.constant 0 : i32
    return %c0_i32, %c0_i32_0, %c0_i32_1 : i32, i32, i32
  }
  func.func @transform_8(%arg0: i32) -> (i32, i32) {
    %c0_i32 = arith.constant 0 : i32
    %c0_i32_0 = arith.constant 0 : i32
    %c0_i32_1 = arith.constant 0 : i32
    return %c0_i32, %c0_i32_0 : i32, i32
  }
  func.func @transform_9(%arg0: i32) -> (i32, i32, i32) {
    %c0_i32 = arith.constant 0 : i32
    %c0_i32_0 = arith.constant 0 : i32
    %c0_i32_1 = arith.constant 0 : i32
    %c0_i32_2 = arith.constant 0 : i32
    return %c0_i32, %c0_i32_0, %c0_i32_1 : i32, i32, i32
  }
  func.func @transform_10(%arg0: i32) -> (i32, i32, i32) {
    %c0_i32 = arith.constant 0 : i32
    %c0_i32_0 = arith.constant 0 : i32
    %c0_i32_1 = arith.constant 0 : i32
    %c0_i32_2 = arith.constant 0 : i32
    return %c0_i32, %c0_i32_0, %c0_i32_1 : i32, i32, i32
  }
  func.func @transform_11(%arg0: i32) -> (i32, i32) {
    %c0_i32 = arith.constant 0 : i32
    %c0_i32_0 = arith.constant 0 : i32
    %c0_i32_1 = arith.constant 0 : i32
    return %c0_i32, %c0_i32_0 : i32, i32
  }
  func.func @transform_12(%arg0: i32) -> (i32, i32, i32) {
    %c0_i32 = arith.constant 0 : i32
    %c0_i32_0 = arith.constant 0 : i32
    %c0_i32_1 = arith.constant 0 : i32
    return %arg0, %c0_i32, %c0_i32_0 : i32, i32, i32
  }
}

</mosaic_0001>

<bundles_post_ra>
// kernel: tpu_custom_call.1
= control target key start
LH: loop header
LB: loop body
LE: loop exit
PB: predicated region body
PF: predicated region fallthrough
CT: control target
= control target key end

     0   :  { %s5993_s0 = inlined_call_operand.hbm [shape: f32[2,16,128], index: 0, kind: input, shape index: {}]   ;;  %s5994_s1 = inlined_call_operand.hbm [shape: bf16[8,3,128,128], index: 1, kind: input, shape index: {}]   ;;  %s5995_s2 = inlined_call_operand.hbm [shape: f32[8,1,128], index: 2, kind: input, shape index: {}]   ;;  %s5996_s3 = inlined_call_operand.hbm [shape: bf16[8,3,128,128], index: 3, kind: input, shape index: {}]   ;;  %s5997_s4 = inlined_call_operand.vmem [shape: f32[8,1,128], index: 4, kind: input, shape index: {}]   ;;  %s5998_s5 = inlined_call_operand.hbm [shape: bf16[3,128,128], index: 5, kind: input, shape index: {}]   ;;  %s5999_s6 = inlined_call_operand.vmem [shape: f32[1,128], index: 6, kind: input, shape index: {}]   ;;  %s6000_s7 = inlined_call_operand.hbm [shape: bf16[3,128,128], index: 7, kind: input, shape index: {}]   ;;  %s6001_s8 = inlined_call_operand.vmem [shape: f32[1,128], index: 8, kind: input, shape index: {}]   ;;  %s6002_s9 = inlined_call_operand.hbm [shape: f32[5,128,128], index: 9, kind: input, shape index: {}]   ;;  %s6003_s10 = inlined_call_operand.hbm [shape: f32[5,128,128], index: 10, kind: input, shape index: {}]   ;;  %s6004_s11 = inlined_call_operand.vmem [shape: f32[2,16], index: 11, kind: input, shape index: {}]   ;;  %s6005_s12 = inlined_call_operand.hbm [shape: f32[2,2,16], index: 12, kind: output, shape index: {}]  }
   0x1   :  { %6014 = sst [smem:[#allocation23_spill]] %s5999_s6 }
   0x2   :  { %6015 = sst [smem:[#allocation24_spill]] %s6001_s8 }
   0x3   :  { %6016 = sst [smem:[#allocation25_spill]] %s6004_s11 }
   0x4   :  { %6017 = sst [smem:[#allocation26_spill]] %s6005_s12 }
   0x5   :  { %17 = vsyncpa [#allocation3], 0 }
   0x6   :  { %19 = vsyncpa [#allocation3 + $0x1], 0 }
   0x7   :  { %20 = vsyncpa [#allocation6], 0 }
   0x8   :  { %21 = vsyncpa [#allocation9], 0 }
   0x9   :  { %22 = vsyncpa [#allocation12], 0 }
   0xa   :  { %23 = vsyncpa [#allocation15], 0 }
   0xb   :  { %24 = vsyncpa [#allocation4], 0 }
   0xc   :  { %26 = vsyncpa [#allocation4 + $0x1], 0  ;;  %s5248_s21 = smov 0   ;;  %s5250_s22 = smov 0  }
   0xd   :  { %s5252_s23 = smov 0   ;;  %s5254_s24 = smov 0  }
   0xe LB: > { %s5164_s25 = smov [#allocation5]   ;;  %s5269_s27 = sadd.s32 4294967295, %s5150_s24   ;;  %s5150_s24 = sphi %s5254_s24, %s6057_s24   ;;  %s5146_s23 = sphi %s5252_s23, %s6056_s23   ;;  %s5142_s22 = sphi %s5250_s22, %s6055_s22   ;;  %s5138_s21 = sphi %s5248_s21, %s6054_s21  }
   0xf   : > { %s332_s26 = sshll.u32 %s5164_s25, 4  ;;  %p3228_p0 = scmp.ge.s32.totalorder %s5150_s24, 1  ;;  %s5274_s26 = int_to_ptr.vmem [resolvable:$true] %s332_s26 }
  0x10   : > { %p6007_p1 = scmp.eq.s32.totalorder %s5269_s27, 0  ;;  %p320_p2 = scmp.lt.s32.totalorder %s5150_s24, 3 }
  0x11   : > { %s5165_s29 = smov [#allocation8]   ;;  %s5166_s14 = smov [#allocation11]  }
  0x12   : > { %p5276_p3 = pnand %p3228_p0, %p320_p2  ;;  %s358_s30 = sshll.u32 %s5165_s29, 4  ;;  %s5289_s30 = int_to_ptr.vmem [resolvable:$true] %s358_s30 }
  0x13   : > { %s390_s15 = sshll.u32 %s5166_s14, 4  ;;  %s4830_s18 = scalar_lea.hbm %s5994_s1, 24576  ;;  %s5291_s15 = int_to_ptr.vmem [resolvable:$true] %s390_s15 }
  0x14   : > { %s6018_s28 = scalar_select %p5276_p3, 1, 0 }
  0x15   : > { %p4611_p5 = pneg %p5276_p3  ;;  %p4831_p7 = scmp.ne.s32.totalorder %s5994_s1, %s4830_s18 }
  0x16   : > { %p4837_p11 = scmp.lt.u32.totalorder %s4830_s18, %s5994_s1 }
  0x17   : > { %p5285_p6 = pnand %p4611_p5, %p6007_p1 }
  0x19   : > { %p5301_p8 = pneg %p5285_p6 }
  0x1b   : > { %p4833_p9 = pnand %p5301_p8, %p4831_p7 }
  0x1d   : > { %p4834_p10 = pneg %p4833_p9 }
  0x1f   : > { %p4839_p12 = pnand %p4837_p11, %p4834_p10 }
  0x21   : > { %4842 = shalt.err (!%p4839_p12)
}
  0x22   : > { %s4843_s16 = scalar_lea.vmem %s5274_s26, 24576  ;;  %p4851_p5 = scmp.lt.s32.totalorder %s5274_s26, %s5274_s26 }
  0x23   : > { %p4844_p13 = scmp.ne.s32.totalorder %s5274_s26, %s4843_s16  ;;  %p4852_p4 = scmp.lt.s32.totalorder %s4843_s16, %s4843_s16 }
  0x25   : > { %p4846_p0 = pnand %p4844_p13, %p5301_p8  ;;  %p4853_p7 = por %p4852_p4, %p4851_p5 }
  0x27   : > { %p4847_p2 = pneg %p4846_p0 }
  0x29   : > { %p4854_p9 = pnand %p4853_p7, %p4847_p2 }
  0x2b   : > { %4857 = shalt.err (!%p4854_p9)
}
  0x2c   : > { %s6009_s17 = smov 64   ;;  %s6010_s18 = smov 4  }
  0x2d   : > { %4614 = dma.hbm_to_vmem [thread:$0]  (!%p5285_p6), %s5994_s1, 24576, %s5274_s26, [#allocation6], %s6009_s17, %s6009_s17, %s6010_s18  }
  0x2e   : > { %s4858_s16 = scalar_lea.hbm %s5996_s3, 24576 }
  0x2f   : > { %p4859_p4 = scmp.ne.s32.totalorder %s5996_s3, %s4858_s16  ;;  %p4865_p12 = scmp.lt.u32.totalorder %s4858_s16, %s5996_s3 }
  0x31   : > { %p4861_p10 = pnand %p4859_p4, %p5301_p8 }
  0x33   : > { %p4862_p11 = pneg %p4861_p10 }
  0x35   : > { %p4867_p13 = pnand %p4865_p12, %p4862_p11 }
  0x37   : > { %4870 = shalt.err (!%p4867_p13)
}
  0x38   : > { %s4871_s26 = scalar_lea.vmem %s5289_s30, 24576  ;;  %p4879_p7 = scmp.lt.s32.totalorder %s5289_s30, %s5289_s30 }
  0x39   : > { %p4872_p0 = scmp.ne.s32.totalorder %s5289_s30, %s4871_s26  ;;  %p4880_p9 = scmp.lt.s32.totalorder %s4871_s26, %s4871_s26 }
  0x3b   : > { %p4874_p2 = pnand %p4872_p0, %p5301_p8  ;;  %p4881_p4 = por %p4880_p9, %p4879_p7 }
  0x3d   : > { %p4875_p5 = pneg %p4874_p2 }
  0x3f   : > { %p4882_p10 = pnand %p4881_p4, %p4875_p5 }
  0x41   : > { %4885 = shalt.err (!%p4882_p10)
}
  0x42   : > { %4620 = dma.hbm_to_vmem [thread:$0]  (!%p5285_p6), %s5996_s3, 24576, %s5289_s30, [#allocation9], %s6009_s17, %s6009_s17, %s6010_s18  }
  0x43   : > { %s4886_s19 = scalar_lea.hbm %s6000_s7, 3072 }
  0x44   : > { %p4887_p11 = scmp.ne.s32.totalorder %s6000_s7, %s4886_s19  ;;  %p4893_p0 = scmp.lt.u32.totalorder %s4886_s19, %s6000_s7 }
  0x46   : > { %p4889_p12 = pnand %p4887_p11, %p5301_p8 }
  0x48   : > { %p4890_p13 = pneg %p4889_p12 }
  0x4a   : > { %p4895_p2 = pnand %p4893_p0, %p4890_p13 }
  0x4c   : > { %4898 = shalt.err (!%p4895_p2)
}
  0x4d   : > { %s4899_s30 = scalar_lea.vmem %s5291_s15, 3072  ;;  %p4907_p4 = scmp.lt.s32.totalorder %s5291_s15, %s5291_s15 }
  0x4e   : > { %p4900_p5 = scmp.ne.s32.totalorder %s5291_s15, %s4899_s30  ;;  %p4908_p10 = scmp.lt.s32.totalorder %s4899_s30, %s4899_s30 }
  0x50   : > { %p4902_p7 = pnand %p4900_p5, %p5301_p8  ;;  %p4909_p11 = por %p4908_p10, %p4907_p4 }
  0x52   : > { %p4903_p9 = pneg %p4902_p7 }
  0x54   : > { %p4910_p12 = pnand %p4909_p11, %p4903_p9 }
  0x56   : > { %4913 = shalt.err (!%p4910_p12)
}
  0x57   : > { %4626 = dma.hbm_to_vmem [thread:$0]  (!%p5285_p6), %s6000_s7, 3072, %s5291_s15, [#allocation12], %s6009_s17, %s6009_s17, %s6010_s18  }
  0x58   : > { %s5169_s8 = smov [#allocation7]   ;;  %s4914_s20 = scalar_lea.hbm %s5995_s2, 128 }
  0x59   : > { %s345_s11 = sshll.u32 %s5169_s8, 4  ;;  %p4915_p13 = scmp.ne.s32.totalorder %s5995_s2, %s4914_s20  ;;  %s346_s11 = int_to_ptr.vmem [resolvable:$true] %s345_s11 }
  0x5a   : > { %p4921_p5 = scmp.lt.u32.totalorder %s4914_s20, %s5995_s2 }
  0x5b   : > { %p4917_p0 = pnand %p4915_p13, %p5301_p8 }
  0x5d   : > { %p4918_p2 = pneg %p4917_p0 }
  0x5f   : > { %p4923_p7 = pnand %p4921_p5, %p4918_p2 }
  0x61   : > { %4926 = shalt.err (!%p4923_p7)
}
  0x62   : > { %s4927_s15 = scalar_lea.vmem %s346_s11, 128  ;;  %p4935_p11 = scmp.lt.s32.totalorder %s346_s11, %s346_s11 }
  0x63   : > { %p4928_p9 = scmp.ne.s32.totalorder %s346_s11, %s4927_s15  ;;  %p4936_p12 = scmp.lt.s32.totalorder %s4927_s15, %s4927_s15 }
  0x65   : > { %p4930_p4 = pnand %p4928_p9, %p5301_p8  ;;  %p4937_p1 = por %p4936_p12, %p4935_p11 }
  0x67   : > { %p4931_p10 = pneg %p4930_p4 }
  0x69   : > { %p4938_p3 = pnand %p4937_p1, %p4931_p10 }
  0x6b   : > { %4941 = shalt.err (!%p4938_p3)
}
  0x6c   : > { %s5170_s26 = smov 16   ;;  %s5171_s6 = smov 1  }
  0x6d   : > { %4617 = dma.hbm_to_vmem [thread:$0]  (!%p5285_p6), %s5995_s2, 128, %s346_s11, [#allocation6], %s5170_s26, %s5170_s26, %s5171_s6  }
  0x6e   : > { %s5172_s19 = smov [#allocation10]   ;;  %s5173_s29 = smov [#allocation13]  }
  0x6f   : > { %s374_s20 = sshll.u32 %s5172_s19, 4  ;;  %s406_s14 = sshll.u32 %s5173_s29, 4  ;;  %s375_s20 = int_to_ptr.vmem [resolvable:$true] %s374_s20  ;;  %s5395_s14 = int_to_ptr.vmem [resolvable:$true] %s406_s14 }
  0x70   : > { %s4942_s15 = scalar_lea.hbm %s5998_s5, 3072 }
  0x71   : > { %p4943_p1 = scmp.ne.s32.totalorder %s5998_s5, %s4942_s15  ;;  %p4949_p0 = scmp.lt.u32.totalorder %s4942_s15, %s5998_s5 }
  0x73   : > { %p4945_p3 = pnand %p4943_p1, %p5301_p8 }
  0x75   : > { %p4946_p13 = pneg %p4945_p3 }
  0x77   : > { %p4951_p2 = pnand %p4949_p0, %p4946_p13 }
  0x79   : > { %4954 = shalt.err (!%p4951_p2)
}
  0x7a   : > { %s4955_s26 = scalar_lea.vmem %s375_s20, 3072  ;;  %p4963_p4 = scmp.lt.s32.totalorder %s375_s20, %s375_s20 }
  0x7b   : > { %p4956_p5 = scmp.ne.s32.totalorder %s375_s20, %s4955_s26  ;;  %p4964_p10 = scmp.lt.s32.totalorder %s4955_s26, %s4955_s26 }
  0x7d   : > { %p4958_p7 = pnand %p4956_p5, %p5301_p8  ;;  %p4965_p11 = por %p4964_p10, %p4963_p4 }
  0x7f   : > { %p4959_p9 = pneg %p4958_p7 }
  0x81   : > { %p4966_p12 = pnand %p4965_p11, %p4959_p9 }
  0x83   : > { %4969 = shalt.err (!%p4966_p12)
}
  0x84   : > { %s6021_s17 = smov 4   ;;  %s6022_s18 = smov 64  }
  0x85   : > { %4623 = dma.hbm_to_vmem [thread:$0]  (!%p5285_p6), %s5998_s5, 3072, %s375_s20, [#allocation9], %s6022_s18, %s6022_s18, %s6021_s17  }
  0x86   : > { %s4970_s16 = scalar_lea.hbm %s6002_s9, 10240 }
  0x87   : > { %p4971_p1 = scmp.ne.s32.totalorder %s6002_s9, %s4970_s16  ;;  %p4977_p0 = scmp.lt.u32.totalorder %s4970_s16, %s6002_s9 }
  0x89   : > { %p4973_p3 = pnand %p4971_p1, %p5301_p8 }
  0x8b   : > { %p4974_p13 = pneg %p4973_p3 }
  0x8d   : > { %p4979_p2 = pnand %p4977_p0, %p4974_p13 }
  0x8f   : > { %4982 = shalt.err (!%p4979_p2)
}
  0x90   : > { %s4983_s20 = scalar_lea.vmem %s5395_s14, 10240  ;;  %p4991_p4 = scmp.lt.s32.totalorder %s5395_s14, %s5395_s14 }
  0x91   : > { %p4984_p5 = scmp.ne.s32.totalorder %s5395_s14, %s4983_s20  ;;  %p4992_p10 = scmp.lt.s32.totalorder %s4983_s20, %s4983_s20 }
  0x93   : > { %p4986_p7 = pnand %p4984_p5, %p5301_p8  ;;  %p4993_p11 = por %p4992_p10, %p4991_p4 }
  0x95   : > { %p4987_p9 = pneg %p4986_p7 }
  0x97   : > { %p4994_p12 = pnand %p4993_p11, %p4987_p9 }
  0x99   : > { %4997 = shalt.err (!%p4994_p12)
}
  0x9a   : > { %s6011_s26 = smov 128   ;;  %s6012_s17 = smov 8  }
  0x9b   : > { %4629 = dma.hbm_to_vmem [thread:$0]  (!%p5285_p6), %s6002_s9, 10240, %s5395_s14, [#allocation12], %s6011_s26, %s6011_s26, %s6012_s17  }
  0x9c   : > { %s5176_s12 = smov [#allocation14]   ;;  %s4998_s30 = scalar_lea.hbm %s6003_s10, 10240 }
  0x9d   : > { %s419_s19 = sshll.u32 %s5176_s12, 4  ;;  %p4999_p1 = scmp.ne.s32.totalorder %s6003_s10, %s4998_s30  ;;  %s420_s19 = int_to_ptr.vmem [resolvable:$true] %s419_s19 }
  0x9e   : > { %p5005_p0 = scmp.lt.u32.totalorder %s4998_s30, %s6003_s10 }
  0x9f   : > { %p5001_p3 = pnand %p4999_p1, %p5301_p8 }
  0xa1   : > { %p5002_p13 = pneg %p5001_p3 }
  0xa3   : > { %p5007_p2 = pnand %p5005_p0, %p5002_p13 }
  0xa5   : > { %5010 = shalt.err (!%p5007_p2)
}
  0xa6   : > { %s5011_s14 = scalar_lea.vmem %s420_s19, 10240  ;;  %p5019_p4 = scmp.lt.s32.totalorder %s420_s19, %s420_s19 }
  0xa7   : > { %p5012_p5 = scmp.ne.s32.totalorder %s420_s19, %s5011_s14  ;;  %p5020_p10 = scmp.lt.s32.totalorder %s5011_s14, %s5011_s14 }
  0xa9   : > { %p5014_p7 = pnand %p5012_p5, %p5301_p8  ;;  %p5021_p11 = por %p5020_p10, %p5019_p4 }
  0xab   : > { %p5015_p9 = pneg %p5014_p7 }
  0xad   : > { %p5022_p12 = pnand %p5021_p11, %p5015_p9 }
  0xaf   : > { %5025 = shalt.err (!%p5022_p12)
}
  0xb0   : > { %4632 = dma.hbm_to_vmem [thread:$0]  (!%p5285_p6), %s6003_s10, 10240, %s420_s19, [#allocation15], %s6011_s26, %s6011_s26, %s6012_s17  }
  0xb1   : > { %s3227_s13 = sadd.s32 4294967294, %s5150_s24   ;;  %s5467_s25 = sadd.s32 1, %s5150_s24  }
  0xb2   : > { %s39_s12 = sadd.s32 1, %s5146_s23  ;;  %s36_s29 = ssub.s32 %s5150_s24, %s5467_s25 }
  0xb3   : > { %p46_p8 = scmp.ne.s32.totalorder %s5146_s23, %s5142_s22  ;;  %p37_p1 = scmp.eq.s32.totalorder %s36_s29, 0 }
  0xb4   : > { %p47_p3 = scmp.eq.s32.totalorder %s5150_s24, 0  ;;  %p52_p13 = scmp.ne.s32.totalorder %s5142_s22, %s5138_s21 }
  0xb5   : > { %p307_p0 = scmp.eq.s32.totalorder %s5269_s27, 1  ;;  %p6023_p5 = scmp.eq.s32.totalorder %s5269_s27, 0 }
  0xb6   : > { %s5479_s16 = scalar_select %p37_p1, %s5146_s23, %s39_s12  }
  0xb7   : > { %p48_p2 = por %p47_p3, %p46_p8  ;;  %p5483_p7 = por %p6023_p5, %p52_p13 }
  0xb8   : > { %p5487_p6 = por %p307_p0, %p46_p8  ;;  %p313_p9 = scmp.eq.s32.totalorder %s3227_s13, 1 }
  0xb9   : > { %p4648_p4 = scmp.lt.s32.totalorder %s5150_s24, 2  ;;  %s436_s15 = sand.u32 1, %s5146_s23  }
  0xba   : > { %s6025_s19 = scalar_select %p5487_p6, 1, 0 }
  0xbb   : > { %p5493_p10 = por %p313_p9, %p52_p13  ;;  %s3237_s11 = sshll.u32 %s436_s15, 4 }
  0xbc   : > { %s3360_s20 = sshll.u32 %s5150_s24, 8  ;;  %s440_s12 = scalar_lea.vmem [#allocation2], %s3237_s11 }
  0xbd   : > { %s6026_s8 = scalar_select %p5493_p10, 1, 0 }
  0xbe   : > { %s5501_s6 = scalar_lea.hbm %s5993_s0, %s3360_s20  ;;  %s447_s29 = sshll.u32 %s440_s12, 4  ;;  %s5507_s29 = int_to_ptr.vmem [resolvable:$true] %s447_s29 }
  0xbf   : > { %p5503_p11 = pnand %p4648_p4, %p48_p2  ;;  %s5509_s26 = scalar_lea.sflag [#allocation3], %s436_s15 }
  0xc0   : > { %s5026_s17 = scalar_lea.hbm %s5501_s6, 256  ;;  %s5031_s14 = scalar_lea.hbm %s5993_s0, 512 }
  0xc1   : > { %p5027_p12 = scmp.ne.s32.totalorder %s5501_s6, %s5026_s17  ;;  %p5028_p8 = pneg %p5503_p11 }
  0xc2   : > { %p5032_p13 = scmp.lt.u32.totalorder %s5501_s6, %s5993_s0  ;;  %p5033_p0 = scmp.lt.u32.totalorder %s5031_s14, %s5026_s17 }
  0xc3   : > { %p5029_p1 = pnand %p5028_p8, %p5027_p12  ;;  %p5035_p5 = scmp.lt.u32.totalorder %s5026_s17, %s5501_s6 }
  0xc4   : > { %p5034_p2 = por %p5033_p0, %p5032_p13 }
  0xc5   : > { %p5030_p3 = pneg %p5029_p1 }
  0xc6   : > { %p5036_p9 = por %p5035_p5, %p5034_p2 }
  0xc8   : > { %p5037_p4 = pnand %p5036_p9, %p5030_p3 }
  0xca   : > { %5040 = shalt.err (!%p5037_p4)
}
  0xcb   : > { %s5041_s15 = scalar_lea.vmem %s5507_s29, 256  ;;  %s5177_s11 = smov [#allocation2]  }
  0xcc   : > { %p5042_p12 = scmp.ne.s32.totalorder %s5507_s29, %s5041_s15  ;;  %s5046_s20 = sshll.u32 %s5177_s11, 4  ;;  %s5047_s20 = int_to_ptr.vmem [resolvable:$false] %s5046_s20 }
  0xcd   : > { %s5048_s18 = scalar_lea.vmem %s5047_s20, 512  ;;  %p5049_p6 = scmp.lt.s32.totalorder %s5507_s29, %s5047_s20 }
  0xce   : > { %p5044_p1 = pnand %p5042_p12, %p5028_p8  ;;  %p5050_p13 = scmp.lt.s32.totalorder %s5048_s18, %s5041_s15 }
  0xd0   : > { %p5045_p10 = pneg %p5044_p1  ;;  %p5051_p0 = por %p5050_p13, %p5049_p6 }
  0xd2   : > { %p5052_p2 = pnand %p5051_p0, %p5045_p10 }
  0xd4   : > { %5055 = shalt.err (!%p5052_p2)
}
  0xd5   : > { %s6028_s17 = smov 8   ;;  %s6029_s14 = smov 128  }
  0xd6   : > { %4636 = dma.hbm_to_vmem [thread:$0]  (!%p5503_p11), %s5501_s6, 256, %s5507_s29, %s5509_s26, %s6029_s14, %s6029_s14, %s6028_s17  }
  0xd7   : > { %p6030_p8 = scmp.ne.s32.totalorder %s6018_s28, 0 }
  0xd8   : > { %s5543_s12 = sand.u32 (!%p6030_p8), 1, %s5142_s22  }
  0xd9   : > { %459 = sbr.rel (%p6030_p8) target bundleno = 2005 (0x7d5), region = 68  ;;  %s3241_s15 = sshll.u32 (!%p6030_p8), %s5543_s12, 4 }
  0xda   : > { %s462_s11 = scalar_lea.sflag (!%p6030_p8), [#allocation3], %s5543_s12  ;;  %s465_s20 = scalar_lea.vmem (!%p6030_p8), [#allocation2], %s3241_s15 }
  0xe0   : > { %5113 = dma.done.wait (%p5483_p7), %s462_s11, 256  }
  0xe1   : > { %5115 = vsyncadd (%p5483_p7), %s462_s11, 4294967040  ;;  %p6031_p6 = scmp.eq.s32.totalorder %s5269_s27, 0 }
  0xe3   : > { %5117 = dma.done.wait (%p6031_p6), [#allocation6], 24704   ;;  %p6032_p10 = pmov %p6031_p6 }
  0xe4   : > { %p6033_p11 = pmov %p6031_p6 }
  0xe5   : > { %5119 = vsyncadd (%p6032_p10), [#allocation6], 4294942592 }
  0xe6   : > { %5121 = dma.done.wait (%p6033_p11), [#allocation9], 27648   ;;  %p6034_p3 = pmov %p6031_p6 }
  0xe8   : > { %5123 = vsyncadd (%p6034_p3), [#allocation9], 4294939648  ;;  %p6035_p5 = pmov %p6034_p3 }
  0xe9   : > { %p6036_p9 = pmov %p6034_p3 }
  0xea   : > { %5125 = dma.done.wait (%p6035_p5), [#allocation12], 13312  }
  0xeb   : > { %5127 = vsyncadd (%p6036_p9), [#allocation12], 4294953984  ;;  %p6037_p7 = pmov %p6034_p3 }
  0xec   : > { %p6038_p4 = pmov %p6034_p3 }
  0xed   : > { %5129 = dma.done.wait (%p6037_p7), [#allocation15], 10240  }
  0xee   : > { %5131 = vsyncadd (%p6038_p4), [#allocation15], 4294957056  ;;  %s3249_s28 = sshll.u32 %s5543_s12, 1  ;;  %v5568_v0 = vld [vmem:[%s465_s20] sm:$0xff]   ;;  %v5570_v1 = vld [vmem:[%s465_s20 + $0x8] sm:$0xff]   ;;  %s5580_s30 = smov 0  }
  0xef   : > { %s5572_s26 = scalar_lea.vmem [#allocation16], %s3249_s28  ;;  %v6039_v2 = vmov %v5570_v1  ;;  %v6040_v3 = vmov %v5568_v0 }
  0xf0 LB: >> { %v5178_v4 = vmov 0.0   ;;  %s3361_s6 = smul.u32 192, %s5162_s30  ;;  %vm5179_vm0 = vmmov 0   ;;  %v598_v5 = vpack.c.bf16 %v5154_v2, %v5158_v3  ;;  %vm608_vm1 = vcmask 1040384   ;;  %s596_s18 = scalar_lea.vmem [#allocation7], %s5162_s30  ;;  %s5162_s30 = sphi %s5580_s30, %s542_s30   ;;  %v5158_v3 = vphi %v6040_v3, %v6044_v3   ;;  %v5154_v2 = vphi %v6039_v2, %v6043_v2  }
  0xf1   : >> { %3651 = vmatprep.subr.bf16.mxu0 %v5178_v4  ;;  %3671 = vmatprep.subr.bf16.mxu1 %v5178_v4  ;;  %vm609_vm2 = vsmask.f32 256  ;;  %vm613_vm4 = vsmask.f32 7424  ;;  %vm807_vm5 = vcmask 1046528   ;;  %s963_s15 = scalar_lea.vmem %s5997_s4, %s5162_s30  ;;  %s542_s30 = sadd.s32 1, %s5162_s30  }
  0xf2   : >> { %3667 = vmatprep.mubr.msk.bf16.mxu0 %vm5179_vm0, %v5178_v4  ;;  %3687 = vmatprep.mubr.msk.bf16.mxu1 %vm5179_vm0, %v5178_v4  ;;  %s5602_s29 = scalar_lea.vmem [#allocation5], %s3361_s6  ;;  %v600_v10 = vshrl.u32 %v598_v5, 16  ;;  %v603_v12 = vshll.u32 %v598_v5, 16  ;;  %vm5618_vm3 = vmand %vm608_vm1, %vm609_vm2  ;;  %s5648_s13 = scalar_lea.vmem [#allocation8], %s3361_s6 }
  0xf3   : >> { %v4730_v6 = vld [vmem:[%s5602_s29 + $0x40] sm:$0xff]   ;;  %v4732_v8 = vld [vmem:[%s5602_s29 + $0x48] sm:$0xff]   ;;  %v4734_v11 = vld [vmem:[%s5602_s29 + $0x50] sm:$0xff]   ;;  %p539_p12 = scmp.ge.s32.totalorder %s542_s30, 8  }
  0xf4   : >> { %v4731_v7 = vld [vmem:[%s5602_s29] sm:$0xff]   ;;  %3652 = vmatpush3.bf16.msra.mxu0 %v4730_v6  ;;  %v4733_v9 = vld [vmem:[%s5602_s29 + $0x8] sm:$0xff]   ;;  %v4735_v13 = vld [vmem:[%s5602_s29 + $0x10] sm:$0xff]   ;;  %v602_v14 = vrot.slane %v600_v10, 7  ;;  %vm5181_vm6 = vmmov (%p539_p12), 0   ;;  %s6045_s28 = sld [smem:[#allocation23_spill]] (%p539_p12) }
  0xf5   : >> { %3672 = vmatpush3.bf16.msra.mxu1 %v4731_v7  ;;  %3653 = vmatprep.subr.bf16.mxu0 %v5178_v4  ;;  %v4736_v15 = vld [vmem:[%s5602_s29 + $0x58] sm:$0xff]   ;;  %v4738_v19 = vld [vmem:[%s5602_s29 + $0x60] sm:$0xff]   ;;  %v4740_v23 = vld [vmem:[%s5602_s29 + $0x68] sm:$0xff]   ;;  %vm2002_vm7 = vcmask (%p539_p12), 1041408   ;;  %vm2431_vm8 = vcmask (%p539_p12), 1045504   ;;  %vm2634_vm9 = vcmask (%p539_p12), 1044480  }
  0xf6   : >> { %3673 = vmatprep.subr.bf16.mxu1 %v5178_v4  ;;  %v4737_v16 = vld [vmem:[%s5602_s29 + $0x18] sm:$0xff]   ;;  %v605_v17 = vor.u32 %v603_v12, %v602_v14  ;;  %v4739_v20 = vld [vmem:[%s5602_s29 + $0x20] sm:$0xff]   ;;  %v5632_v22 = vsel %vm5618_vm3, %v602_v14, 0  ;;  %v4741_v25 = vld [vmem:[%s5602_s29 + $0x28] sm:$0xff]   ;;  %vm2837_vm11 = vcmask (%p539_p12), 1043456   ;;  %s6049_s17 = sld [smem:[#allocation25_spill]] (%p539_p12) }
  0xf7   : >> { %v622_v26 = vshll.u32 %v5632_v22, 16  ;;  %v4742_v28 = vld [vmem:[%s5602_s29 + $0x70] sm:$0xff]   ;;  %v4744_v32 = vld [vmem:[%s5602_s29 + $0x78] sm:$0xff]   ;;  %v4746_v35 = vld [vmem:[%s5602_s29 + $0x80] sm:$0xff]   ;;  %v809_v45 = vrot.slane %v5632_v22, 1  ;;  %s3357_s14 = sshll.u32 (%p539_p12), %s5269_s27, 5 }
  0xf8   : >> { %3654 = vmatpush3.bf16.msra.mxu0 %v4732_v8  ;;  %v5627_v21 = vsel %vm5618_vm3, 0, %v605_v17  ;;  %v4743_v30 = vld [vmem:[%s5602_s29 + $0x30] sm:$0xff]   ;;  %v4745_v33 = vld [vmem:[%s5602_s29 + $0x38] sm:$0xff]   ;;  %v4747_v37 = vld [vmem:[%s5602_s29 + $0x88] sm:$0xff]   ;;  %vm3057_vm12 = vcmask (%p539_p12), 123904   ;;  %s3060_s6 = scalar_lea.sflag (%p539_p12), [#allocation4], %s5543_s12 }
  0xf9   : >> { %3674 = vmatpush3.bf16.msra.mxu1 %v4733_v9  ;;  %3655 = vmatprep.subr.bf16.mxu0 %v5178_v4  ;;  %v617_v24 = vshll.u32 %v5627_v21, 16  ;;  %v615_v27 = vshrl.u32 %v5627_v21, 16  ;;  %v624_v31 = vrot.slane %v622_v26, 1  ;;  %v4748_v38 = vld [vmem:[%s5602_s29 + $0x90] sm:$0xff]   ;;  %v4749_v39 = vld [vmem:[%s5602_s29 + $0x98] sm:$0xff]   ;;  %v4750_v40 = vld [vmem:[%s5602_s29 + $0xa0] sm:$0xff]  }
  0xfa   : >> { %3675 = vmatprep.subr.bf16.mxu1 %v5178_v4  ;;  %v4751_v41 = vld [vmem:[%s5602_s29 + $0xa8] sm:$0xff]   ;;  %v4752_v42 = vld [vmem:[%s5602_s29 + $0xb0] sm:$0xff]   ;;  %v4753_v43 = vld [vmem:[%s5602_s29 + $0xb8] sm:$0xff]   ;;  %v808_v44 = vrot.slane %v5627_v21, 1  ;;  %s6046_s29 = sld [smem:[#allocation24_spill]] (%p539_p12)  ;;  %p6051_p13 = scmp.ne.s32.totalorder (%p539_p12), %s6025_s19, 0 }
  0xfb   : >> { %v619_v29 = vrot.slane %v617_v24, 1  ;;  %v4754_v47 = vld [vmem:[%s5648_s13] sm:$0xff]   ;;  %v4755_v48 = vld [vmem:[%s5648_s13 + $0x8] sm:$0xff]   ;;  %v4757_v50 = vld [vmem:[%s5648_s13 + $0x10] sm:$0xff]   ;;  %s5182_s27 = smov (%p539_p12), [#allocation16]  }
  0xfc   : >> { %3656 = vmatpush3.bf16.msra.mxu0 %v4734_v11  ;;  %v810_v46 = vsel %vm807_vm5, %v808_v44, %v809_v45  ;;  %v4756_v49 = vld [vmem:[%s5648_s13 + $0x40] sm:$0xff]   ;;  %v4758_v51 = vld [vmem:[%s5648_s13 + $0x48] sm:$0xff]   ;;  %v4759_v52 = vld [vmem:[%s5648_s13 + $0x18] sm:$0xff]  }
  0xfd   : >> { %3676 = vmatpush3.bf16.msra.mxu1 %v4735_v13  ;;  %3657 = vmatprep.subr.bf16.mxu0 %v5178_v4  ;;  %v620_v34 = vor.u32 %v619_v29, %v615_v27  ;;  %v4760_v53 = vld [vmem:[%s5648_s13 + $0x50] sm:$0xff]   ;;  %v4761_v54 = vld [vmem:[%s5648_s13 + $0x20] sm:$0xff]   ;;  %v4762_v55 = vld [vmem:[%s5648_s13 + $0x58] sm:$0xff]  }
  0xfe   : >> { %3677 = vmatprep.subr.bf16.mxu1 %v5178_v4  ;;  %v4763_v56 = vld [vmem:[%s5648_s13 + $0x28] sm:$0xff]   ;;  %v4764_v57 = vld [vmem:[%s5648_s13 + $0x60] sm:$0xff]   ;;  %v4765_v58 = vld [vmem:[%s5648_s13 + $0x30] sm:$0xff]  }
  0xff   : >> { %v625_v36 = vsel %vm613_vm4, %v620_v34, %v624_v31  ;;  %v4766_v59 = vld [vmem:[%s5648_s13 + $0x68] sm:$0xff]   ;;  %v4767_v60 = vld [vmem:[%s5648_s13 + $0x38] sm:$0xff]   ;;  %v4768_v61 = vld [vmem:[%s5648_s13 + $0x70] sm:$0xff]  }
 0x100   : >> { %3658 = vmatpush3.bf16.msra.mxu0 %v4736_v15  ;;  %v4769_v62 = vld [vmem:[%s5648_s13 + $0x78] sm:$0xff]   ;;  %v3275_v14 = vld [vmem:[%s596_s18] ss:$0 sm:$0xff]  ;;  %v4775_v45 = vld [vmem:[%s5648_s13 + $0xa8] sm:$0xff]  }
 0x101   : >> { %3678 = vmatpush3.bf16.msra.mxu1 %v4737_v16  ;;  %3659 = vmatprep.subr.bf16.mxu0 %v5178_v4  ;;  %v4774_v44 = vld [vmem:[%s5648_s13 + $0xa0] sm:$0xff]   ;;  %v4816_v18 = vld [vmem:[#allocation11 + $0x10] sm:$0xff] (%p539_p12)   ;;  %vm5854_vm10 = vmneg (%p539_p12), %vm2002_vm7 }
 0x102   : >> { %3679 = vmatprep.subr.bf16.mxu1 %v5178_v4 }
 0x104   : >> { %3660 = vmatpush3.bf16.msra.mxu0 %v4738_v19 }
 0x105   : >> { %3680 = vmatpush3.bf16.msra.mxu1 %v4739_v20  ;;  %3661 = vmatprep.subr.bf16.mxu0 %v5178_v4 }
 0x106   : >> { %3681 = vmatprep.subr.bf16.mxu1 %v5178_v4 }
 0x108   : >> { %3662 = vmatpush3.bf16.msra.mxu0 %v4740_v23 }
 0x109   : >> { %3682 = vmatpush3.bf16.msra.mxu1 %v4741_v25  ;;  %3663 = vmatprep.subr.bf16.mxu0 %v5178_v4 }
 0x10a   : >> { %3683 = vmatprep.subr.bf16.mxu1 %v5178_v4 }
 0x10c   : >> { %3664 = vmatpush3.bf16.msra.mxu0 %v4742_v28 }
 0x10d   : >> { %3684 = vmatpush3.bf16.msra.mxu1 %v4743_v30  ;;  %3665 = vmatprep.subr.bf16.mxu0 %v5178_v4 }
 0x10e   : >> { %3685 = vmatprep.subr.bf16.mxu1 %v5178_v4 }
 0x110   : >> { %3666 = vmatpush3.bf16.msra.mxu0 %v4744_v32 }
 0x111   : >> { %3686 = vmatpush3.bf16.msra.mxu1 %v4745_v33  ;;  %3691 = vmatprep.subr.bf16.mxu0 %v5178_v4 }
 0x112   : >> { %3711 = vmatprep.subr.bf16.mxu1 %v5178_v4 }
 0x113   : >> { %3668 = vmatmul.mubr.bf16.vlgmr.msra.gmra.mrb[0].mxu0 %v625_v36 }
 0x114   : >> { %3688 = vmatmul.mubr.bf16.vlgmr.msra.gmra.mrb[0].mxu1 %v5627_v21  ;;  %3692 = vmatpush3.bf16.msra.mxu0 %v4746_v35 }
 0x115   : >> { %3693 = vmatprep.subr.bf16.mxu0 %v5178_v4  ;;  %3707 = vmatprep.mubr.msk.bf16.mxu0 %vm5179_vm0, %v5178_v4 }
 0x116   : >> { %3727 = vmatprep.mubr.msk.bf16.mxu1 %vm5179_vm0, %v5178_v4  ;;  %3712 = vmatpush3.bf16.msra.mxu1 %v4756_v49 }
 0x117   : >> { %3713 = vmatprep.subr.bf16.mxu1 %v5178_v4 }
 0x118   : >> { %3694 = vmatpush3.bf16.msra.mxu0 %v4747_v37 }
 0x119   : >> { %3695 = vmatprep.subr.bf16.mxu0 %v5178_v4 }
 0x11a   : >> { %3714 = vmatpush3.bf16.msra.mxu1 %v4758_v51 }
 0x11b   : >> { %3715 = vmatprep.subr.bf16.mxu1 %v5178_v4 }
 0x11c   : >> { %3696 = vmatpush3.bf16.msra.mxu0 %v4748_v38 }
 0x11d   : >> { %3697 = vmatprep.subr.bf16.mxu0 %v5178_v4 }
 0x11e   : >> { %3716 = vmatpush3.bf16.msra.mxu1 %v4760_v53 }
 0x11f   : >> { %3717 = vmatprep.subr.bf16.mxu1 %v5178_v4 }
 0x120   : >> { %3698 = vmatpush3.bf16.msra.mxu0 %v4749_v39  ;;  %v4770_v39 = vld [vmem:[%s5648_s13 + $0x80] sm:$0xff]  }
 0x121   : >> { %3699 = vmatprep.subr.bf16.mxu0 %v5178_v4 }
 0x122   : >> { %3718 = vmatpush3.bf16.msra.mxu1 %v4762_v55 }
 0x123   : >> { %3719 = vmatprep.subr.bf16.mxu1 %v5178_v4 }
 0x124   : >> { %3700 = vmatpush3.bf16.msra.mxu0 %v4750_v40 }
 0x125   : >> { %3701 = vmatprep.subr.bf16.mxu0 %v5178_v4 }
 0x126   : >> { %3720 = vmatpush3.bf16.msra.mxu1 %v4764_v57 }
 0x127   : >> { %3721 = vmatprep.subr.bf16.mxu1 %v5178_v4 }
 0x128   : >> { %3702 = vmatpush3.bf16.msra.mxu0 %v4751_v41  ;;  %v4771_v41 = vld [vmem:[%s5648_s13 + $0x88] sm:$0xff]  }
 0x129   : >> { %3703 = vmatprep.subr.bf16.mxu0 %v5178_v4 }
 0x12a   : >> { %3722 = vmatpush3.bf16.msra.mxu1 %v4766_v59 }
 0x12b   : >> { %3723 = vmatprep.subr.bf16.mxu1 %v5178_v4 }
 0x12c   : >> { %3704 = vmatpush3.bf16.msra.mxu0 %v4752_v42  ;;  %v4772_v42 = vld [vmem:[%s5648_s13 + $0x90] sm:$0xff]  }
 0x12d   : >> { %3705 = vmatprep.subr.bf16.mxu0 %v5178_v4 }
 0x12e   : >> { %3724 = vmatpush3.bf16.msra.mxu1 %v4768_v61 }
 0x12f   : >> { %3725 = vmatprep.subr.bf16.mxu1 %v5178_v4 }
 0x130   : >> { %3706 = vmatpush3.bf16.msra.mxu0 %v4753_v43  ;;  %v4773_v43 = vld [vmem:[%s5648_s13 + $0x98] sm:$0xff]  }
 0x131   : >> { %3731 = vmatprep.subr.bf16.mxu0 %v5178_v4 }
 0x132   : >> { %3726 = vmatpush3.bf16.msra.mxu1 %v4769_v62 }
 0x133   : >> { %3708 = vmatmul.mubr.bf16.vlgmr.msra.gmra.mrb[4].mxu0 %v810_v46  ;;  %3751 = vmatprep.subr.bf16.mxu1 %v5178_v4  ;;  %v4776_v46 = vld [vmem:[%s5648_s13 + $0xb0] sm:$0xff]  }
 0x134   : >> { %3747 = vmatprep.mubr.msk.bf16.mxu0 %vm5179_vm0, %v5178_v4  ;;  %3732 = vmatpush3.bf16.msra.mxu0 %v4754_v47  ;;  %v4777_v47 = vld [vmem:[%s5648_s13 + $0xb8] sm:$0xff]   ;;  %s5060_s13 = sshll.u32 (%p539_p12), %s5182_s27, 4  ;;  %s5061_s13 = int_to_ptr.vmem [resolvable:$false] %s5060_s13 }
 0x135   : >> { %3733 = vmatprep.subr.bf16.mxu0 %v5178_v4  ;;  %s5062_s18 = scalar_lea.vmem (%p539_p12), %s5061_s13, 64 }
 0x138   : >> { %3734 = vmatpush3.bf16.msra.mxu0 %v4755_v48 }
 0x139   : >> { %3735 = vmatprep.subr.bf16.mxu0 %v5178_v4 }
 0x13c   : >> { %3736 = vmatpush3.bf16.msra.mxu0 %v4757_v50 }
 0x13d   : >> { %3737 = vmatprep.subr.bf16.mxu0 %v5178_v4 }
 0x140   : >> { %3738 = vmatpush3.bf16.msra.mxu0 %v4759_v52 }
 0x141   : >> { %3739 = vmatprep.subr.bf16.mxu0 %v5178_v4 }
 0x144   : >> { %3740 = vmatpush3.bf16.msra.mxu0 %v4761_v54 }
 0x145   : >> { %3741 = vmatprep.subr.bf16.mxu0 %v5178_v4 }
 0x148   : >> { %3742 = vmatpush3.bf16.msra.mxu0 %v4763_v56 }
 0x149   : >> { %3743 = vmatprep.subr.bf16.mxu0 %v5178_v4 }
 0x14c   : >> { %3744 = vmatpush3.bf16.msra.mxu0 %v4765_v58 }
 0x14d   : >> { %3745 = vmatprep.subr.bf16.mxu0 %v5178_v4 }
 0x150   : >> { %3746 = vmatpush3.bf16.msra.mxu0 %v4767_v60 }
 0x1e6   : >> { %v709_v63 = vpop.f32.mrb[0].mxu0 }
 0x1e7   : >> { %v798_v5 = vpop.f32.mrb[0].mxu1  ;;  %v3669_v6 = vpop.f32.mrb[1].mxu0 }
 0x1e8   : >> { %v799_v7 = vadd.f32 %v798_v5, %v709_v63  ;;  %v3689_v8 = vpop.f32.mrb[1].mxu1  ;;  %v712_v9 = vpop.f32.mrb[2].mxu0 }
 0x1e9   : >> { %v801_v10 = vpop.f32.mrb[2].mxu1  ;;  %v3670_v11 = vpop.f32.mrb[3].mxu0 }
 0x1ea   : >> { %v802_v12 = vadd.f32 %v801_v10, %v712_v9  ;;  %v3690_v13 = vpop.f32.mrb[3].mxu1 }
 0x206   : >> { %v894_v15 = vpop.f32.mrb[4].mxu0 }
 0x207   : >> { %v901_v16 = vadd.f32 %v894_v15, %v799_v7  ;;  %v3709_v17 = vpop.f32.mrb[5].mxu0 }
 0x208   : >> { %v897_v19 = vpop.f32.mrb[6].mxu0 }
 0x209   : >> { %v909_v20 = vadd.f32 %v3275_v14, %v901_v16  ;;  %v902_v21 = vadd.f32 %v897_v19, %v802_v12  ;;  %v3710_v22 = vpop.f32.mrb[7].mxu0  ;;  %v4782_v12 = vld [vmem:[#allocation10 + $0x40] sm:$0xff] (%p539_p12)   ;;  %v4784_v19 = vld [vmem:[#allocation10 + $0x50] sm:$0xff] (%p539_p12)  }
 0x20b   : >> { %v910_v23 = vadd.f32 %v3275_v14, %v902_v21  ;;  %4778 = vtanh.f32 %v909_v20  ;;  %v5180_v14 = vmov (%p539_p12), 0.0   ;;  %v4785_v20 = vld [vmem:[#allocation10 + $0x58] sm:$0xff] (%p539_p12)  }
 0x20d   : >> { %4780 = vtanh.f32 %v910_v23 }
 0x215   : >> { %v4779_v24 = vpop.eup %4778 }
 0x217   : >> { %v4781_v25 = vpop.eup %4780 }
 0x218   : >> { %v965_v26 = vpack.c.bf16 %v4781_v25, %v4779_v24  ;;  %v4786_v25 = vld [vmem:[#allocation10 + $0x60] sm:$0xff] (%p539_p12)  }
 0x21a   : >> { %v967_v27 = vshrl.u32 %v965_v26, 16  ;;  %v970_v29 = vshll.u32 %v965_v26, 16 }
 0x21c   : >> { %v969_v28 = vrot.slane %v967_v27, 7  ;;  %v4787_v27 = vld [vmem:[#allocation10 + $0x68] sm:$0xff] (%p539_p12)  }
 0x21e   : >> { %v972_v30 = vor.u32 %v970_v29, %v969_v28  ;;  %v976_v31 = vsel %vm5618_vm3, %v969_v28, 0 }
 0x21f   : >> { %v985_v34 = vshll.u32 %v976_v31, 16  ;;  %v1171_v49 = vrot.slane %v976_v31, 1 }
 0x220   : >> { %v975_v32 = vsel %vm5618_vm3, 0, %v972_v30  ;;  %v4788_v30 = vld [vmem:[#allocation10 + $0x70] sm:$0xff] (%p539_p12)  }
 0x221   : >> { %v980_v33 = vshll.u32 %v975_v32, 16  ;;  %3748 = vmatmul.mubr.bf16.vlgmr.msra.gmra.mrb[8].mxu0 %v975_v32  ;;  %v978_v35 = vshrl.u32 %v975_v32, 16  ;;  %v987_v38 = vrot.slane %v985_v34, 1  ;;  %v1170_v48 = vrot.slane %v975_v32, 1 }
 0x223   : >> { %v982_v36 = vrot.slane %v980_v33, 1  ;;  %v1172_v50 = vsel %vm807_vm5, %v1170_v48, %v1171_v49  ;;  %v4789_v33 = vld [vmem:[#allocation10 + $0x78] sm:$0xff] (%p539_p12)   ;;  %v4802_v49 = vld [vmem:[#allocation10 + $0xa0] sm:$0xff] (%p539_p12)  }
 0x224   : > { %v4801_v48 = vld [vmem:[#allocation10 + $0x98] sm:$0xff] (%p539_p12)  }
 0x225   : >> { %v983_v37 = vor.u32 %v982_v36, %v978_v35  ;;  %v4790_v36 = vld [vmem:[#allocation10] sm:$0xff] (%p539_p12)  }
 0x227   : >> { %v988_v40 = vsel %vm613_vm4, %v983_v37, %v987_v38  ;;  %v4791_v38 = vld [vmem:[#allocation10 + $0x8] sm:$0xff] (%p539_p12)  }
 0x228   : >> { %3728 = vmatmul.mubr.bf16.vlgmr.msra.gmra.mrb[4].mxu1 %v988_v40  ;;  %v4793_v40 = vld [vmem:[#allocation10 + $0x18] sm:$0xff] (%p539_p12)  }
 0x229   : >> { %3752 = vmatpush3.bf16.msra.mxu1 %v4770_v39  ;;  %3767 = vmatprep.mubr.msk.bf16.mxu1 %vm5179_vm0, %v5178_v4  ;;  %v4792_v39 = vld [vmem:[#allocation10 + $0x10] sm:$0xff] (%p539_p12)  }
 0x22a   : >> { %3753 = vmatprep.subr.bf16.mxu1 %v5178_v4 }
 0x22d   : >> { %3754 = vmatpush3.bf16.msra.mxu1 %v4771_v41  ;;  %v4794_v41 = vld [vmem:[#allocation10 + $0x20] sm:$0xff] (%p539_p12)  }
 0x22e   : >> { %3755 = vmatprep.subr.bf16.mxu1 %v5178_v4 }
 0x231   : >> { %3756 = vmatpush3.bf16.msra.mxu1 %v4772_v42  ;;  %v4795_v42 = vld [vmem:[#allocation10 + $0x28] sm:$0xff] (%p539_p12)  }
 0x232   : >> { %3757 = vmatprep.subr.bf16.mxu1 %v5178_v4 }
 0x235   : >> { %3758 = vmatpush3.bf16.msra.mxu1 %v4773_v43  ;;  %v4796_v43 = vld [vmem:[#allocation10 + $0x30] sm:$0xff] (%p539_p12)  }
 0x236   : >> { %3759 = vmatprep.subr.bf16.mxu1 %v5178_v4 }
 0x239   : >> { %3760 = vmatpush3.bf16.msra.mxu1 %v4774_v44  ;;  %v4797_v44 = vld [vmem:[#allocation10 + $0x38] sm:$0xff] (%p539_p12)  }
 0x23a   : >> { %3761 = vmatprep.subr.bf16.mxu1 %v5178_v4 }
 0x23d   : >> { %3762 = vmatpush3.bf16.msra.mxu1 %v4775_v45  ;;  %v4798_v45 = vld [vmem:[#allocation10 + $0x80] sm:$0xff] (%p539_p12)  }
 0x23e   : >> { %3763 = vmatprep.subr.bf16.mxu1 %v5178_v4 }
 0x241   : >> { %3764 = vmatpush3.bf16.msra.mxu1 %v4776_v46  ;;  %v4799_v46 = vld [vmem:[#allocation10 + $0x88] sm:$0xff] (%p539_p12)  }
 0x242   : >> { %3765 = vmatprep.subr.bf16.mxu1 %v5178_v4  ;;  %v3301_v4 = vld [vmem:[%s963_s15] ss:$0 sm:$0xff]  ;;  %s3073_s15 = sshll.u32 (%p539_p12), %s5572_s26, 4  ;;  %s5950_s15 = int_to_ptr.vmem [resolvable:$true] %s3073_s15 }
 0x243   : > { %p5063_p8 = scmp.lt.s32.totalorder (%p539_p12), %s5950_s15, %s5061_s13 }
 0x245   : >> { %3766 = vmatpush3.bf16.msra.mxu1 %v4777_v47  ;;  %v4800_v47 = vld [vmem:[#allocation10 + $0x90] sm:$0xff] (%p539_p12)  }
 0x246   : > { %3771 = vmatprep.subr.bf16.mxu1 (%p539_p12), %v5180_v14 }
 0x248   : >> { %3768 = vmatmul.mubr.bf16.vlgmr.msra.gmra.mrb[8].mxu1 %v1172_v50  ;;  %v4803_v50 = vld [vmem:[#allocation10 + $0xa8] sm:$0xff] (%p539_p12)  }
 0x249   : > { %3772 = vmatpush3.bf16.msra.mxu1 (%p539_p12), %v4782_v12  ;;  %3787 = vmatprep.mubr.msk.bf16.mxu1 (%p539_p12), %vm5181_vm6, %v5180_v14 }
 0x24a   : > { %3773 = vmatprep.subr.bf16.mxu1 (%p539_p12), %v5180_v14 }
 0x2f4   : >> { %v1161_v51 = vpop.f32.mrb[8].mxu0 }
 0x2f5   : >> { %v3749_v52 = vpop.f32.mrb[9].mxu0 }
 0x2f6   : >> { %v1164_v53 = vpop.f32.mrb[10].mxu0  ;;  %v4805_v52 = vld [vmem:[#allocation10 + $0xb8] sm:$0xff] (%p539_p12)  }
 0x2f7   : >> { %v3750_v54 = vpop.f32.mrb[11].mxu0 }
 0x2f8   : > { %v4807_v54 = vld [vmem:[#allocation11 + $0x48] sm:$0xff] (%p539_p12)  }
 0x2fb   : >> { %v1072_v55 = vpop.f32.mrb[4].mxu1 }
 0x2fc   : >> { %v1162_v56 = vadd.f32 %v1161_v51, %v1072_v55  ;;  %v3729_v57 = vpop.f32.mrb[5].mxu1  ;;  %v4804_v51 = vld [vmem:[#allocation10 + $0xb0] sm:$0xff] (%p539_p12)  }
 0x2fd   : >> { %v1075_v58 = vpop.f32.mrb[6].mxu1  ;;  %v4808_v55 = vld [vmem:[#allocation11 + $0x50] sm:$0xff] (%p539_p12)   ;;  %v4810_v57 = vld [vmem:[#allocation11 + $0x60] sm:$0xff] (%p539_p12)  }
 0x2fe   : >> { %v1165_v59 = vadd.f32 %v1164_v53, %v1075_v58  ;;  %v3730_v60 = vpop.f32.mrb[7].mxu1  ;;  %v4806_v53 = vld [vmem:[#allocation11 + $0x40] sm:$0xff] (%p539_p12)   ;;  %v4811_v58 = vld [vmem:[#allocation11 + $0x68] sm:$0xff] (%p539_p12)  }
 0x2ff   : > { %v4813_v60 = vld [vmem:[#allocation11 + $0x78] sm:$0xff] (%p539_p12)  }
 0x31b   : >> { %v1256_v61 = vpop.f32.mrb[8].mxu1 }
 0x31c   : >> { %v1263_v62 = vadd.f32 %v1256_v61, %v1162_v56  ;;  %v3769_v63 = vpop.f32.mrb[9].mxu1  ;;  %v4809_v56 = vld [vmem:[#allocation11 + $0x58] sm:$0xff] (%p539_p12)  }
 0x31d   : >> { %v1259_v5 = vpop.f32.mrb[10].mxu1 }
 0x31e   : >> { %v1271_v6 = vadd.f32 %v3301_v4, %v1263_v62  ;;  %v1264_v7 = vadd.f32 %v1259_v5, %v1165_v59  ;;  %v3770_v8 = vpop.f32.mrb[11].mxu1  ;;  %541 = sbr.rel (!%p539_p12) target bundleno = 240 (0xf0), region = 164  ;;  %v4812_v59 = vld [vmem:[#allocation11 + $0x70] sm:$0xff] (%p539_p12)  }
 0x320   : >> { %v1273_v9 = vadd.f32 %v5158_v3, %v1271_v6   ;;  %v1272_v10 = vadd.f32 %v3301_v4, %v1264_v7 }
 0x322   : >> { %v1274_v11 = vadd.f32 %v5154_v2, %v1272_v10   ;;  %v6044_v3 = vmov %v1273_v9 }
 0x323   : > { %v4783_v3 = vld [vmem:[#allocation10 + $0x48] sm:$0xff] (%p539_p12)  }
 0x324   : >> { %v6043_v2 = vmov %v1274_v11  ;;  %v1276_v13 = vpack.c.bf16 (%p539_p12), %v1274_v11, %v1273_v9  ;;  %3774 = vmatpush3.bf16.msra.mxu1 (%p539_p12), %v4783_v3  ;;  %v3326_v11 = vld [vmem:[%s6045_s28] ss:$0 sm:$0xff] (%p539_p12)  ;;  %s6050_s28 = sld [smem:[#allocation26_spill]] (%p539_p12) }
 0x325   : > { %3775 = vmatprep.subr.bf16.mxu1 %v5180_v14 }
 0x326   : > { %v1278_v15 = vshrl.u32 %v1276_v13, 16  ;;  %v1281_v16 = vshll.u32 %v1276_v13, 16 }
 0x328   : > { %v1280_v17 = vrot.slane %v1278_v15, 7  ;;  %3776 = vmatpush3.bf16.msra.mxu1 %v4784_v19 }
 0x329   : > { %3777 = vmatprep.subr.bf16.mxu1 %v5180_v14 }
 0x32a   : > { %v1283_v2 = vor.u32 %v1281_v16, %v1280_v17  ;;  %v1290_v22 = vsel %vm5618_vm3, %v1280_v17, 0  ;;  %s5948_s30 = scalar_lea.hbm %s6050_s28, %s3357_s14 }
 0x32b   : > { %v1537_v24 = vrot.slane %v1290_v22, 1  ;;  %v1333_v29 = vshll.u32 %v1290_v22, 16 }
 0x32c   : > { %v1289_v21 = vsel %vm5618_vm3, 0, %v1283_v2  ;;  %3778 = vmatpush3.bf16.msra.mxu1 %v4785_v20 }
 0x32d   : > { %v1536_v23 = vrot.slane %v1289_v21, 1  ;;  %3779 = vmatprep.subr.bf16.mxu1 %v5180_v14  ;;  %v1328_v28 = vshll.u32 %v1289_v21, 16  ;;  %v1326_v31 = vshrl.u32 %v1289_v21, 16  ;;  %v1335_v34 = vrot.slane %v1333_v29, 1 }
 0x32f   : > { %v5762_v26 = vsel %vm807_vm5, %v1536_v23, %v1537_v24  ;;  %v1330_v32 = vrot.slane %v1328_v28, 1 }
 0x330   : > { %3780 = vmatpush3.bf16.msra.mxu1 %v4786_v25 }
 0x331   : > { %3781 = vmatprep.subr.bf16.mxu1 %v5180_v14  ;;  %v1331_v35 = vor.u32 %v1330_v32, %v1326_v31 }
 0x333   : > { %v1336_v37 = vsel %vm613_vm4, %v1331_v35, %v1335_v34 }
 0x334   : > { %3782 = vmatpush3.bf16.msra.mxu1 %v4787_v27 }
 0x335   : > { %3783 = vmatprep.subr.bf16.mxu1 %v5180_v14 }
 0x338   : > { %3784 = vmatpush3.bf16.msra.mxu1 %v4788_v30 }
 0x339   : > { %3785 = vmatprep.subr.bf16.mxu1 %v5180_v14 }
 0x33c   : > { %3786 = vmatpush3.bf16.msra.mxu1 %v4789_v33 }
 0x33d   : > { %3791 = vmatprep.subr.bf16.mxu1 %v5180_v14 }
 0x33f   : > { %3788 = vmatmul.mubr.bf16.vlgmr.msra.gmra.mrb[0].mxu1 %v1336_v37 }
 0x340   : > { %3792 = vmatpush3.bf16.msra.mxu1 %v4790_v36  ;;  %3807 = vmatprep.mubr.msk.bf16.mxu1 %vm5181_vm6, %v5180_v14  ;;  %v4814_v36 = vld [vmem:[#allocation11] sm:$0xff]  }
 0x341   : > { %3793 = vmatprep.subr.bf16.mxu1 %v5180_v14 }
 0x344   : > { %3794 = vmatpush3.bf16.msra.mxu1 %v4791_v38  ;;  %v4815_v38 = vld [vmem:[#allocation11 + $0x8] sm:$0xff]  }
 0x345   : > { %3795 = vmatprep.subr.bf16.mxu1 %v5180_v14 }
 0x348   : > { %3796 = vmatpush3.bf16.msra.mxu1 %v4792_v39  ;;  %v4817_v39 = vld [vmem:[#allocation11 + $0x18] sm:$0xff]  }
 0x349   : > { %3797 = vmatprep.subr.bf16.mxu1 %v5180_v14 }
 0x34c   : > { %3798 = vmatpush3.bf16.msra.mxu1 %v4793_v40  ;;  %v4818_v40 = vld [vmem:[#allocation11 + $0x20] sm:$0xff]  }
 0x34d   : > { %3799 = vmatprep.subr.bf16.mxu1 %v5180_v14 }
 0x350   : > { %3800 = vmatpush3.bf16.msra.mxu1 %v4794_v41  ;;  %v4819_v41 = vld [vmem:[#allocation11 + $0x28] sm:$0xff]  }
 0x351   : > { %3801 = vmatprep.subr.bf16.mxu1 %v5180_v14 }
 0x354   : > { %3802 = vmatpush3.bf16.msra.mxu1 %v4795_v42  ;;  %v4820_v42 = vld [vmem:[#allocation11 + $0x30] sm:$0xff]  }
 0x355   : > { %3803 = vmatprep.subr.bf16.mxu1 %v5180_v14 }
 0x358   : > { %3804 = vmatpush3.bf16.msra.mxu1 %v4796_v43  ;;  %v4821_v43 = vld [vmem:[#allocation11 + $0x38] sm:$0xff]  }
 0x359   : > { %3805 = vmatprep.subr.bf16.mxu1 %v5180_v14 }
 0x35c   : > { %3806 = vmatpush3.bf16.msra.mxu1 %v4797_v44  ;;  %v4822_v44 = vld [vmem:[#allocation11 + $0x80] sm:$0xff]  }
 0x35d   : > { %3811 = vmatprep.subr.bf16.mxu1 %v5180_v14 }
 0x35f   : > { %3808 = vmatmul.mubr.bf16.vlgmr.msra.gmra.mrb[4].mxu1 %v1289_v21 }
 0x360   : > { %3812 = vmatpush3.bf16.msra.mxu1 %v4798_v45  ;;  %3827 = vmatprep.mubr.msk.bf16.mxu1 %vm5181_vm6, %v5180_v14  ;;  %v4823_v45 = vld [vmem:[#allocation11 + $0x88] sm:$0xff]  }
 0x361   : > { %3813 = vmatprep.subr.bf16.mxu1 %v5180_v14 }
 0x364   : > { %3814 = vmatpush3.bf16.msra.mxu1 %v4799_v46  ;;  %v4824_v46 = vld [vmem:[#allocation11 + $0x90] sm:$0xff]  }
 0x365   : > { %3815 = vmatprep.subr.bf16.mxu1 %v5180_v14 }
 0x368   : > { %3816 = vmatpush3.bf16.msra.mxu1 %v4800_v47  ;;  %v4825_v47 = vld [vmem:[#allocation11 + $0x98] sm:$0xff]  }
 0x369   : > { %3817 = vmatprep.subr.bf16.mxu1 %v5180_v14 }
 0x36c   : > { %3818 = vmatpush3.bf16.msra.mxu1 %v4801_v48  ;;  %v4826_v48 = vld [vmem:[#allocation11 + $0xa0] sm:$0xff]  }
 0x36d   : > { %3819 = vmatprep.subr.bf16.mxu1 %v5180_v14 }
 0x370   : > { %3820 = vmatpush3.bf16.msra.mxu1 %v4802_v49  ;;  %v4827_v49 = vld [vmem:[#allocation11 + $0xa8] sm:$0xff]  }
 0x371   : > { %3821 = vmatprep.subr.bf16.mxu1 %v5180_v14 }
 0x374   : > { %3822 = vmatpush3.bf16.msra.mxu1 %v4803_v50  ;;  %v4828_v50 = vld [vmem:[#allocation11 + $0xb0] sm:$0xff]  }
 0x375   : > { %3823 = vmatprep.subr.bf16.mxu1 %v5180_v14 }
 0x378   : > { %3824 = vmatpush3.bf16.msra.mxu1 %v4804_v51  ;;  %v4829_v51 = vld [vmem:[#allocation11 + $0xb8] sm:$0xff]  }
 0x379   : > { %3825 = vmatprep.subr.bf16.mxu1 %v5180_v14 }
 0x37c   : > { %3826 = vmatpush3.bf16.msra.mxu1 %v4805_v52  ;;  %v2042_v52 = vld [vmem:[#allocation14] sm:$0xff] }
 0x37d   : > { %3831 = vmatprep.subr.bf16.mxu1 %v5180_v14 }
 0x37f   : > { %3828 = vmatmul.mubr.bf16.vlgmr.msra.gmra.mrb[8].mxu1 %v5762_v26 }
 0x380   : > { %3847 = vmatprep.mubr.msk.bf16.mxu1 %vm5181_vm6, %v5180_v14  ;;  %3832 = vmatpush3.bf16.msra.mxu1 %v4806_v53  ;;  %v2043_v53 = vld [vmem:[#allocation14 + $0x8] sm:$0xff] }
 0x381   : > { %3833 = vmatprep.subr.bf16.mxu1 %v5180_v14 }
 0x384   : > { %3834 = vmatpush3.bf16.msra.mxu1 %v4807_v54  ;;  %v2209_v54 = vld [vmem:[#allocation13 + $0x80] sm:$0xff] }
 0x385   : > { %3835 = vmatprep.subr.bf16.mxu1 %v5180_v14 }
 0x388   : > { %3836 = vmatpush3.bf16.msra.mxu1 %v4808_v55  ;;  %v4241_v55 = vpack.c.bf16 %v2043_v53, %v2042_v52  ;;  %v3351_v52 = vld [vmem:[%s6046_s29] ss:$0 sm:$0xff]  ;;  %s5056_s29 = scalar_lea.vmem %s5950_s15, 32 }
 0x389   : > { %3837 = vmatprep.subr.bf16.mxu1 %v5180_v14  ;;  %p5057_p1 = scmp.ne.s32.totalorder %s5950_s15, %s5056_s29  ;;  %p5064_p6 = scmp.lt.s32.totalorder %s5062_s18, %s5056_s29 }
 0x38b   : > { %p5058_p0 = pnand %p5057_p1, %p6051_p13  ;;  %p5065_p10 = por %p5064_p6, %p5063_p8 }
 0x38c   : > { %3838 = vmatpush3.bf16.msra.mxu1 %v4809_v56  ;;  %v2210_v56 = vld [vmem:[#allocation13 + $0x88] sm:$0xff] }
 0x38d   : > { %3839 = vmatprep.subr.bf16.mxu1 %v5180_v14  ;;  %p5059_p2 = pneg %p5058_p0 }
 0x38f   : > { %p5066_p11 = pnand %p5065_p10, %p5059_p2 }
 0x390   : > { %3840 = vmatpush3.bf16.msra.mxu1 %v4810_v57  ;;  %v2044_v57 = vld [vmem:[#allocation14 + $0x10] sm:$0xff] }
 0x391   : > { %3841 = vmatprep.subr.bf16.mxu1 %v5180_v14 }
 0x394   : > { %3842 = vmatpush3.bf16.msra.mxu1 %v4811_v58  ;;  %v2045_v58 = vld [vmem:[#allocation14 + $0x18] sm:$0xff] }
 0x395   : > { %3843 = vmatprep.subr.bf16.mxu1 %v5180_v14 }
 0x398   : > { %3844 = vmatpush3.bf16.msra.mxu1 %v4812_v59  ;;  %v4305_v59 = vpack.c.bf16 %v2210_v56, %v2209_v54 }
 0x399   : > { %3845 = vmatprep.subr.bf16.mxu1 %v5180_v14 }
 0x39a   : > { %4306 = vmatprep.subr.bf16.mxu0 %v4305_v59 }
 0x39b   : > { %4308 = vmatpush3.bf16.msra.mxu0 %v4305_v59 }
 0x39c   : > { %3846 = vmatpush3.bf16.msra.mxu1 %v4813_v60  ;;  %v4245_v60 = vpack.c.bf16 %v2045_v58, %v2044_v57 }
 0x39d   : > { %3851 = vmatprep.subr.bf16.mxu1 %v5180_v14 }
 0x412   : > { %v1420_v4 = vpop.f32.mrb[0].mxu1 }
 0x413   : > { %v3789_v61 = vpop.f32.mrb[1].mxu1 }
 0x414   : > { %v1423_v62 = vpop.f32.mrb[2].mxu1  ;;  %v2212_v61 = vld [vmem:[#allocation13 + $0x98] sm:$0xff] }
 0x415   : > { %v3790_v63 = vpop.f32.mrb[3].mxu1 }
 0x432   : > { %v1509_v5 = vpop.f32.mrb[4].mxu1 }
 0x433   : > { %v1510_v6 = vadd.f32 %v1509_v5, %v1420_v4  ;;  %v3809_v7 = vpop.f32.mrb[5].mxu1  ;;  %v2211_v4 = vld [vmem:[#allocation13 + $0x90] sm:$0xff]  ;;  %v2047_v5 = vld [vmem:[#allocation14 + $0x28] sm:$0xff] }
 0x434   : > { %v1512_v8 = vpop.f32.mrb[6].mxu1  ;;  %v4309_v63 = vpack.c.bf16 %v2212_v61, %v2211_v4  ;;  %v2214_v7 = vld [vmem:[#allocation13 + $0xa8] sm:$0xff]  ;;  %v2029_v4 = vld [vmem:[#allocation13 + $0x18] sm:$0xff]  ;;  %v2314_v61 = vld [vmem:[#allocation14 + $0x90] sm:$0xff] }
 0x435   : > { %v1513_v9 = vadd.f32 %v1512_v8, %v1423_v62  ;;  %v3810_v10 = vpop.f32.mrb[7].mxu1  ;;  %v2046_v62 = vld [vmem:[#allocation14 + $0x20] sm:$0xff] }
 0x436   : > { %4310 = vmatprep.subr.bf16.mxu0 %v4309_v63  ;;  %v2049_v10 = vld [vmem:[#allocation14 + $0x38] sm:$0xff] }
 0x437   : > { %4312 = vmatpush3.bf16.msra.mxu0 %v4309_v63 }
 0x452   : > { %v1622_v12 = vpop.f32.mrb[8].mxu1 }
 0x453   : > { %v1629_v13 = vadd.f32 %v1622_v12, %v1510_v6  ;;  %v3829_v3 = vpop.f32.mrb[9].mxu1  ;;  %v2213_v6 = vld [vmem:[#allocation13 + $0xa0] sm:$0xff]  ;;  %v2216_v12 = vld [vmem:[#allocation13 + $0xb8] sm:$0xff] }
 0x454   : > { %v1625_v15 = vpop.f32.mrb[10].mxu1  ;;  %v4313_v8 = vpack.c.bf16 %v2214_v7, %v2213_v6  ;;  %v2030_v6 = vld [vmem:[#allocation13 + $0x20] sm:$0xff]  ;;  %v2031_v7 = vld [vmem:[#allocation13 + $0x28] sm:$0xff] }
 0x455   : > { %v1637_v16 = vadd.f32 %v3326_v11, %v1629_v13  ;;  %v1630_v17 = vadd.f32 %v1625_v15, %v1513_v9  ;;  %v3830_v19 = vpop.f32.mrb[11].mxu1  ;;  %v2048_v9 = vld [vmem:[#allocation14 + $0x30] sm:$0xff]  ;;  %v2050_v15 = vld [vmem:[#allocation14 + $0x40] sm:$0xff] }
 0x456   : > { %v4253_v13 = vpack.c.bf16 %v2049_v10, %v2048_v9  ;;  %4314 = vmatprep.subr.bf16.mxu0 %v4313_v8  ;;  %v2218_v19 = vld [vmem:[#allocation13 + $0xc8] sm:$0xff] }
 0x457   : > { %v1638_v2 = vadd.f32 %v3326_v11, %v1630_v17  ;;  %v1639_v20 = vadd.f32 %v1637_v16, %v5568_v0  ;;  %v2215_v11 = vld [vmem:[#allocation13 + $0xb0] sm:$0xff]  ;;  %v2051_v16 = vld [vmem:[#allocation14 + $0x48] sm:$0xff]  ;;  %v2217_v17 = vld [vmem:[#allocation13 + $0xc0] sm:$0xff]  ;;  %4316 = vmatpush3.bf16.msra.mxu0 %v4313_v8 }
 0x458   : > { %v4317_v3 = vpack.c.bf16 %v2216_v12, %v2215_v11 }
 0x459   : > { %v1640_v21 = vadd.f32 %v1638_v2, %v5570_v1  ;;  %v4257_v2 = vpack.c.bf16 %v2051_v16, %v2050_v15 }
 0x45a   : > { %4318 = vmatprep.subr.bf16.mxu0 %v4317_v3 }
 0x45b   : > { %v1642_v22 = vpack.c.bf16 %v1640_v21, %v1639_v20  ;;  %v4321_v20 = vpack.c.bf16 %v2218_v19, %v2217_v17  ;;  %4320 = vmatpush3.bf16.msra.mxu0 %v4317_v3  ;;  %v2052_v21 = vld [vmem:[#allocation14 + $0x50] sm:$0xff]  ;;  %v5845_v3 = vpack.c.bf16 %v2031_v7, %v2030_v6 }
 0x45d   : > { %v1644_v23 = vshrl.u32 %v1642_v22, 16  ;;  %v1647_v25 = vshll.u32 %v1642_v22, 16  ;;  %4322 = vmatprep.subr.bf16.mxu0 %v4321_v20  ;;  %v2053_v22 = vld [vmem:[#allocation14 + $0x58] sm:$0xff] }
 0x45f   : > { %v1646_v24 = vrot.slane %v1644_v23, 7  ;;  %4324 = vmatpush3.bf16.msra.mxu0 %v4321_v20  ;;  %v4261_v23 = vpack.c.bf16 %v2053_v22, %v2052_v21 }
 0x461   : > { %v1649_v26 = vor.u32 %v1647_v25, %v1646_v24  ;;  %v1653_v27 = vsel %vm5618_vm3, %v1646_v24, 0  ;;  %v2219_v24 = vld [vmem:[#allocation13 + $0xd0] sm:$0xff]  ;;  %v2220_v25 = vld [vmem:[#allocation13 + $0xd8] sm:$0xff] }
 0x462   : > { %v1695_v30 = vshll.u32 %v1653_v27, 16  ;;  %v1898_v32 = vrot.slane %v1653_v27, 1  ;;  %v2054_v27 = vld [vmem:[#allocation14 + $0x60] sm:$0xff] }
 0x463   : > { %v1652_v28 = vsel %vm5618_vm3, 0, %v1649_v26  ;;  %v4325_v26 = vpack.c.bf16 %v2220_v25, %v2219_v24 }
 0x464   : > { %v1690_v29 = vshll.u32 %v1652_v28, 16  ;;  %v1897_v31 = vrot.slane %v1652_v28, 1  ;;  %v1688_v33 = vshrl.u32 %v1652_v28, 16  ;;  %v1697_v35 = vrot.slane %v1695_v30, 1  ;;  %v2221_v30 = vld [vmem:[#allocation13 + $0xe0] sm:$0xff] }
 0x465   : > { %4326 = vmatprep.subr.bf16.mxu0 %v4325_v26 }
 0x466   : > { %v1692_v34 = vrot.slane %v1690_v29, 1  ;;  %v1899_v0 = vsel %vm807_vm5, %v1897_v31, %v1898_v32  ;;  %4328 = vmatpush3.bf16.msra.mxu0 %v4325_v26  ;;  %v2222_v31 = vld [vmem:[#allocation13 + $0xe8] sm:$0xff] }
 0x467   : > { %v4329_v32 = vpack.c.bf16 %v2222_v31, %v2221_v30 }
 0x468   : > { %v1693_v1 = vor.u32 %v1692_v34, %v1688_v33  ;;  %v2056_v33 = vld [vmem:[#allocation14 + $0x70] sm:$0xff]  ;;  %v2057_v34 = vld [vmem:[#allocation14 + $0x78] sm:$0xff] }
 0x469   : > { %4330 = vmatprep.subr.bf16.mxu0 %v4329_v32 }
 0x46a   : > { %v1698_v37 = vsel %vm613_vm4, %v1693_v1, %v1697_v35  ;;  %4332 = vmatpush3.bf16.msra.mxu0 %v4329_v32  ;;  %v2223_v1 = vld [vmem:[#allocation13 + $0xf0] sm:$0xff]  ;;  %v2224_v35 = vld [vmem:[#allocation13 + $0xf8] sm:$0xff] }
 0x46b   : > { %3848 = vmatmul.mubr.bf16.vlgmr.msra.gmra.mrb[12].mxu1 %v1698_v37  ;;  %v2026_v37 = vld [vmem:[#allocation13] sm:$0xff] }
 0x46c   : > { %3852 = vmatpush3.bf16.msra.mxu1 %v4814_v36  ;;  %3867 = vmatprep.mubr.msk.bf16.mxu1 %vm5181_vm6, %v5180_v14  ;;  %v4333_v36 = vpack.c.bf16 %v2224_v35, %v2223_v1  ;;  %v2317_v1 = vld [vmem:[#allocation14 + $0xa8] sm:$0xff] }
 0x46d   : > { %3853 = vmatprep.subr.bf16.mxu1 %v5180_v14 }
 0x46e   : > { %4334 = vmatprep.subr.bf16.mxu0 %v4333_v36 }
 0x46f   : > { %4336 = vmatpush3.bf16.msra.mxu0 %v4333_v36 }
 0x470   : > { %3854 = vmatpush3.bf16.msra.mxu1 %v4815_v38  ;;  %v2027_v38 = vld [vmem:[#allocation13 + $0x8] sm:$0xff] }
 0x471   : > { %3855 = vmatprep.subr.bf16.mxu1 %v5180_v14 }
 0x474   : > { %3856 = vmatpush3.bf16.msra.mxu1 %v4816_v18  ;;  %v5830_v18 = vpack.c.bf16 %v2027_v38, %v2026_v37 }
 0x475   : > { %3857 = vmatprep.subr.bf16.mxu1 %v5180_v14 }
 0x478   : > { %3858 = vmatpush3.bf16.msra.mxu1 %v4817_v39  ;;  %v2312_v39 = vld [vmem:[#allocation14 + $0x80] sm:$0xff] }
 0x479   : > { %3859 = vmatprep.subr.bf16.mxu1 %v5180_v14 }
 0x47c   : > { %3860 = vmatpush3.bf16.msra.mxu1 %v4818_v40  ;;  %v2313_v40 = vld [vmem:[#allocation14 + $0x88] sm:$0xff] }
 0x47d   : > { %3861 = vmatprep.subr.bf16.mxu1 %v5180_v14 }
 0x480   : > { %3862 = vmatpush3.bf16.msra.mxu1 %v4819_v41  ;;  %v5833_v41 = vpack.c.bf16 %v2313_v40, %v2312_v39 }
 0x481   : > { %3863 = vmatprep.subr.bf16.mxu1 %v5180_v14 }
 0x482   : > { %4338 = vmatprep.subr.bf16.mxu0 %v5833_v41 }
 0x484   : > { %3864 = vmatpush3.bf16.msra.mxu1 %v4820_v42 }
 0x485   : > { %3865 = vmatprep.subr.bf16.mxu1 %v5180_v14 }
 0x488   : > { %3866 = vmatpush3.bf16.msra.mxu1 %v4821_v43 }
 0x489   : > { %3871 = vmatprep.subr.bf16.mxu1 %v5180_v14 }
 0x48b   : > { %3868 = vmatmul.mubr.bf16.vlgmr.msra.gmra.mrb[16].mxu1 %v1652_v28  ;;  %v2055_v28 = vld [vmem:[#allocation14 + $0x68] sm:$0xff] }
 0x48c   : > { %3872 = vmatpush3.bf16.msra.mxu1 %v4822_v44  ;;  %3887 = vmatprep.mubr.msk.bf16.mxu1 %vm5181_vm6, %v5180_v14  ;;  %v4265_v29 = vpack.c.bf16 %v2055_v28, %v2054_v27 }
 0x48d   : > { %3873 = vmatprep.subr.bf16.mxu1 %v5180_v14 }
 0x490   : > { %3874 = vmatpush3.bf16.msra.mxu1 %v4823_v45 }
 0x491   : > { %3875 = vmatprep.subr.bf16.mxu1 %v5180_v14 }
 0x494   : > { %3876 = vmatpush3.bf16.msra.mxu1 %v4824_v46 }
 0x495   : > { %3877 = vmatprep.subr.bf16.mxu1 %v5180_v14 }
 0x498   : > { %3878 = vmatpush3.bf16.msra.mxu1 %v4825_v47 }
 0x499   : > { %3879 = vmatprep.subr.bf16.mxu1 %v5180_v14 }
 0x49c   : > { %3880 = vmatpush3.bf16.msra.mxu1 %v4826_v48 }
 0x49d   : > { %3881 = vmatprep.subr.bf16.mxu1 %v5180_v14 }
 0x4a0   : > { %3882 = vmatpush3.bf16.msra.mxu1 %v4827_v49 }
 0x4a1   : > { %3883 = vmatprep.subr.bf16.mxu1 %v5180_v14 }
 0x4a4   : > { %3884 = vmatpush3.bf16.msra.mxu1 %v4828_v50 }
 0x4a5   : > { %3885 = vmatprep.subr.bf16.mxu1 %v5180_v14  ;;  %v4249_v14 = vpack.c.bf16 %v2047_v5, %v2046_v62  ;;  %v2315_v5 = vld [vmem:[#allocation14 + $0x98] sm:$0xff] }
 0x4a8   : > { %3886 = vmatpush3.bf16.msra.mxu1 %v4829_v51 }
 0x4a9   : > { %4242 = vmatprep.subr.bf16.mxu1 %v4241_v55 }
 0x4ab   : > { %3888 = vmatmul.mubr.bf16.vlgmr.msra.gmra.mrb[20].mxu1 %v1899_v0  ;;  %v4269_v0 = vpack.c.bf16 %v2057_v34, %v2056_v33 }
 0x4ac   : > { %4244 = vmatpush3.bf16.msra.mxu1 %v4241_v55 }
 0x4ad   : > { %4246 = vmatprep.subr.bf16.mxu1 %v4245_v60 }
 0x4b0   : > { %4248 = vmatpush3.bf16.msra.mxu1 %v4245_v60  ;;  %v2028_v60 = vld [vmem:[#allocation13 + $0x10] sm:$0xff] }
 0x4b1   : > { %4250 = vmatprep.subr.bf16.mxu1 %v4249_v14 }
 0x4b4   : > { %4252 = vmatpush3.bf16.msra.mxu1 %v4249_v14  ;;  %v4277_v14 = vpack.c.bf16 %v2029_v4, %v2028_v60 }
 0x4b5   : > { %4254 = vmatprep.subr.bf16.mxu1 %v4253_v13 }
 0x4b8   : > { %4256 = vmatpush3.bf16.msra.mxu1 %v4253_v13  ;;  %v5843_v13 = vpack.c.bf16 %v2315_v5, %v2314_v61  ;;  %v2035_v5 = vld [vmem:[#allocation13 + $0x48] sm:$0xff] }
 0x4b9   : > { %4258 = vmatprep.subr.bf16.mxu1 %v4257_v2 }
 0x4bc   : > { %4260 = vmatpush3.bf16.msra.mxu1 %v4257_v2  ;;  %v2323_v2 = vld [vmem:[#allocation14 + $0xd8] sm:$0xff] }
 0x4bd   : > { %4262 = vmatprep.subr.bf16.mxu1 %v4261_v23 }
 0x4c0   : > { %4264 = vmatpush3.bf16.msra.mxu1 %v4261_v23 }
 0x4c1   : > { %4266 = vmatprep.subr.bf16.mxu1 %v4265_v29 }
 0x4c4   : > { %4268 = vmatpush3.bf16.msra.mxu1 %v4265_v29 }
 0x4c5   : > { %4270 = vmatprep.subr.bf16.mxu1 %v4269_v0 }
 0x4c8   : > { %4272 = vmatpush3.bf16.msra.mxu1 %v4269_v0  ;;  %v2316_v0 = vld [vmem:[#allocation14 + $0xa0] sm:$0xff] }
 0x4c9   : > { %4274 = vmatprep.subr.bf16.mxu1 %v5830_v18 }
 0x53e   : > { %v1782_v42 = vpop.f32.mrb[12].mxu1 }
 0x53f   : > { %v3849_v43 = vpop.f32.mrb[13].mxu1 }
 0x540   : > { %v1785_v44 = vpop.f32.mrb[14].mxu1 }
 0x541   : > { %v3850_v45 = vpop.f32.mrb[15].mxu1 }
 0x55e   : > { %v1871_v46 = vpop.f32.mrb[16].mxu1 }
 0x55f   : > { %v1872_v47 = vadd.f32 %v1871_v46, %v1782_v42  ;;  %v3869_v48 = vpop.f32.mrb[17].mxu1  ;;  %v4345_v46 = vpack.c.bf16 %v2317_v1, %v2316_v0  ;;  %v2416_v0 = vld [vmem:[#allocation13 + $0x108] sm:$0xff] }
 0x560   : > { %v1874_v49 = vpop.f32.mrb[18].mxu1  ;;  %v2033_v48 = vld [vmem:[#allocation13 + $0x38] sm:$0xff] }
 0x561   : > { %v1875_v50 = vadd.f32 %v1874_v49, %v1785_v44  ;;  %v3870_v51 = vpop.f32.mrb[19].mxu1 }
 0x57e   : > { %v1983_v53 = vpop.f32.mrb[20].mxu1 }
 0x57f   : > { %v1990_v54 = vadd.f32 %v1983_v53, %v1872_v47  ;;  %v3889_v55 = vpop.f32.mrb[21].mxu1  ;;  %v2032_v47 = vld [vmem:[#allocation13 + $0x30] sm:$0xff] }
 0x580   : > { %v1986_v56 = vpop.f32.mrb[22].mxu1  ;;  %v2319_v55 = vld [vmem:[#allocation14 + $0xb8] sm:$0xff]  ;;  %v4285_v60 = vpack.c.bf16 %v2033_v48, %v2032_v47  ;;  %v2423_v48 = vld [vmem:[#allocation13 + $0x140] sm:$0xff] }
 0x581   : > { %v1998_v57 = vadd.f32 %v3351_v52, %v1990_v54  ;;  %v1991_v58 = vadd.f32 %v1986_v56, %v1875_v50  ;;  %v3890_v59 = vpop.f32.mrb[23].mxu1  ;;  %v2318_v54 = vld [vmem:[#allocation14 + $0xb0] sm:$0xff] }
 0x583   : > { %v2003_v62 = vrot.slane %v1998_v57, 6  ;;  %v1999_v63 = vadd.f32 %v3351_v52, %v1991_v58  ;;  %v2012_v8 = vrot.slane %v1998_v57, 1 }
 0x585   : > { %v2004_v9 = vrot.slane %v1999_v63, 6  ;;  %v2013_v10 = vrot.slane %v1999_v63, 1  ;;  %v5840_v11 = vsel %vm2002_vm7, 0.0, %v2003_v62  ;;  %v2034_v63 = vld [vmem:[#allocation13 + $0x40] sm:$0xff] }
 0x586   : > { %v2227_v12 = vrot.slane %v5840_v11, 1  ;;  %v2432_v15 = vrot.slane %v5840_v11, 2  ;;  %v2635_v27 = vrot.slane %v5840_v11, 3 }
 0x587   : > { %v5849_v16 = vsel %vm2002_vm7, %v2004_v9, 0.0  ;;  %v2014_v17 = vsel %vm807_vm5, %v2012_v8, %v2013_v10  ;;  %v2016_v19 = vsel %vm807_vm5, %v2013_v10, 0.0  ;;  %v5859_v20 = vsel %vm2002_vm7, %v2003_v62, %v2004_v9 }
 0x588   : > { %v2018_v21 = vrot.slane %v2014_v17, 6  ;;  %v2019_v22 = vrot.slane %v2016_v19, 6  ;;  %v2228_v23 = vrot.slane %v5859_v20, 1  ;;  %v2230_v24 = vrot.slane %v5849_v16, 1  ;;  %v2322_v19 = vld [vmem:[#allocation14 + $0xd0] sm:$0xff] }
 0x589   : > { %v2433_v25 = vrot.slane %v5859_v20, 2  ;;  %v2435_v26 = vrot.slane %v5849_v16, 2  ;;  %v2636_v28 = vrot.slane %v5859_v20, 3  ;;  %v2839_v57 = vrot.slane %v5859_v20, 4 }
 0x58a   : > { %v2025_v29 = vsel %vm2002_vm7, %v2019_v22, 0.0  ;;  %3923 = vmatprep.mubr.msk.f32.mxu1 %vm5854_vm10, %v2018_v21  ;;  %v2020_v30 = vsel %vm2002_vm7, %v2018_v21, %v2019_v22  ;;  %v2229_v31 = vsel %vm807_vm5, %v2227_v12, %v2228_v23  ;;  %v2231_v32 = vsel %vm807_vm5, %v2228_v23, %v2230_v24  ;;  %v2321_v12 = vld [vmem:[#allocation14 + $0xc8] sm:$0xff]  ;;  %v2038_v22 = vld [vmem:[#allocation13 + $0x60] sm:$0xff] }
 0x58b   : > { %3924 = vmatmul.mubr.f32.vlgmr.msra.gmra.mrb[24].mxu1 %v2020_v30  ;;  %3993 = vmatprep.mubr.f32.mxu0 %v2229_v31  ;;  %v2024_v33 = vsel %vm2002_vm7, 0.0, %v2018_v21  ;;  %v2331_v34 = vrot.slane %v2020_v30, 1  ;;  %v2333_v35 = vrot.slane %v2025_v29, 1  ;;  %v5875_v36 = vsel %vm2431_vm8, %v2432_v15, %v2433_v25  ;;  %v2036_v15 = vld [vmem:[#allocation13 + $0x50] sm:$0xff]  ;;  %v2039_v23 = vld [vmem:[#allocation13 + $0x68] sm:$0xff]  ;;  %v2327_v31 = vld [vmem:[#allocation14 + $0xf8] sm:$0xff] }
 0x58c   : > { %4276 = vmatpush3.bf16.msra.mxu1 %v5830_v18  ;;  %3958 = vmatprep.mubr.msk.f32.mxu1 %vm5854_vm10, %v2003_v62  ;;  %v2330_v37 = vrot.slane %v2024_v33, 1  ;;  %v5881_v38 = vsel %vm2431_vm8, %v2433_v25, %v2435_v26  ;;  %v2533_v39 = vrot.slane %v2024_v33, 2  ;;  %v2534_v40 = vrot.slane %v2020_v30, 2  ;;  %v2325_v25 = vld [vmem:[#allocation14 + $0xe8] sm:$0xff] }
 0x58d   : > { %3994 = vmatmul.mubr.f32.vlgmr.msra.gmra.mrb[0].mxu0 %v2231_v32  ;;  %4278 = vmatprep.subr.bf16.mxu1 %v4277_v14  ;;  %v5884_v42 = vsel %vm807_vm5, %v2331_v34, %v2333_v35  ;;  %v2536_v43 = vrot.slane %v2025_v29, 2  ;;  %v5887_v44 = vsel %vm2634_vm9, %v2635_v27, %v2636_v28  ;;  %v2638_v18 = vrot.slane %v5849_v16, 3  ;;  %v2040_v27 = vld [vmem:[#allocation13 + $0x70] sm:$0xff] }
 0x58e   : > { %4340 = vmatpush3.bf16.msra.mxu0 %v5833_v41  ;;  %v2332_v45 = vsel %vm807_vm5, %v2330_v37, %v2331_v34  ;;  %v5893_v49 = vsel %vm2431_vm8, %v2533_v39, %v2534_v40  ;;  %v2736_v50 = vrot.slane %v2024_v33, 3  ;;  %v2737_v53 = vrot.slane %v2020_v30, 3  ;;  %v2415_v34 = vld [vmem:[#allocation13 + $0x100] sm:$0xff]  ;;  %v2417_v35 = vld [vmem:[#allocation13 + $0x110] sm:$0xff]  ;;  %v2418_v37 = vld [vmem:[#allocation13 + $0x118] sm:$0xff] }
 0x58f   : > { %4028 = vmatprep.mubr.f32.mxu0 %v2332_v45  ;;  %4342 = vmatprep.subr.bf16.mxu0 %v5843_v13  ;;  %v5897_v51 = vsel %vm2431_vm8, %v2534_v40, %v2536_v43  ;;  %v5900_v52 = vsel %vm2634_vm9, %v2636_v28, %v2638_v18  ;;  %v2838_v41 = vrot.slane %v5840_v11, 4  ;;  %v2739_v56 = vrot.slane %v2025_v29, 3  ;;  %v2320_v11 = vld [vmem:[#allocation14 + $0xc0] sm:$0xff]  ;;  %v2041_v28 = vld [vmem:[#allocation13 + $0x78] sm:$0xff]  ;;  %v2420_v43 = vld [vmem:[#allocation13 + $0x128] sm:$0xff] }
 0x590   : > { %4280 = vmatpush3.bf16.msra.mxu1 %v4277_v14  ;;  %v2841_v58 = vrot.slane %v5849_v16, 4  ;;  %v2939_v59 = vrot.slane %v2024_v33, 4  ;;  %v5907_v4 = vsel %vm2634_vm9, %v2736_v50, %v2737_v53  ;;  %v2940_v61 = vrot.slane %v2020_v30, 4  ;;  %v2037_v16 = vld [vmem:[#allocation13 + $0x58] sm:$0xff]  ;;  %v2326_v30 = vld [vmem:[#allocation14 + $0xf0] sm:$0xff]  ;;  %v2419_v40 = vld [vmem:[#allocation13 + $0x120] sm:$0xff] }
 0x591   : > { %4282 = vmatprep.subr.bf16.mxu1 %v5845_v3  ;;  %v2942_v62 = vrot.slane %v2025_v29, 4  ;;  %v5911_v6 = vsel %vm2634_vm9, %v2737_v53, %v2739_v56  ;;  %v5914_v7 = vsel %vm2837_vm11, %v2838_v41, %v2839_v57  ;;  %v4349_v8 = vpack.c.bf16 %v2319_v55, %v2318_v54  ;;  %v2421_v45 = vld [vmem:[#allocation13 + $0x130] sm:$0xff]  ;;  %v2424_v50 = vld [vmem:[#allocation13 + $0x148] sm:$0xff]  ;;  %v2426_v41 = vld [vmem:[#allocation13 + $0x158] sm:$0xff] }
 0x592   : > { %4344 = vmatpush3.bf16.msra.mxu0 %v5843_v13  ;;  %v5917_v14 = vsel %vm2837_vm11, %v2839_v57, %v2841_v58  ;;  %v5920_v9 = vsel %vm2837_vm11, %v2939_v59, %v2940_v61  ;;  %v4289_v13 = vpack.c.bf16 %v2035_v5, %v2034_v63  ;;  %v4353_v17 = vpack.c.bf16 %v2321_v12, %v2320_v11  ;;  %v2425_v53 = vld [vmem:[#allocation13 + $0x150] sm:$0xff]  ;;  %v2427_v54 = vld [vmem:[#allocation13 + $0x160] sm:$0xff]  ;;  %v2428_v55 = vld [vmem:[#allocation13 + $0x168] sm:$0xff] }
 0x593   : > { %4346 = vmatprep.subr.bf16.mxu0 %v4345_v46  ;;  %v5923_v10 = vsel %vm2837_vm11, %v2940_v61, %v2942_v62  ;;  %v4293_v21 = vpack.c.bf16 %v2037_v16, %v2036_v15  ;;  %v4357_v24 = vpack.c.bf16 %v2323_v2, %v2322_v19  ;;  %v4297_v26 = vpack.c.bf16 %v2039_v23, %v2038_v22  ;;  %v2429_v56 = vld [vmem:[#allocation13 + $0x170] sm:$0xff]  ;;  %v2430_v57 = vld [vmem:[#allocation13 + $0x178] sm:$0xff]  ;;  %v2517_v59 = vld [vmem:[#allocation14 + $0x100] sm:$0xff] }
 0x594   : > { %4284 = vmatpush3.bf16.msra.mxu1 %v5845_v3  ;;  %v2324_v3 = vld [vmem:[#allocation14 + $0xe0] sm:$0xff]  ;;  %v4301_v32 = vpack.c.bf16 %v2041_v28, %v2040_v27  ;;  %v4365_v33 = vpack.c.bf16 %v2327_v31, %v2326_v30  ;;  %v4369_v1 = vpack.c.bf16 %v2416_v0, %v2415_v34  ;;  %v4373_v39 = vpack.c.bf16 %v2418_v37, %v2417_v35  ;;  %v2519_v62 = vld [vmem:[#allocation14 + $0x110] sm:$0xff]  ;;  %v2520_v63 = vld [vmem:[#allocation14 + $0x118] sm:$0xff] }
 0x595   : > { %4286 = vmatprep.subr.bf16.mxu1 %v4285_v60  ;;  %v4361_v29 = vpack.c.bf16 %v2325_v25, %v2324_v3  ;;  %v4377_v18 = vpack.c.bf16 %v2420_v43, %v2419_v40  ;;  %v4397_v58 = vpack.c.bf16 %v2430_v57, %v2429_v56  ;;  %v4405_v5 = vpack.c.bf16 %v2520_v63, %v2519_v62  ;;  %v2522_v11 = vld [vmem:[#allocation14 + $0x128] sm:$0xff]  ;;  %v2524_v15 = vld [vmem:[#allocation14 + $0x138] sm:$0xff]  ;;  %v2529_v23 = vld [vmem:[#allocation14 + $0x160] sm:$0xff] }
 0x596   : > { %4348 = vmatpush3.bf16.msra.mxu0 %v4345_v46  ;;  %v2422_v46 = vld [vmem:[#allocation13 + $0x138] sm:$0xff]  ;;  %v2526_v19 = vld [vmem:[#allocation14 + $0x148] sm:$0xff]  ;;  %v2531_v3 = vld [vmem:[#allocation14 + $0x170] sm:$0xff] }
 0x597   : > { %4350 = vmatprep.subr.bf16.mxu0 %v4349_v8  ;;  %v4381_v47 = vpack.c.bf16 %v2422_v46, %v2421_v45  ;;  %v2528_v22 = vld [vmem:[#allocation14 + $0x158] sm:$0xff]  ;;  %v2618_v27 = vld [vmem:[#allocation13 + $0x180] sm:$0xff]  ;;  %v2619_v28 = vld [vmem:[#allocation13 + $0x188] sm:$0xff] }
 0x598   : > { %4288 = vmatpush3.bf16.msra.mxu1 %v4285_v60  ;;  %v2518_v60 = vld [vmem:[#allocation14 + $0x108] sm:$0xff]  ;;  %v2532_v25 = vld [vmem:[#allocation14 + $0x178] sm:$0xff]  ;;  %v2620_v30 = vld [vmem:[#allocation13 + $0x190] sm:$0xff] }
 0x599   : > { %4290 = vmatprep.subr.bf16.mxu1 %v4289_v13  ;;  %v4401_v61 = vpack.c.bf16 %v2518_v60, %v2517_v59  ;;  %v2621_v31 = vld [vmem:[#allocation13 + $0x198] sm:$0xff]  ;;  %v2623_v34 = vld [vmem:[#allocation13 + $0x1a8] sm:$0xff]  ;;  %v2630_v46 = vld [vmem:[#allocation13 + $0x1e0] sm:$0xff] }
 0x59a   : > { %4352 = vmatpush3.bf16.msra.mxu0 %v4349_v8  ;;  %v2521_v8 = vld [vmem:[#allocation14 + $0x120] sm:$0xff]  ;;  %v2625_v35 = vld [vmem:[#allocation13 + $0x1b8] sm:$0xff]  ;;  %v2627_v40 = vld [vmem:[#allocation13 + $0x1c8] sm:$0xff] }
 0x59b   : > { %4354 = vmatprep.subr.bf16.mxu0 %v4353_v17  ;;  %v4409_v12 = vpack.c.bf16 %v2522_v11, %v2521_v8  ;;  %v2629_v45 = vld [vmem:[#allocation13 + $0x1d8] sm:$0xff]  ;;  %v2724_v56 = vld [vmem:[#allocation14 + $0x1a0] sm:$0xff]  ;;  %v2725_v57 = vld [vmem:[#allocation14 + $0x1a8] sm:$0xff] }
 0x59c   : > { %4292 = vmatpush3.bf16.msra.mxu1 %v4289_v13  ;;  %v2523_v13 = vld [vmem:[#allocation14 + $0x130] sm:$0xff]  ;;  %v2727_v60 = vld [vmem:[#allocation14 + $0x1b8] sm:$0xff]  ;;  %v2728_v62 = vld [vmem:[#allocation14 + $0x1c0] sm:$0xff] }
 0x59d   : > { %4294 = vmatprep.subr.bf16.mxu1 %v4293_v21  ;;  %v4413_v16 = vpack.c.bf16 %v2524_v15, %v2523_v13  ;;  %v2726_v59 = vld [vmem:[#allocation14 + $0x1b0] sm:$0xff]  ;;  %v2729_v63 = vld [vmem:[#allocation14 + $0x1c8] sm:$0xff]  ;;  %v2731_v11 = vld [vmem:[#allocation14 + $0x1d8] sm:$0xff] }
 0x59e   : > { %4356 = vmatpush3.bf16.msra.mxu0 %v4353_v17  ;;  %v2525_v17 = vld [vmem:[#allocation14 + $0x140] sm:$0xff]  ;;  %v2730_v8 = vld [vmem:[#allocation14 + $0x1d0] sm:$0xff]  ;;  %v2733_v13 = vld [vmem:[#allocation14 + $0x1e8] sm:$0xff] }
 0x59f   : > { %4358 = vmatprep.subr.bf16.mxu0 %v4357_v24  ;;  %v4417_v2 = vpack.c.bf16 %v2526_v19, %v2525_v17  ;;  %v2734_v15 = vld [vmem:[#allocation14 + $0x1f0] sm:$0xff]  ;;  %v2821_v19 = vld [vmem:[#allocation13 + $0x200] sm:$0xff] }
 0x5a0   : > { %4296 = vmatpush3.bf16.msra.mxu1 %v4293_v21  ;;  %v2527_v21 = vld [vmem:[#allocation14 + $0x150] sm:$0xff] }
 0x5a1   : > { %4298 = vmatprep.subr.bf16.mxu1 %v4297_v26 }
 0x5a2   : > { %4360 = vmatpush3.bf16.msra.mxu0 %v4357_v24  ;;  %v2530_v24 = vld [vmem:[#allocation14 + $0x168] sm:$0xff] }
 0x5a3   : > { %4362 = vmatprep.subr.bf16.mxu0 %v4361_v29 }
 0x5a4   : > { %4300 = vmatpush3.bf16.msra.mxu1 %v4297_v26  ;;  %v4429_v26 = vpack.c.bf16 %v2532_v25, %v2531_v3  ;;  %v2827_v25 = vld [vmem:[#allocation13 + $0x230] sm:$0xff] }
 0x5a5   : > { %4302 = vmatprep.subr.bf16.mxu1 %v4301_v32 }
 0x5a6   : > { %4364 = vmatpush3.bf16.msra.mxu0 %v4361_v29  ;;  %v4433_v29 = vpack.c.bf16 %v2619_v28, %v2618_v27  ;;  %v2829_v28 = vld [vmem:[#allocation13 + $0x240] sm:$0xff] }
 0x5a7   : > { %4366 = vmatprep.subr.bf16.mxu0 %v4365_v33 }
 0x5a8   : > { %4304 = vmatpush3.bf16.msra.mxu1 %v4301_v32  ;;  %v4437_v32 = vpack.c.bf16 %v2621_v31, %v2620_v30  ;;  %v2831_v31 = vld [vmem:[#allocation13 + $0x250] sm:$0xff] }
 0x5aa   : > { %4368 = vmatpush3.bf16.msra.mxu0 %v4365_v33  ;;  %v2622_v33 = vld [vmem:[#allocation13 + $0x1a0] sm:$0xff] }
 0x5ab   : > { %3959 = vmatmul.mubr.f32.vlgmr.msra.gmra.mrb[24].mxu1 %v5859_v20  ;;  %4370 = vmatprep.subr.bf16.mxu0 %v4369_v1  ;;  %v4385_v20 = vpack.c.bf16 %v2424_v50, %v2423_v48  ;;  %v4441_v0 = vpack.c.bf16 %v2623_v34, %v2622_v33  ;;  %v2632_v48 = vld [vmem:[#allocation13 + $0x1f0] sm:$0xff]  ;;  %v2633_v50 = vld [vmem:[#allocation13 + $0x1f8] sm:$0xff]  ;;  %v2833_v33 = vld [vmem:[#allocation13 + $0x260] sm:$0xff] }
 0x5ac   : > { %v2834_v34 = vld [vmem:[#allocation13 + $0x268] sm:$0xff] }
 0x5ad   : > { %4029 = vmatmul.mubr.f32.vlgmr.msra.gmra.mrb[0].mxu0 %v5884_v42  ;;  %v4389_v42 = vpack.c.bf16 %v2426_v41, %v2425_v53  ;;  %v2720_v53 = vld [vmem:[#allocation14 + $0x180] sm:$0xff]  ;;  %v2721_v41 = vld [vmem:[#allocation14 + $0x188] sm:$0xff] }
 0x5ae   : > { %4372 = vmatpush3.bf16.msra.mxu0 %v4369_v1  ;;  %4063 = vmatprep.mubr.f32.mxu0 %v5875_v36  ;;  %v4393_v36 = vpack.c.bf16 %v2428_v55, %v2427_v54  ;;  %v2624_v1 = vld [vmem:[#allocation13 + $0x1b0] sm:$0xff]  ;;  %v2723_v55 = vld [vmem:[#allocation14 + $0x198] sm:$0xff] }
 0x5af   : > { %4374 = vmatprep.subr.bf16.mxu0 %v4373_v39  ;;  %v4445_v37 = vpack.c.bf16 %v2625_v35, %v2624_v1  ;;  %v2722_v54 = vld [vmem:[#allocation14 + $0x190] sm:$0xff]  ;;  %v2836_v1 = vld [vmem:[#allocation13 + $0x278] sm:$0xff] }
 0x5b2   : > { %4376 = vmatpush3.bf16.msra.mxu0 %v4373_v39  ;;  %v2626_v39 = vld [vmem:[#allocation13 + $0x1c0] sm:$0xff] }
 0x5b3   : > { %4378 = vmatprep.subr.bf16.mxu0 %v4377_v18  ;;  %v4449_v43 = vpack.c.bf16 %v2627_v40, %v2626_v39  ;;  %v2924_v39 = vld [vmem:[#allocation14 + $0x208] sm:$0xff] }
 0x5b6   : > { %4380 = vmatpush3.bf16.msra.mxu0 %v4377_v18  ;;  %v2628_v18 = vld [vmem:[#allocation13 + $0x1d0] sm:$0xff] }
 0x5b7   : > { %4382 = vmatprep.subr.bf16.mxu0 %v4381_v47 }
 0x5ba   : > { %4384 = vmatpush3.bf16.msra.mxu0 %v4381_v47  ;;  %v2631_v47 = vld [vmem:[#allocation13 + $0x1e8] sm:$0xff] }
 0x5bb   : > { %4386 = vmatprep.subr.bf16.mxu0 %v4385_v20 }
 0x5be   : > { %4388 = vmatpush3.bf16.msra.mxu0 %v4385_v20  ;;  %v4461_v20 = vpack.c.bf16 %v2633_v50, %v2632_v48  ;;  %v2930_v48 = vld [vmem:[#allocation14 + $0x238] sm:$0xff] }
 0x5bf   : > { %4390 = vmatprep.subr.bf16.mxu0 %v4389_v42 }
 0x5c2   : > { %4392 = vmatpush3.bf16.msra.mxu0 %v4389_v42  ;;  %v4465_v42 = vpack.c.bf16 %v2721_v41, %v2720_v53  ;;  %v2932_v53 = vld [vmem:[#allocation14 + $0x248] sm:$0xff] }
 0x5c3   : > { %4394 = vmatprep.subr.bf16.mxu0 %v4393_v36 }
 0x5c6   : > { %4396 = vmatpush3.bf16.msra.mxu0 %v4393_v36  ;;  %v4469_v36 = vpack.c.bf16 %v2723_v55, %v2722_v54  ;;  %v2934_v54 = vld [vmem:[#allocation14 + $0x258] sm:$0xff]  ;;  %v2935_v55 = vld [vmem:[#allocation14 + $0x260] sm:$0xff] }
 0x5c7   : > { %4398 = vmatprep.subr.bf16.mxu0 %v4397_v58 }
 0x5ca   : > { %4400 = vmatpush3.bf16.msra.mxu0 %v4397_v58  ;;  %v4473_v58 = vpack.c.bf16 %v2725_v57, %v2724_v56  ;;  %v2937_v56 = vld [vmem:[#allocation14 + $0x270] sm:$0xff]  ;;  %v2938_v57 = vld [vmem:[#allocation14 + $0x278] sm:$0xff] }
 0x5cb   : > { %4402 = vmatprep.subr.bf16.mxu0 %v4401_v61 }
 0x5cd   : > { %4064 = vmatmul.mubr.f32.vlgmr.msra.gmra.mrb[0].mxu0 %v5881_v38  ;;  %v4421_v38 = vpack.c.bf16 %v2528_v22, %v2527_v21  ;;  %v2823_v22 = vld [vmem:[#allocation13 + $0x210] sm:$0xff] }
 0x5ce   : > { %4404 = vmatpush3.bf16.msra.mxu0 %v4401_v61  ;;  %4098 = vmatprep.mubr.f32.mxu0 %v5893_v49  ;;  %v4425_v49 = vpack.c.bf16 %v2530_v24, %v2529_v23  ;;  %v4477_v61 = vpack.c.bf16 %v2727_v60, %v2726_v59  ;;  %v2825_v24 = vld [vmem:[#allocation13 + $0x220] sm:$0xff] }
 0x5cf   : > { %4406 = vmatprep.subr.bf16.mxu0 %v4405_v5 }
 0x5d2   : > { %4408 = vmatpush3.bf16.msra.mxu0 %v4405_v5  ;;  %v4481_v5 = vpack.c.bf16 %v2729_v63, %v2728_v62 }
 0x5d3   : > { %4410 = vmatprep.subr.bf16.mxu0 %v4409_v12 }
 0x5d6   : > { %4412 = vmatpush3.bf16.msra.mxu0 %v4409_v12  ;;  %v2732_v12 = vld [vmem:[#allocation14 + $0x1e0] sm:$0xff] }
 0x5d7   : > { %4414 = vmatprep.subr.bf16.mxu0 %v4413_v16 }
 0x5da   : > { %4416 = vmatpush3.bf16.msra.mxu0 %v4413_v16  ;;  %v2735_v16 = vld [vmem:[#allocation14 + $0x1f8] sm:$0xff] }
 0x5db   : > { %4418 = vmatprep.subr.bf16.mxu0 %v4417_v2  ;;  %v4493_v17 = vpack.c.bf16 %v2735_v16, %v2734_v15 }
 0x5de   : > { %4420 = vmatpush3.bf16.msra.mxu0 %v4417_v2  ;;  %v2822_v2 = vld [vmem:[#allocation13 + $0x208] sm:$0xff] }
 0x5df   : > { %4422 = vmatprep.subr.bf16.mxu0 %v4421_v38  ;;  %v4497_v21 = vpack.c.bf16 %v2822_v2, %v2821_v19 }
 0x5e2   : > { %4424 = vmatpush3.bf16.msra.mxu0 %v4421_v38  ;;  %v2824_v38 = vld [vmem:[#allocation13 + $0x218] sm:$0xff] }
 0x5e3   : > { %4426 = vmatprep.subr.bf16.mxu0 %v4425_v49  ;;  %v4501_v23 = vpack.c.bf16 %v2824_v38, %v2823_v22 }
 0x5e6   : > { %4428 = vmatpush3.bf16.msra.mxu0 %v4425_v49  ;;  %v2826_v49 = vld [vmem:[#allocation13 + $0x228] sm:$0xff] }
 0x5e7   : > { %4430 = vmatprep.subr.bf16.mxu0 %v4429_v26  ;;  %v4505_v3 = vpack.c.bf16 %v2826_v49, %v2825_v24 }
 0x5ea   : > { %4432 = vmatpush3.bf16.msra.mxu0 %v4429_v26  ;;  %v2828_v26 = vld [vmem:[#allocation13 + $0x238] sm:$0xff] }
 0x5eb   : > { %4434 = vmatprep.subr.bf16.mxu0 %v4433_v29  ;;  %v4509_v27 = vpack.c.bf16 %v2828_v26, %v2827_v25 }
 0x5ed   : > { %4099 = vmatmul.mubr.f32.vlgmr.msra.gmra.mrb[0].mxu0 %v5897_v51  ;;  %v4453_v51 = vpack.c.bf16 %v2629_v45, %v2628_v18  ;;  %v2926_v18 = vld [vmem:[#allocation14 + $0x218] sm:$0xff] }
 0x5ee   : > { %4436 = vmatpush3.bf16.msra.mxu0 %v4433_v29  ;;  %4133 = vmatprep.mubr.f32.mxu0 %v5887_v44  ;;  %v4457_v44 = vpack.c.bf16 %v2631_v47, %v2630_v46  ;;  %v2830_v29 = vld [vmem:[#allocation13 + $0x248] sm:$0xff] }
 0x5ef   : > { %4438 = vmatprep.subr.bf16.mxu0 %v4437_v32  ;;  %v4513_v30 = vpack.c.bf16 %v2830_v29, %v2829_v28  ;;  %v2928_v46 = vld [vmem:[#allocation14 + $0x228] sm:$0xff] }
 0x5f2   : > { %4440 = vmatpush3.bf16.msra.mxu0 %v4437_v32  ;;  %v2832_v32 = vld [vmem:[#allocation13 + $0x258] sm:$0xff] }
 0x5f3   : > { %4442 = vmatprep.subr.bf16.mxu0 %v4441_v0 }
 0x5f6   : > { %4444 = vmatpush3.bf16.msra.mxu0 %v4441_v0  ;;  %v2835_v0 = vld [vmem:[#allocation13 + $0x270] sm:$0xff] }
 0x5f7   : > { %4446 = vmatprep.subr.bf16.mxu0 %v4445_v37  ;;  %v4525_v35 = vpack.c.bf16 %v2836_v1, %v2835_v0 }
 0x5fa   : > { %4448 = vmatpush3.bf16.msra.mxu0 %v4445_v37  ;;  %v2923_v37 = vld [vmem:[#allocation14 + $0x200] sm:$0xff] }
 0x5fb   : > { %4450 = vmatprep.subr.bf16.mxu0 %v4449_v43  ;;  %v4529_v40 = vpack.c.bf16 %v2924_v39, %v2923_v37 }
 0x5fe   : > { %4452 = vmatpush3.bf16.msra.mxu0 %v4449_v43  ;;  %v2925_v43 = vld [vmem:[#allocation14 + $0x210] sm:$0xff] }
 0x5ff   : > { %4454 = vmatprep.subr.bf16.mxu0 %v4453_v51  ;;  %v4533_v45 = vpack.c.bf16 %v2926_v18, %v2925_v43 }
 0x602   : > { %4456 = vmatpush3.bf16.msra.mxu0 %v4453_v51  ;;  %v2927_v51 = vld [vmem:[#allocation14 + $0x220] sm:$0xff] }
 0x603   : > { %4458 = vmatprep.subr.bf16.mxu0 %v4457_v44  ;;  %v4537_v47 = vpack.c.bf16 %v2928_v46, %v2927_v51 }
 0x606   : > { %4460 = vmatpush3.bf16.msra.mxu0 %v4457_v44  ;;  %v2929_v44 = vld [vmem:[#allocation14 + $0x230] sm:$0xff] }
 0x607   : > { %4462 = vmatprep.subr.bf16.mxu0 %v4461_v20  ;;  %v4541_v50 = vpack.c.bf16 %v2930_v48, %v2929_v44 }
 0x60a   : > { %4464 = vmatpush3.bf16.msra.mxu0 %v4461_v20  ;;  %v2931_v20 = vld [vmem:[#allocation14 + $0x240] sm:$0xff] }
 0x60b   : > { %4466 = vmatprep.subr.bf16.mxu0 %v4465_v42  ;;  %v4545_v41 = vpack.c.bf16 %v2932_v53, %v2931_v20 }
 0x60d   : > { %4134 = vmatmul.mubr.f32.vlgmr.msra.gmra.mrb[0].mxu0 %v5900_v52  ;;  %v4485_v52 = vpack.c.bf16 %v2731_v11, %v2730_v8  ;;  %v3055_v8 = vld [vmem:[%s6049_s17] sm:$0x3] }
 0x60e   : > { %4468 = vmatpush3.bf16.msra.mxu0 %v4465_v42  ;;  %4168 = vmatprep.mubr.f32.mxu0 %v5907_v4  ;;  %v4489_v4 = vpack.c.bf16 %v2733_v13, %v2732_v12  ;;  %v2933_v42 = vld [vmem:[#allocation14 + $0x250] sm:$0xff] }
 0x60f   : > { %4470 = vmatprep.subr.bf16.mxu0 %v4469_v36 }
 0x612   : > { %4472 = vmatpush3.bf16.msra.mxu0 %v4469_v36  ;;  %v2936_v36 = vld [vmem:[#allocation14 + $0x268] sm:$0xff] }
 0x613   : > { %4474 = vmatprep.subr.bf16.mxu0 %v4473_v58 }
 0x616   : > { %4476 = vmatpush3.bf16.msra.mxu0 %v4473_v58  ;;  %v4557_v58 = vpack.c.bf16 %v2938_v57, %v2937_v56 }
 0x617   : > { %4478 = vmatprep.subr.bf16.mxu0 %v4477_v61 }
 0x61a   : > { %4480 = vmatpush3.bf16.msra.mxu0 %v4477_v61 }
 0x61b   : > { %4482 = vmatprep.subr.bf16.mxu0 %v4481_v5 }
 0x61e   : > { %4484 = vmatpush3.bf16.msra.mxu0 %v4481_v5 }
 0x61f   : > { %4486 = vmatprep.subr.bf16.mxu0 %v4485_v52 }
 0x622   : > { %4488 = vmatpush3.bf16.msra.mxu0 %v4485_v52 }
 0x623   : > { %4490 = vmatprep.subr.bf16.mxu0 %v4489_v4 }
 0x626   : > { %4492 = vmatpush3.bf16.msra.mxu0 %v4489_v4 }
 0x627   : > { %4494 = vmatprep.subr.bf16.mxu0 %v4493_v17 }
 0x62a   : > { %4496 = vmatpush3.bf16.msra.mxu0 %v4493_v17 }
 0x62b   : > { %4498 = vmatprep.subr.bf16.mxu0 %v4497_v21 }
 0x62d   : > { %4169 = vmatmul.mubr.f32.vlgmr.msra.gmra.mrb[0].mxu0 %v5911_v6  ;;  %v4517_v6 = vpack.c.bf16 %v2832_v32, %v2831_v31 }
 0x62e   : > { %4500 = vmatpush3.bf16.msra.mxu0 %v4497_v21  ;;  %4203 = vmatprep.mubr.f32.mxu0 %v5914_v7  ;;  %v4521_v7 = vpack.c.bf16 %v2834_v34, %v2833_v33 }
 0x62f   : > { %4502 = vmatprep.subr.bf16.mxu0 %v4501_v23 }
 0x632   : > { %4504 = vmatpush3.bf16.msra.mxu0 %v4501_v23 }
 0x633   : > { %4506 = vmatprep.subr.bf16.mxu0 %v4505_v3 }
 0x636   : > { %4508 = vmatpush3.bf16.msra.mxu0 %v4505_v3 }
 0x637   : > { %4510 = vmatprep.subr.bf16.mxu0 %v4509_v27 }
 0x63a   : > { %4512 = vmatpush3.bf16.msra.mxu0 %v4509_v27 }
 0x63b   : > { %4514 = vmatprep.subr.bf16.mxu0 %v4513_v30 }
 0x63e   : > { %4516 = vmatpush3.bf16.msra.mxu0 %v4513_v30 }
 0x63f   : > { %4518 = vmatprep.subr.bf16.mxu0 %v4517_v6 }
 0x642   : > { %4520 = vmatpush3.bf16.msra.mxu0 %v4517_v6 }
 0x643   : > { %4522 = vmatprep.subr.bf16.mxu0 %v4521_v7 }
 0x646   : > { %4524 = vmatpush3.bf16.msra.mxu0 %v4521_v7 }
 0x647   : > { %4526 = vmatprep.subr.bf16.mxu0 %v4525_v35 }
 0x64a   : > { %4528 = vmatpush3.bf16.msra.mxu0 %v4525_v35 }
 0x64b   : > { %4530 = vmatprep.subr.bf16.mxu0 %v4529_v40 }
 0x64d   : > { %4204 = vmatmul.mubr.f32.vlgmr.msra.gmra.mrb[0].mxu0 %v5917_v14  ;;  %v4549_v14 = vpack.c.bf16 %v2934_v54, %v2933_v42 }
 0x64e   : > { %4532 = vmatpush3.bf16.msra.mxu0 %v4529_v40  ;;  %4238 = vmatprep.mubr.f32.mxu0 %v5920_v9  ;;  %v4553_v9 = vpack.c.bf16 %v2936_v36, %v2935_v55 }
 0x64f   : > { %4534 = vmatprep.subr.bf16.mxu0 %v4533_v45 }
 0x652   : > { %4536 = vmatpush3.bf16.msra.mxu0 %v4533_v45 }
 0x653   : > { %4538 = vmatprep.subr.bf16.mxu0 %v4537_v47 }
 0x656   : > { %4540 = vmatpush3.bf16.msra.mxu0 %v4537_v47 }
 0x657   : > { %4542 = vmatprep.subr.bf16.mxu0 %v4541_v50 }
 0x65a   : > { %4544 = vmatpush3.bf16.msra.mxu0 %v4541_v50 }
 0x65b   : > { %4546 = vmatprep.subr.bf16.mxu0 %v4545_v41 }
 0x65e   : > { %4548 = vmatpush3.bf16.msra.mxu0 %v4545_v41 }
 0x65f   : > { %4550 = vmatprep.subr.bf16.mxu0 %v4549_v14 }
 0x662   : > { %4552 = vmatpush3.bf16.msra.mxu0 %v4549_v14 }
 0x663   : > { %4554 = vmatprep.subr.bf16.mxu0 %v4553_v9 }
 0x666   : > { %4556 = vmatpush3.bf16.msra.mxu0 %v4553_v9 }
 0x667   : > { %4558 = vmatprep.subr.bf16.mxu0 %v4557_v58 }
 0x66a   : > { %4560 = vmatpush3.bf16.msra.mxu0 %v4557_v58 }
 0x66d   : > { %4239 = vmatmul.mubr.f32.vlgmr.msra.gmra.mrb[0].mxu0 %v5923_v10 }
 0x67e   : > { %v3960_v59 = vpop.f32.mrb[24].mxu1 }
 0x67f   : > { %v2199_v60 = vpop.f32.mrb[25].mxu1 }
 0x740   : > { %v4240_v61 = vpop.f32.mrb[0].mxu0 }
 0x741   : > { %v4561_v62 = vadd.f32 %v4240_v61, %v3960_v59  ;;  %v3012_v63 = vpop.f32.mrb[1].mxu0 }
 0x742   : > { %v4562_v5 = vadd.f32 %v3012_v63, %v2199_v60 }
 0x744   : > { %3023 = vxpose.xlu0.b32.start [1/2] (short) (narrow) %v4562_v5, 8 }
 0x748   : > { %3024 = vxpose.xlu0.b32.end [2/2] (short) (narrow) %v4561_v62, 8 }
 0x7c4   : > { %v3039_v11 = vpop.trf.xlu0 }
 0x7c5   : > { %v3056_v10 = vadd.f32 %v3055_v8, %v3039_v11 }
 0x7c7   : > { %3058 = vst.msk [vmem:[%s5572_s26] sm:$0x3] %vm3057_vm12, %v3056_v10 }
 0x7c8   : > { %5069 = shalt.err (!%p5066_p11)
}
 0x7c9   : > { %s5070_s12 = scalar_lea.hbm %s5948_s30, 32  ;;  %s5074_s14 = scalar_lea.hbm %s6050_s28, 64 }
 0x7ca   : > { %p5071_p3 = scmp.ne.s32.totalorder %s5948_s30, %s5070_s12  ;;  %p5075_p7 = scmp.lt.u32.totalorder %s5948_s30, %s6050_s28 }
 0x7cb   : > { %p5076_p4 = scmp.lt.u32.totalorder %s5074_s14, %s5070_s12  ;;  %p5078_p1 = scmp.lt.u32.totalorder %s5070_s12, %s5948_s30 }
 0x7cc   : > { %p5072_p5 = pnand %p5071_p3, %p6051_p13 }
 0x7cd   : > { %p5077_p12 = por %p5076_p4, %p5075_p7 }
 0x7ce   : > { %p5073_p9 = pneg %p5072_p5 }
 0x7cf   : > { %p5079_p0 = por %p5078_p1, %p5077_p12 }
 0x7d1   : > { %p5080_p2 = pnand %p5079_p0, %p5073_p9 }
 0x7d3   : > { %5083 = shalt.err (!%p5080_p2)
}
 0x7d4   : > { %4609 = dma.vmem_to_hbm [thread:$0]  (%p6051_p13), %s5950_s15, 32, %s5948_s30, %s3060_s6  }
 0x7d5 PF: > { %s3085_s29 = sand.u32 1, %s5138_s21   ;;  %p6052_p8 = scmp.ne.s32.totalorder %s6026_s8, 0 }
 0x7d6   : > { %p6053_p6 = scmp.ge.s32.totalorder %s5150_s24, 2  ;;  %s3086_s27 = scalar_lea.sflag [#allocation4], %s3085_s29 }
 0x7d8   : > { %p4638_p10 = pnand %p6053_p6, %p6052_p8 }
 0x7da   : > { %5133 = dma.done.wait (!%p4638_p10), %s3086_s27, 32  }
 0x7db   : > { %5135 = vsyncadd (!%p4638_p10), %s3086_s27, 4294967264  ;;  %p29_p11 = scmp.ge.s32.totalorder %s5467_s25, 4   ;;  %s6054_s21 = smov %s5142_s22 }
 0x7dc   : > { %s6055_s22 = smov %s5146_s23  ;;  %s6056_s23 = smov %s5479_s16 }
 0x7dd   : > { %s6057_s24 = smov %s5467_s25  ;;  %31 = sbr.rel (!%p29_p11) target bundleno = 14 (0xe), region = 175 }
 0x7e4   :  { %3091 = vsyncpa [#allocation3], 1 }
 0x7e5   :  { %3093 = vsyncpa [#allocation3 + $0x1], 1 }
 0x7e6   :  { %3094 = vsyncpa [#allocation6], 1 }
 0x7e7   :  { %3095 = vsyncpa [#allocation9], 1 }
 0x7e8   :  { %3096 = vsyncpa [#allocation12], 1 }
 0x7e9   :  { %3097 = vsyncpa [#allocation15], 1 }
 0x7ea   :  { %3098 = vsyncpa [#allocation4], 1 }
 0x7eb   :  { %3100 = vsyncpa [#allocation4 + $0x1], 1 }

// kernel: tpu_custom_call.1
= control target key start
LH: loop header
LB: loop body
LE: loop exit
PB: predicated region body
PF: predicated region fallthrough
CT: control target
= control target key end

     0   :  { %s5993_s0 = inlined_call_operand.hbm [shape: f32[2,16,128], index: 0, kind: input, shape index: {}]   ;;  %s5994_s1 = inlined_call_operand.hbm [shape: bf16[8,3,128,128], index: 1, kind: input, shape index: {}]   ;;  %s5995_s2 = inlined_call_operand.hbm [shape: f32[8,1,128], index: 2, kind: input, shape index: {}]   ;;  %s5996_s3 = inlined_call_operand.hbm [shape: bf16[8,3,128,128], index: 3, kind: input, shape index: {}]   ;;  %s5997_s4 = inlined_call_operand.vmem [shape: f32[8,1,128], index: 4, kind: input, shape index: {}]   ;;  %s5998_s5 = inlined_call_operand.hbm [shape: bf16[3,128,128], index: 5, kind: input, shape index: {}]   ;;  %s5999_s6 = inlined_call_operand.vmem [shape: f32[1,128], index: 6, kind: input, shape index: {}]   ;;  %s6000_s7 = inlined_call_operand.hbm [shape: bf16[3,128,128], index: 7, kind: input, shape index: {}]   ;;  %s6001_s8 = inlined_call_operand.vmem [shape: f32[1,128], index: 8, kind: input, shape index: {}]   ;;  %s6002_s9 = inlined_call_operand.hbm [shape: f32[5,128,128], index: 9, kind: input, shape index: {}]   ;;  %s6003_s10 = inlined_call_operand.hbm [shape: f32[5,128,128], index: 10, kind: input, shape index: {}]   ;;  %s6004_s11 = inlined_call_operand.vmem [shape: f32[2,16], index: 11, kind: input, shape index: {}]   ;;  %s6005_s12 = inlined_call_operand.hbm [shape: f32[2,2,16], index: 12, kind: output, shape index: {}]  }
   0x1   :  { %6014 = sst [smem:[#allocation23_spill]] %s5999_s6 }
   0x2   :  { %6015 = sst [smem:[#allocation24_spill]] %s6001_s8 }
   0x3   :  { %6016 = sst [smem:[#allocation25_spill]] %s6004_s11 }
   0x4   :  { %6017 = sst [smem:[#allocation26_spill]] %s6005_s12 }
   0x5   :  { %17 = vsyncpa [#allocation3], 0 }
   0x6   :  { %19 = vsyncpa [#allocation3 + $0x1], 0 }
   0x7   :  { %20 = vsyncpa [#allocation6], 0 }
   0x8   :  { %21 = vsyncpa [#allocation9], 0 }
   0x9   :  { %22 = vsyncpa [#allocation12], 0 }
   0xa   :  { %23 = vsyncpa [#allocation15], 0 }
   0xb   :  { %24 = vsyncpa [#allocation4], 0 }
   0xc   :  { %26 = vsyncpa [#allocation4 + $0x1], 0  ;;  %s5248_s21 = smov 0   ;;  %s5250_s22 = smov 0  }
   0xd   :  { %s5252_s23 = smov 0   ;;  %s5254_s24 = smov 0  }
   0xe LB: > { %s5164_s25 = smov [#allocation5]   ;;  %s5269_s27 = sadd.s32 4294967295, %s5150_s24   ;;  %s5150_s24 = sphi %s5254_s24, %s6057_s24   ;;  %s5146_s23 = sphi %s5252_s23, %s6056_s23   ;;  %s5142_s22 = sphi %s5250_s22, %s6055_s22   ;;  %s5138_s21 = sphi %s5248_s21, %s6054_s21  }
   0xf   : > { %s332_s26 = sshll.u32 %s5164_s25, 4  ;;  %p3228_p0 = scmp.ge.s32.totalorder %s5150_s24, 1  ;;  %s5274_s26 = int_to_ptr.vmem [resolvable:$true] %s332_s26 }
  0x10   : > { %p6007_p1 = scmp.eq.s32.totalorder %s5269_s27, 0  ;;  %p320_p2 = scmp.lt.s32.totalorder %s5150_s24, 3 }
  0x11   : > { %s5165_s29 = smov [#allocation8]   ;;  %s5166_s14 = smov [#allocation11]  }
  0x12   : > { %p5276_p3 = pnand %p3228_p0, %p320_p2  ;;  %s358_s30 = sshll.u32 %s5165_s29, 4  ;;  %s5289_s30 = int_to_ptr.vmem [resolvable:$true] %s358_s30 }
  0x13   : > { %s390_s15 = sshll.u32 %s5166_s14, 4  ;;  %s4830_s18 = scalar_lea.hbm %s5994_s1, 24576  ;;  %s5291_s15 = int_to_ptr.vmem [resolvable:$true] %s390_s15 }
  0x14   : > { %s6018_s28 = scalar_select %p5276_p3, 1, 0 }
  0x15   : > { %p4611_p5 = pneg %p5276_p3  ;;  %p4831_p7 = scmp.ne.s32.totalorder %s5994_s1, %s4830_s18 }
  0x16   : > { %p4837_p11 = scmp.lt.u32.totalorder %s4830_s18, %s5994_s1 }
  0x17   : > { %p5285_p6 = pnand %p4611_p5, %p6007_p1 }
  0x19   : > { %p5301_p8 = pneg %p5285_p6 }
  0x1b   : > { %p4833_p9 = pnand %p5301_p8, %p4831_p7 }
  0x1d   : > { %p4834_p10 = pneg %p4833_p9 }
  0x1f   : > { %p4839_p12 = pnand %p4837_p11, %p4834_p10 }
  0x21   : > { %4842 = shalt.err (!%p4839_p12)
}
  0x22   : > { %s4843_s16 = scalar_lea.vmem %s5274_s26, 24576  ;;  %p4851_p5 = scmp.lt.s32.totalorder %s5274_s26, %s5274_s26 }
  0x23   : > { %p4844_p13 = scmp.ne.s32.totalorder %s5274_s26, %s4843_s16  ;;  %p4852_p4 = scmp.lt.s32.totalorder %s4843_s16, %s4843_s16 }
  0x25   : > { %p4846_p0 = pnand %p4844_p13, %p5301_p8  ;;  %p4853_p7 = por %p4852_p4, %p4851_p5 }
  0x27   : > { %p4847_p2 = pneg %p4846_p0 }
  0x29   : > { %p4854_p9 = pnand %p4853_p7, %p4847_p2 }
  0x2b   : > { %4857 = shalt.err (!%p4854_p9)
}
  0x2c   : > { %s6009_s17 = smov 64   ;;  %s6010_s18 = smov 4  }
  0x2d   : > { %4614 = dma.hbm_to_vmem [thread:$0]  (!%p5285_p6), %s5994_s1, 24576, %s5274_s26, [#allocation6], %s6009_s17, %s6009_s17, %s6010_s18  }
  0x2e   : > { %s4858_s16 = scalar_lea.hbm %s5996_s3, 24576 }
  0x2f   : > { %p4859_p4 = scmp.ne.s32.totalorder %s5996_s3, %s4858_s16  ;;  %p4865_p12 = scmp.lt.u32.totalorder %s4858_s16, %s5996_s3 }
  0x31   : > { %p4861_p10 = pnand %p4859_p4, %p5301_p8 }
  0x33   : > { %p4862_p11 = pneg %p4861_p10 }
  0x35   : > { %p4867_p13 = pnand %p4865_p12, %p4862_p11 }
  0x37   : > { %4870 = shalt.err (!%p4867_p13)
}
  0x38   : > { %s4871_s26 = scalar_lea.vmem %s5289_s30, 24576  ;;  %p4879_p7 = scmp.lt.s32.totalorder %s5289_s30, %s5289_s30 }
  0x39   : > { %p4872_p0 = scmp.ne.s32.totalorder %s5289_s30, %s4871_s26  ;;  %p4880_p9 = scmp.lt.s32.totalorder %s4871_s26, %s4871_s26 }
  0x3b   : > { %p4874_p2 = pnand %p4872_p0, %p5301_p8  ;;  %p4881_p4 = por %p4880_p9, %p4879_p7 }
  0x3d   : > { %p4875_p5 = pneg %p4874_p2 }
  0x3f   : > { %p4882_p10 = pnand %p4881_p4, %p4875_p5 }
  0x41   : > { %4885 = shalt.err (!%p4882_p10)
}
  0x42   : > { %4620 = dma.hbm_to_vmem [thread:$0]  (!%p5285_p6), %s5996_s3, 24576, %s5289_s30, [#allocation9], %s6009_s17, %s6009_s17, %s6010_s18  }
  0x43   : > { %s4886_s19 = scalar_lea.hbm %s6000_s7, 3072 }
  0x44   : > { %p4887_p11 = scmp.ne.s32.totalorder %s6000_s7, %s4886_s19  ;;  %p4893_p0 = scmp.lt.u32.totalorder %s4886_s19, %s6000_s7 }
  0x46   : > { %p4889_p12 = pnand %p4887_p11, %p5301_p8 }
  0x48   : > { %p4890_p13 = pneg %p4889_p12 }
  0x4a   : > { %p4895_p2 = pnand %p4893_p0, %p4890_p13 }
  0x4c   : > { %4898 = shalt.err (!%p4895_p2)
}
  0x4d   : > { %s4899_s30 = scalar_lea.vmem %s5291_s15, 3072  ;;  %p4907_p4 = scmp.lt.s32.totalorder %s5291_s15, %s5291_s15 }
  0x4e   : > { %p4900_p5 = scmp.ne.s32.totalorder %s5291_s15, %s4899_s30  ;;  %p4908_p10 = scmp.lt.s32.totalorder %s4899_s30, %s4899_s30 }
  0x50   : > { %p4902_p7 = pnand %p4900_p5, %p5301_p8  ;;  %p4909_p11 = por %p4908_p10, %p4907_p4 }
  0x52   : > { %p4903_p9 = pneg %p4902_p7 }
  0x54   : > { %p4910_p12 = pnand %p4909_p11, %p4903_p9 }
  0x56   : > { %4913 = shalt.err (!%p4910_p12)
}
  0x57   : > { %4626 = dma.hbm_to_vmem [thread:$0]  (!%p5285_p6), %s6000_s7, 3072, %s5291_s15, [#allocation12], %s6009_s17, %s6009_s17, %s6010_s18  }
  0x58   : > { %s5169_s8 = smov [#allocation7]   ;;  %s4914_s20 = scalar_lea.hbm %s5995_s2, 128 }
  0x59   : > { %s345_s11 = sshll.u32 %s5169_s8, 4  ;;  %p4915_p13 = scmp.ne.s32.totalorder %s5995_s2, %s4914_s20  ;;  %s346_s11 = int_to_ptr.vmem [resolvable:$true] %s345_s11 }
  0x5a   : > { %p4921_p5 = scmp.lt.u32.totalorder %s4914_s20, %s5995_s2 }
  0x5b   : > { %p4917_p0 = pnand %p4915_p13, %p5301_p8 }
  0x5d   : > { %p4918_p2 = pneg %p4917_p0 }
  0x5f   : > { %p4923_p7 = pnand %p4921_p5, %p4918_p2 }
  0x61   : > { %4926 = shalt.err (!%p4923_p7)
}
  0x62   : > { %s4927_s15 = scalar_lea.vmem %s346_s11, 128  ;;  %p4935_p11 = scmp.lt.s32.totalorder %s346_s11, %s346_s11 }
  0x63   : > { %p4928_p9 = scmp.ne.s32.totalorder %s346_s11, %s4927_s15  ;;  %p4936_p12 = scmp.lt.s32.totalorder %s4927_s15, %s4927_s15 }
  0x65   : > { %p4930_p4 = pnand %p4928_p9, %p5301_p8  ;;  %p4937_p1 = por %p4936_p12, %p4935_p11 }
  0x67   : > { %p4931_p10 = pneg %p4930_p4 }
  0x69   : > { %p4938_p3 = pnand %p4937_p1, %p4931_p10 }
  0x6b   : > { %4941 = shalt.err (!%p4938_p3)
}
  0x6c   : > { %s5170_s26 = smov 16   ;;  %s5171_s6 = smov 1  }
  0x6d   : > { %4617 = dma.hbm_to_vmem [thread:$0]  (!%p5285_p6), %s5995_s2, 128, %s346_s11, [#allocation6], %s5170_s26, %s5170_s26, %s5171_s6  }
  0x6e   : > { %s5172_s19 = smov [#allocation10]   ;;  %s5173_s29 = smov [#allocation13]  }
  0x6f   : > { %s374_s20 = sshll.u32 %s5172_s19, 4  ;;  %s406_s14 = sshll.u32 %s5173_s29, 4  ;;  %s375_s20 = int_to_ptr.vmem [resolvable:$true] %s374_s20  ;;  %s5395_s14 = int_to_ptr.vmem [resolvable:$true] %s406_s14 }
  0x70   : > { %s4942_s15 = scalar_lea.hbm %s5998_s5, 3072 }
  0x71   : > { %p4943_p1 = scmp.ne.s32.totalorder %s5998_s5, %s4942_s15  ;;  %p4949_p0 = scmp.lt.u32.totalorder %s4942_s15, %s5998_s5 }
  0x73   : > { %p4945_p3 = pnand %p4943_p1, %p5301_p8 }
  0x75   : > { %p4946_p13 = pneg %p4945_p3 }
  0x77   : > { %p4951_p2 = pnand %p4949_p0, %p4946_p13 }
  0x79   : > { %4954 = shalt.err (!%p4951_p2)
}
  0x7a   : > { %s4955_s26 = scalar_lea.vmem %s375_s20, 3072  ;;  %p4963_p4 = scmp.lt.s32.totalorder %s375_s20, %s375_s20 }
  0x7b   : > { %p4956_p5 = scmp.ne.s32.totalorder %s375_s20, %s4955_s26  ;;  %p4964_p10 = scmp.lt.s32.totalorder %s4955_s26, %s4955_s26 }
  0x7d   : > { %p4958_p7 = pnand %p4956_p5, %p5301_p8  ;;  %p4965_p11 = por %p4964_p10, %p4963_p4 }
  0x7f   : > { %p4959_p9 = pneg %p4958_p7 }
  0x81   : > { %p4966_p12 = pnand %p4965_p11, %p4959_p9 }
  0x83   : > { %4969 = shalt.err (!%p4966_p12)
}
  0x84   : > { %s6021_s17 = smov 4   ;;  %s6022_s18 = smov 64  }
  0x85   : > { %4623 = dma.hbm_to_vmem [thread:$0]  (!%p5285_p6), %s5998_s5, 3072, %s375_s20, [#allocation9], %s6022_s18, %s6022_s18, %s6021_s17  }
  0x86   : > { %s4970_s16 = scalar_lea.hbm %s6002_s9, 10240 }
  0x87   : > { %p4971_p1 = scmp.ne.s32.totalorder %s6002_s9, %s4970_s16  ;;  %p4977_p0 = scmp.lt.u32.totalorder %s4970_s16, %s6002_s9 }
  0x89   : > { %p4973_p3 = pnand %p4971_p1, %p5301_p8 }
  0x8b   : > { %p4974_p13 = pneg %p4973_p3 }
  0x8d   : > { %p4979_p2 = pnand %p4977_p0, %p4974_p13 }
  0x8f   : > { %4982 = shalt.err (!%p4979_p2)
}
  0x90   : > { %s4983_s20 = scalar_lea.vmem %s5395_s14, 10240  ;;  %p4991_p4 = scmp.lt.s32.totalorder %s5395_s14, %s5395_s14 }
  0x91   : > { %p4984_p5 = scmp.ne.s32.totalorder %s5395_s14, %s4983_s20  ;;  %p4992_p10 = scmp.lt.s32.totalorder %s4983_s20, %s4983_s20 }
  0x93   : > { %p4986_p7 = pnand %p4984_p5, %p5301_p8  ;;  %p4993_p11 = por %p4992_p10, %p4991_p4 }
  0x95   : > { %p4987_p9 = pneg %p4986_p7 }
  0x97   : > { %p4994_p12 = pnand %p4993_p11, %p4987_p9 }
  0x99   : > { %4997 = shalt.err (!%p4994_p12)
}
  0x9a   : > { %s6011_s26 = smov 128   ;;  %s6012_s17 = smov 8  }
  0x9b   : > { %4629 = dma.hbm_to_vmem [thread:$0]  (!%p5285_p6), %s6002_s9, 10240, %s5395_s14, [#allocation12], %s6011_s26, %s6011_s26, %s6012_s17  }
  0x9c   : > { %s5176_s12 = smov [#allocation14]   ;;  %s4998_s30 = scalar_lea.hbm %s6003_s10, 10240 }
  0x9d   : > { %s419_s19 = sshll.u32 %s5176_s12, 4  ;;  %p4999_p1 = scmp.ne.s32.totalorder %s6003_s10, %s4998_s30  ;;  %s420_s19 = int_to_ptr.vmem [resolvable:$true] %s419_s19 }
  0x9e   : > { %p5005_p0 = scmp.lt.u32.totalorder %s4998_s30, %s6003_s10 }
  0x9f   : > { %p5001_p3 = pnand %p4999_p1, %p5301_p8 }
  0xa1   : > { %p5002_p13 = pneg %p5001_p3 }
  0xa3   : > { %p5007_p2 = pnand %p5005_p0, %p5002_p13 }
  0xa5   : > { %5010 = shalt.err (!%p5007_p2)
}
  0xa6   : > { %s5011_s14 = scalar_lea.vmem %s420_s19, 10240  ;;  %p5019_p4 = scmp.lt.s32.totalorder %s420_s19, %s420_s19 }
  0xa7   : > { %p5012_p5 = scmp.ne.s32.totalorder %s420_s19, %s5011_s14  ;;  %p5020_p10 = scmp.lt.s32.totalorder %s5011_s14, %s5011_s14 }
  0xa9   : > { %p5014_p7 = pnand %p5012_p5, %p5301_p8  ;;  %p5021_p11 = por %p5020_p10, %p5019_p4 }
  0xab   : > { %p5015_p9 = pneg %p5014_p7 }
  0xad   : > { %p5022_p12 = pnand %p5021_p11, %p5015_p9 }
  0xaf   : > { %5025 = shalt.err (!%p5022_p12)
}
  0xb0   : > { %4632 = dma.hbm_to_vmem [thread:$0]  (!%p5285_p6), %s6003_s10, 10240, %s420_s19, [#allocation15], %s6011_s26, %s6011_s26, %s6012_s17  }
  0xb1   : > { %s3227_s13 = sadd.s32 4294967294, %s5150_s24   ;;  %s5467_s25 = sadd.s32 1, %s5150_s24  }
  0xb2   : > { %s39_s12 = sadd.s32 1, %s5146_s23  ;;  %s36_s29 = ssub.s32 %s5150_s24, %s5467_s25 }
  0xb3   : > { %p46_p8 = scmp.ne.s32.totalorder %s5146_s23, %s5142_s22  ;;  %p37_p1 = scmp.eq.s32.totalorder %s36_s29, 0 }
  0xb4   : > { %p47_p3 = scmp.eq.s32.totalorder %s5150_s24, 0  ;;  %p52_p13 = scmp.ne.s32.totalorder %s5142_s22, %s5138_s21 }
  0xb5   : > { %p307_p0 = scmp.eq.s32.totalorder %s5269_s27, 1  ;;  %p6023_p5 = scmp.eq.s32.totalorder %s5269_s27, 0 }
  0xb6   : > { %s5479_s16 = scalar_select %p37_p1, %s5146_s23, %s39_s12  }
  0xb7   : > { %p48_p2 = por %p47_p3, %p46_p8  ;;  %p5483_p7 = por %p6023_p5, %p52_p13 }
  0xb8   : > { %p5487_p6 = por %p307_p0, %p46_p8  ;;  %p313_p9 = scmp.eq.s32.totalorder %s3227_s13, 1 }
  0xb9   : > { %p4648_p4 = scmp.lt.s32.totalorder %s5150_s24, 2  ;;  %s436_s15 = sand.u32 1, %s5146_s23  }
  0xba   : > { %s6025_s19 = scalar_select %p5487_p6, 1, 0 }
  0xbb   : > { %p5493_p10 = por %p313_p9, %p52_p13  ;;  %s3237_s11 = sshll.u32 %s436_s15, 4 }
  0xbc   : > { %s3360_s20 = sshll.u32 %s5150_s24, 8  ;;  %s440_s12 = scalar_lea.vmem [#allocation2], %s3237_s11 }
  0xbd   : > { %s6026_s8 = scalar_select %p5493_p10, 1, 0 }
  0xbe   : > { %s5501_s6 = scalar_lea.hbm %s5993_s0, %s3360_s20  ;;  %s447_s29 = sshll.u32 %s440_s12, 4  ;;  %s5507_s29 = int_to_ptr.vmem [resolvable:$true] %s447_s29 }
  0xbf   : > { %p5503_p11 = pnand %p4648_p4, %p48_p2  ;;  %s5509_s26 = scalar_lea.sflag [#allocation3], %s436_s15 }
  0xc0   : > { %s5026_s17 = scalar_lea.hbm %s5501_s6, 256  ;;  %s5031_s14 = scalar_lea.hbm %s5993_s0, 512 }
  0xc1   : > { %p5027_p12 = scmp.ne.s32.totalorder %s5501_s6, %s5026_s17  ;;  %p5028_p8 = pneg %p5503_p11 }
  0xc2   : > { %p5032_p13 = scmp.lt.u32.totalorder %s5501_s6, %s5993_s0  ;;  %p5033_p0 = scmp.lt.u32.totalorder %s5031_s14, %s5026_s17 }
  0xc3   : > { %p5029_p1 = pnand %p5028_p8, %p5027_p12  ;;  %p5035_p5 = scmp.lt.u32.totalorder %s5026_s17, %s5501_s6 }
  0xc4   : > { %p5034_p2 = por %p5033_p0, %p5032_p13 }
  0xc5   : > { %p5030_p3 = pneg %p5029_p1 }
  0xc6   : > { %p5036_p9 = por %p5035_p5, %p5034_p2 }
  0xc8   : > { %p5037_p4 = pnand %p5036_p9, %p5030_p3 }
  0xca   : > { %5040 = shalt.err (!%p5037_p4)
}
  0xcb   : > { %s5041_s15 = scalar_lea.vmem %s5507_s29, 256  ;;  %s5177_s11 = smov [#allocation2]  }
  0xcc   : > { %p5042_p12 = scmp.ne.s32.totalorder %s5507_s29, %s5041_s15  ;;  %s5046_s20 = sshll.u32 %s5177_s11, 4  ;;  %s5047_s20 = int_to_ptr.vmem [resolvable:$false] %s5046_s20 }
  0xcd   : > { %s5048_s18 = scalar_lea.vmem %s5047_s20, 512  ;;  %p5049_p6 = scmp.lt.s32.totalorder %s5507_s29, %s5047_s20 }
  0xce   : > { %p5044_p1 = pnand %p5042_p12, %p5028_p8  ;;  %p5050_p13 = scmp.lt.s32.totalorder %s5048_s18, %s5041_s15 }
  0xd0   : > { %p5045_p10 = pneg %p5044_p1  ;;  %p5051_p0 = por %p5050_p13, %p5049_p6 }
  0xd2   : > { %p5052_p2 = pnand %p5051_p0, %p5045_p10 }
  0xd4   : > { %5055 = shalt.err (!%p5052_p2)
}
  0xd5   : > { %s6028_s17 = smov 8   ;;  %s6029_s14 = smov 128  }
  0xd6   : > { %4636 = dma.hbm_to_vmem [thread:$0]  (!%p5503_p11), %s5501_s6, 256, %s5507_s29, %s5509_s26, %s6029_s14, %s6029_s14, %s6028_s17  }
  0xd7   : > { %p6030_p8 = scmp.ne.s32.totalorder %s6018_s28, 0 }
  0xd8   : > { %s5543_s12 = sand.u32 (!%p6030_p8), 1, %s5142_s22  }
  0xd9   : > { %459 = sbr.rel (%p6030_p8) target bundleno = 2005 (0x7d5), region = 68  ;;  %s3241_s15 = sshll.u32 (!%p6030_p8), %s5543_s12, 4 }
  0xda   : > { %s462_s11 = scalar_lea.sflag (!%p6030_p8), [#allocation3], %s5543_s12  ;;  %s465_s20 = scalar_lea.vmem (!%p6030_p8), [#allocation2], %s3241_s15 }
  0xe0   : > { %5113 = dma.done.wait (%p5483_p7), %s462_s11, 256  }
  0xe1   : > { %5115 = vsyncadd (%p5483_p7), %s462_s11, 4294967040  ;;  %p6031_p6 = scmp.eq.s32.totalorder %s5269_s27, 0 }
  0xe3   : > { %5117 = dma.done.wait (%p6031_p6), [#allocation6], 24704   ;;  %p6032_p10 = pmov %p6031_p6 }
  0xe4   : > { %p6033_p11 = pmov %p6031_p6 }
  0xe5   : > { %5119 = vsyncadd (%p6032_p10), [#allocation6], 4294942592 }
  0xe6   : > { %5121 = dma.done.wait (%p6033_p11), [#allocation9], 27648   ;;  %p6034_p3 = pmov %p6031_p6 }
  0xe8   : > { %5123 = vsyncadd (%p6034_p3), [#allocation9], 4294939648  ;;  %p6035_p5 = pmov %p6034_p3 }
  0xe9   : > { %p6036_p9 = pmov %p6034_p3 }
  0xea   : > { %5125 = dma.done.wait (%p6035_p5), [#allocation12], 13312  }
  0xeb   : > { %5127 = vsyncadd (%p6036_p9), [#allocation12], 4294953984  ;;  %p6037_p7 = pmov %p6034_p3 }
  0xec   : > { %p6038_p4 = pmov %p6034_p3 }
  0xed   : > { %5129 = dma.done.wait (%p6037_p7), [#allocation15], 10240  }
  0xee   : > { %5131 = vsyncadd (%p6038_p4), [#allocation15], 4294957056  ;;  %s3249_s28 = sshll.u32 %s5543_s12, 1  ;;  %v5568_v0 = vld [vmem:[%s465_s20] sm:$0xff]   ;;  %v5570_v1 = vld [vmem:[%s465_s20 + $0x8] sm:$0xff]   ;;  %s5580_s30 = smov 0  }
  0xef   : > { %s5572_s26 = scalar_lea.vmem [#allocation16], %s3249_s28  ;;  %v6039_v2 = vmov %v5570_v1  ;;  %v6040_v3 = vmov %v5568_v0 }
  0xf0 LB: >> { %v5178_v4 = vmov 0.0   ;;  %s3361_s6 = smul.u32 192, %s5162_s30  ;;  %vm5179_vm0 = vmmov 0   ;;  %v598_v5 = vpack.c.bf16 %v5154_v2, %v5158_v3  ;;  %vm608_vm1 = vcmask 1040384   ;;  %s596_s18 = scalar_lea.vmem [#allocation7], %s5162_s30  ;;  %s5162_s30 = sphi %s5580_s30, %s542_s30   ;;  %v5158_v3 = vphi %v6040_v3, %v6044_v3   ;;  %v5154_v2 = vphi %v6039_v2, %v6043_v2  }
  0xf1   : >> { %3651 = vmatprep.subr.bf16.mxu0 %v5178_v4  ;;  %3671 = vmatprep.subr.bf16.mxu1 %v5178_v4  ;;  %vm609_vm2 = vsmask.f32 256  ;;  %vm613_vm4 = vsmask.f32 7424  ;;  %vm807_vm5 = vcmask 1046528   ;;  %s963_s15 = scalar_lea.vmem %s5997_s4, %s5162_s30  ;;  %s542_s30 = sadd.s32 1, %s5162_s30  }
  0xf2   : >> { %3667 = vmatprep.mubr.msk.bf16.mxu0 %vm5179_vm0, %v5178_v4  ;;  %3687 = vmatprep.mubr.msk.bf16.mxu1 %vm5179_vm0, %v5178_v4  ;;  %s5602_s29 = scalar_lea.vmem [#allocation5], %s3361_s6  ;;  %v600_v10 = vshrl.u32 %v598_v5, 16  ;;  %v603_v12 = vshll.u32 %v598_v5, 16  ;;  %vm5618_vm3 = vmand %vm608_vm1, %vm609_vm2  ;;  %s5648_s13 = scalar_lea.vmem [#allocation8], %s3361_s6 }
  0xf3   : >> { %v4730_v6 = vld [vmem:[%s5602_s29 + $0x40] sm:$0xff]   ;;  %v4732_v8 = vld [vmem:[%s5602_s29 + $0x48] sm:$0xff]   ;;  %v4734_v11 = vld [vmem:[%s5602_s29 + $0x50] sm:$0xff]   ;;  %p539_p12 = scmp.ge.s32.totalorder %s542_s30, 8  }
  0xf4   : >> { %v4731_v7 = vld [vmem:[%s5602_s29] sm:$0xff]   ;;  %3652 = vmatpush3.bf16.msra.mxu0 %v4730_v6  ;;  %v4733_v9 = vld [vmem:[%s5602_s29 + $0x8] sm:$0xff]   ;;  %v4735_v13 = vld [vmem:[%s5602_s29 + $0x10] sm:$0xff]   ;;  %v602_v14 = vrot.slane %v600_v10, 7  ;;  %vm5181_vm6 = vmmov (%p539_p12), 0   ;;  %s6045_s28 = sld [smem:[#allocation23_spill]] (%p539_p12) }
  0xf5   : >> { %3672 = vmatpush3.bf16.msra.mxu1 %v4731_v7  ;;  %3653 = vmatprep.subr.bf16.mxu0 %v5178_v4  ;;  %v4736_v15 = vld [vmem:[%s5602_s29 + $0x58] sm:$0xff]   ;;  %v4738_v19 = vld [vmem:[%s5602_s29 + $0x60] sm:$0xff]   ;;  %v4740_v23 = vld [vmem:[%s5602_s29 + $0x68] sm:$0xff]   ;;  %vm2002_vm7 = vcmask (%p539_p12), 1041408   ;;  %vm2431_vm8 = vcmask (%p539_p12), 1045504   ;;  %vm2634_vm9 = vcmask (%p539_p12), 1044480  }
  0xf6   : >> { %3673 = vmatprep.subr.bf16.mxu1 %v5178_v4  ;;  %v4737_v16 = vld [vmem:[%s5602_s29 + $0x18] sm:$0xff]   ;;  %v605_v17 = vor.u32 %v603_v12, %v602_v14  ;;  %v4739_v20 = vld [vmem:[%s5602_s29 + $0x20] sm:$0xff]   ;;  %v5632_v22 = vsel %vm5618_vm3, %v602_v14, 0  ;;  %v4741_v25 = vld [vmem:[%s5602_s29 + $0x28] sm:$0xff]   ;;  %vm2837_vm11 = vcmask (%p539_p12), 1043456   ;;  %s6049_s17 = sld [smem:[#allocation25_spill]] (%p539_p12) }
  0xf7   : >> { %v622_v26 = vshll.u32 %v5632_v22, 16  ;;  %v4742_v28 = vld [vmem:[%s5602_s29 + $0x70] sm:$0xff]   ;;  %v4744_v32 = vld [vmem:[%s5602_s29 + $0x78] sm:$0xff]   ;;  %v4746_v35 = vld [vmem:[%s5602_s29 + $0x80] sm:$0xff]   ;;  %v809_v45 = vrot.slane %v5632_v22, 1  ;;  %s3357_s14 = sshll.u32 (%p539_p12), %s5269_s27, 5 }
  0xf8   : >> { %3654 = vmatpush3.bf16.msra.mxu0 %v4732_v8  ;;  %v5627_v21 = vsel %vm5618_vm3, 0, %v605_v17  ;;  %v4743_v30 = vld [vmem:[%s5602_s29 + $0x30] sm:$0xff]   ;;  %v4745_v33 = vld [vmem:[%s5602_s29 + $0x38] sm:$0xff]   ;;  %v4747_v37 = vld [vmem:[%s5602_s29 + $0x88] sm:$0xff]   ;;  %vm3057_vm12 = vcmask (%p539_p12), 123904   ;;  %s3060_s6 = scalar_lea.sflag (%p539_p12), [#allocation4], %s5543_s12 }
  0xf9   : >> { %3674 = vmatpush3.bf16.msra.mxu1 %v4733_v9  ;;  %3655 = vmatprep.subr.bf16.mxu0 %v5178_v4  ;;  %v617_v24 = vshll.u32 %v5627_v21, 16  ;;  %v615_v27 = vshrl.u32 %v5627_v21, 16  ;;  %v624_v31 = vrot.slane %v622_v26, 1  ;;  %v4748_v38 = vld [vmem:[%s5602_s29 + $0x90] sm:$0xff]   ;;  %v4749_v39 = vld [vmem:[%s5602_s29 + $0x98] sm:$0xff]   ;;  %v4750_v40 = vld [vmem:[%s5602_s29 + $0xa0] sm:$0xff]  }
  0xfa   : >> { %3675 = vmatprep.subr.bf16.mxu1 %v5178_v4  ;;  %v4751_v41 = vld [vmem:[%s5602_s29 + $0xa8] sm:$0xff]   ;;  %v4752_v42 = vld [vmem:[%s5602_s29 + $0xb0] sm:$0xff]   ;;  %v4753_v43 = vld [vmem:[%s5602_s29 + $0xb8] sm:$0xff]   ;;  %v808_v44 = vrot.slane %v5627_v21, 1  ;;  %s6046_s29 = sld [smem:[#allocation24_spill]] (%p539_p12)  ;;  %p6051_p13 = scmp.ne.s32.totalorder (%p539_p12), %s6025_s19, 0 }
  0xfb   : >> { %v619_v29 = vrot.slane %v617_v24, 1  ;;  %v4754_v47 = vld [vmem:[%s5648_s13] sm:$0xff]   ;;  %v4755_v48 = vld [vmem:[%s5648_s13 + $0x8] sm:$0xff]   ;;  %v4757_v50 = vld [vmem:[%s5648_s13 + $0x10] sm:$0xff]   ;;  %s5182_s27 = smov (%p539_p12), [#allocation16]  }
  0xfc   : >> { %3656 = vmatpush3.bf16.msra.mxu0 %v4734_v11  ;;  %v810_v46 = vsel %vm807_vm5, %v808_v44, %v809_v45  ;;  %v4756_v49 = vld [vmem:[%s5648_s13 + $0x40] sm:$0xff]   ;;  %v4758_v51 = vld [vmem:[%s5648_s13 + $0x48] sm:$0xff]   ;;  %v4759_v52 = vld [vmem:[%s5648_s13 + $0x18] sm:$0xff]  }
  0xfd   : >> { %3676 = vmatpush3.bf16.msra.mxu1 %v4735_v13  ;;  %3657 = vmatprep.subr.bf16.mxu0 %v5178_v4  ;;  %v620_v34 = vor.u32 %v619_v29, %v615_v27  ;;  %v4760_v53 = vld [vmem:[%s5648_s13 + $0x50] sm:$0xff]   ;;  %v4761_v54 = vld [vmem:[%s5648_s13 + $0x20] sm:$0xff]   ;;  %v4762_v55 = vld [vmem:[%s5648_s13 + $0x58] sm:$0xff]  }
  0xfe   : >> { %3677 = vmatprep.subr.bf16.mxu1 %v5178_v4  ;;  %v4763_v56 = vld [vmem:[%s5648_s13 + $0x28] sm:$0xff]   ;;  %v4764_v57 = vld [vmem:[%s5648_s13 + $0x60] sm:$0xff]   ;;  %v4765_v58 = vld [vmem:[%s5648_s13 + $0x30] sm:$0xff]  }
  0xff   : >> { %v625_v36 = vsel %vm613_vm4, %v620_v34, %v624_v31  ;;  %v4766_v59 = vld [vmem:[%s5648_s13 + $0x68] sm:$0xff]   ;;  %v4767_v60 = vld [vmem:[%s5648_s13 + $0x38] sm:$0xff]   ;;  %v4768_v61 = vld [vmem:[%s5648_s13 + $0x70] sm:$0xff]  }
 0x100   : >> { %3658 = vmatpush3.bf16.msra.mxu0 %v4736_v15  ;;  %v4769_v62 = vld [vmem:[%s5648_s13 + $0x78] sm:$0xff]   ;;  %v3275_v14 = vld [vmem:[%s596_s18] ss:$0 sm:$0xff]  ;;  %v4775_v45 = vld [vmem:[%s5648_s13 + $0xa8] sm:$0xff]  }
 0x101   : >> { %3678 = vmatpush3.bf16.msra.mxu1 %v4737_v16  ;;  %3659 = vmatprep.subr.bf16.mxu0 %v5178_v4  ;;  %v4774_v44 = vld [vmem:[%s5648_s13 + $0xa0] sm:$0xff]   ;;  %v4816_v18 = vld [vmem:[#allocation11 + $0x10] sm:$0xff] (%p539_p12)   ;;  %vm5854_vm10 = vmneg (%p539_p12), %vm2002_vm7 }
 0x102   : >> { %3679 = vmatprep.subr.bf16.mxu1 %v5178_v4 }
 0x104   : >> { %3660 = vmatpush3.bf16.msra.mxu0 %v4738_v19 }
 0x105   : >> { %3680 = vmatpush3.bf16.msra.mxu1 %v4739_v20  ;;  %3661 = vmatprep.subr.bf16.mxu0 %v5178_v4 }
 0x106   : >> { %3681 = vmatprep.subr.bf16.mxu1 %v5178_v4 }
 0x108   : >> { %3662 = vmatpush3.bf16.msra.mxu0 %v4740_v23 }
 0x109   : >> { %3682 = vmatpush3.bf16.msra.mxu1 %v4741_v25  ;;  %3663 = vmatprep.subr.bf16.mxu0 %v5178_v4 }
 0x10a   : >> { %3683 = vmatprep.subr.bf16.mxu1 %v5178_v4 }
 0x10c   : >> { %3664 = vmatpush3.bf16.msra.mxu0 %v4742_v28 }
 0x10d   : >> { %3684 = vmatpush3.bf16.msra.mxu1 %v4743_v30  ;;  %3665 = vmatprep.subr.bf16.mxu0 %v5178_v4 }
 0x10e   : >> { %3685 = vmatprep.subr.bf16.mxu1 %v5178_v4 }
 0x110   : >> { %3666 = vmatpush3.bf16.msra.mxu0 %v4744_v32 }
 0x111   : >> { %3686 = vmatpush3.bf16.msra.mxu1 %v4745_v33  ;;  %3691 = vmatprep.subr.bf16.mxu0 %v5178_v4 }
 0x112   : >> { %3711 = vmatprep.subr.bf16.mxu1 %v5178_v4 }
 0x113   : >> { %3668 = vmatmul.mubr.bf16.vlgmr.msra.gmra.mrb[0].mxu0 %v625_v36 }
 0x114   : >> { %3688 = vmatmul.mubr.bf16.vlgmr.msra.gmra.mrb[0].mxu1 %v5627_v21  ;;  %3692 = vmatpush3.bf16.msra.mxu0 %v4746_v35 }
 0x115   : >> { %3693 = vmatprep.subr.bf16.mxu0 %v5178_v4  ;;  %3707 = vmatprep.mubr.msk.bf16.mxu0 %vm5179_vm0, %v5178_v4 }
 0x116   : >> { %3727 = vmatprep.mubr.msk.bf16.mxu1 %vm5179_vm0, %v5178_v4  ;;  %3712 = vmatpush3.bf16.msra.mxu1 %v4756_v49 }
 0x117   : >> { %3713 = vmatprep.subr.bf16.mxu1 %v5178_v4 }
 0x118   : >> { %3694 = vmatpush3.bf16.msra.mxu0 %v4747_v37 }
 0x119   : >> { %3695 = vmatprep.subr.bf16.mxu0 %v5178_v4 }
 0x11a   : >> { %3714 = vmatpush3.bf16.msra.mxu1 %v4758_v51 }
 0x11b   : >> { %3715 = vmatprep.subr.bf16.mxu1 %v5178_v4 }
 0x11c   : >> { %3696 = vmatpush3.bf16.msra.mxu0 %v4748_v38 }
 0x11d   : >> { %3697 = vmatprep.subr.bf16.mxu0 %v5178_v4 }
 0x11e   : >> { %3716 = vmatpush3.bf16.msra.mxu1 %v4760_v53 }
 0x11f   : >> { %3717 = vmatprep.subr.bf16.mxu1 %v5178_v4 }
 0x120   : >> { %3698 = vmatpush3.bf16.msra.mxu0 %v4749_v39  ;;  %v4770_v39 = vld [vmem:[%s5648_s13 + $0x80] sm:$0xff]  }
 0x121   : >> { %3699 = vmatprep.subr.bf16.mxu0 %v5178_v4 }
 0x122   : >> { %3718 = vmatpush3.bf16.msra.mxu1 %v4762_v55 }
 0x123   : >> { %3719 = vmatprep.subr.bf16.mxu1 %v5178_v4 }
 0x124   : >> { %3700 = vmatpush3.bf16.msra.mxu0 %v4750_v40 }
 0x125   : >> { %3701 = vmatprep.subr.bf16.mxu0 %v5178_v4 }
 0x126   : >> { %3720 = vmatpush3.bf16.msra.mxu1 %v4764_v57 }
 0x127   : >> { %3721 = vmatprep.subr.bf16.mxu1 %v5178_v4 }
 0x128   : >> { %3702 = vmatpush3.bf16.msra.mxu0 %v4751_v41  ;;  %v4771_v41 = vld [vmem:[%s5648_s13 + $0x88] sm:$0xff]  }
 0x129   : >> { %3703 = vmatprep.subr.bf16.mxu0 %v5178_v4 }
 0x12a   : >> { %3722 = vmatpush3.bf16.msra.mxu1 %v4766_v59 }
 0x12b   : >> { %3723 = vmatprep.subr.bf16.mxu1 %v5178_v4 }
 0x12c   : >> { %3704 = vmatpush3.bf16.msra.mxu0 %v4752_v42  ;;  %v4772_v42 = vld [vmem:[%s5648_s13 + $0x90] sm:$0xff]  }
 0x12d   : >> { %3705 = vmatprep.subr.bf16.mxu0 %v5178_v4 }
 0x12e   : >> { %3724 = vmatpush3.bf16.msra.mxu1 %v4768_v61 }
 0x12f   : >> { %3725 = vmatprep.subr.bf16.mxu1 %v5178_v4 }
 0x130   : >> { %3706 = vmatpush3.bf16.msra.mxu0 %v4753_v43  ;;  %v4773_v43 = vld [vmem:[%s5648_s13 + $0x98] sm:$0xff]  }
 0x131   : >> { %3731 = vmatprep.subr.bf16.mxu0 %v5178_v4 }
 0x132   : >> { %3726 = vmatpush3.bf16.msra.mxu1 %v4769_v62 }
 0x133   : >> { %3708 = vmatmul.mubr.bf16.vlgmr.msra.gmra.mrb[4].mxu0 %v810_v46  ;;  %3751 = vmatprep.subr.bf16.mxu1 %v5178_v4  ;;  %v4776_v46 = vld [vmem:[%s5648_s13 + $0xb0] sm:$0xff]  }
 0x134   : >> { %3747 = vmatprep.mubr.msk.bf16.mxu0 %vm5179_vm0, %v5178_v4  ;;  %3732 = vmatpush3.bf16.msra.mxu0 %v4754_v47  ;;  %v4777_v47 = vld [vmem:[%s5648_s13 + $0xb8] sm:$0xff]   ;;  %s5060_s13 = sshll.u32 (%p539_p12), %s5182_s27, 4  ;;  %s5061_s13 = int_to_ptr.vmem [resolvable:$false] %s5060_s13 }
 0x135   : >> { %3733 = vmatprep.subr.bf16.mxu0 %v5178_v4  ;;  %s5062_s18 = scalar_lea.vmem (%p539_p12), %s5061_s13, 64 }
 0x138   : >> { %3734 = vmatpush3.bf16.msra.mxu0 %v4755_v48 }
 0x139   : >> { %3735 = vmatprep.subr.bf16.mxu0 %v5178_v4 }
 0x13c   : >> { %3736 = vmatpush3.bf16.msra.mxu0 %v4757_v50 }
 0x13d   : >> { %3737 = vmatprep.subr.bf16.mxu0 %v5178_v4 }
 0x140   : >> { %3738 = vmatpush3.bf16.msra.mxu0 %v4759_v52 }
 0x141   : >> { %3739 = vmatprep.subr.bf16.mxu0 %v5178_v4 }
 0x144   : >> { %3740 = vmatpush3.bf16.msra.mxu0 %v4761_v54 }
 0x145   : >> { %3741 = vmatprep.subr.bf16.mxu0 %v5178_v4 }
 0x148   : >> { %3742 = vmatpush3.bf16.msra.mxu0 %v4763_v56 }
 0x149   : >> { %3743 = vmatprep.subr.bf16.mxu0 %v5178_v4 }
 0x14c   : >> { %3744 = vmatpush3.bf16.msra.mxu0 %v4765_v58 }
 0x14d   : >> { %3745 = vmatprep.subr.bf16.mxu0 %v5178_v4 }
 0x150   : >> { %3746 = vmatpush3.bf16.msra.mxu0 %v4767_v60 }
 0x1e6   : >> { %v709_v63 = vpop.f32.mrb[0].mxu0 }
 0x1e7   : >> { %v798_v5 = vpop.f32.mrb[0].mxu1  ;;  %v3669_v6 = vpop.f32.mrb[1].mxu0 }
 0x1e8   : >> { %v799_v7 = vadd.f32 %v798_v5, %v709_v63  ;;  %v3689_v8 = vpop.f32.mrb[1].mxu1  ;;  %v712_v9 = vpop.f32.mrb[2].mxu0 }
 0x1e9   : >> { %v801_v10 = vpop.f32.mrb[2].mxu1  ;;  %v3670_v11 = vpop.f32.mrb[3].mxu0 }
 0x1ea   : >> { %v802_v12 = vadd.f32 %v801_v10, %v712_v9  ;;  %v3690_v13 = vpop.f32.mrb[3].mxu1 }
 0x206   : >> { %v894_v15 = vpop.f32.mrb[4].mxu0 }
 0x207   : >> { %v901_v16 = vadd.f32 %v894_v15, %v799_v7  ;;  %v3709_v17 = vpop.f32.mrb[5].mxu0 }
 0x208   : >> { %v897_v19 = vpop.f32.mrb[6].mxu0 }
 0x209   : >> { %v909_v20 = vadd.f32 %v3275_v14, %v901_v16  ;;  %v902_v21 = vadd.f32 %v897_v19, %v802_v12  ;;  %v3710_v22 = vpop.f32.mrb[7].mxu0  ;;  %v4782_v12 = vld [vmem:[#allocation10 + $0x40] sm:$0xff] (%p539_p12)   ;;  %v4784_v19 = vld [vmem:[#allocation10 + $0x50] sm:$0xff] (%p539_p12)  }
 0x20b   : >> { %v910_v23 = vadd.f32 %v3275_v14, %v902_v21  ;;  %4778 = vtanh.f32 %v909_v20  ;;  %v5180_v14 = vmov (%p539_p12), 0.0   ;;  %v4785_v20 = vld [vmem:[#allocation10 + $0x58] sm:$0xff] (%p539_p12)  }
 0x20d   : >> { %4780 = vtanh.f32 %v910_v23 }
 0x215   : >> { %v4779_v24 = vpop.eup %4778 }
 0x217   : >> { %v4781_v25 = vpop.eup %4780 }
 0x218   : >> { %v965_v26 = vpack.c.bf16 %v4781_v25, %v4779_v24  ;;  %v4786_v25 = vld [vmem:[#allocation10 + $0x60] sm:$0xff] (%p539_p12)  }
 0x21a   : >> { %v967_v27 = vshrl.u32 %v965_v26, 16  ;;  %v970_v29 = vshll.u32 %v965_v26, 16 }
 0x21c   : >> { %v969_v28 = vrot.slane %v967_v27, 7  ;;  %v4787_v27 = vld [vmem:[#allocation10 + $0x68] sm:$0xff] (%p539_p12)  }
 0x21e   : >> { %v972_v30 = vor.u32 %v970_v29, %v969_v28  ;;  %v976_v31 = vsel %vm5618_vm3, %v969_v28, 0 }
 0x21f   : >> { %v985_v34 = vshll.u32 %v976_v31, 16  ;;  %v1171_v49 = vrot.slane %v976_v31, 1 }
 0x220   : >> { %v975_v32 = vsel %vm5618_vm3, 0, %v972_v30  ;;  %v4788_v30 = vld [vmem:[#allocation10 + $0x70] sm:$0xff] (%p539_p12)  }
 0x221   : >> { %v980_v33 = vshll.u32 %v975_v32, 16  ;;  %3748 = vmatmul.mubr.bf16.vlgmr.msra.gmra.mrb[8].mxu0 %v975_v32  ;;  %v978_v35 = vshrl.u32 %v975_v32, 16  ;;  %v987_v38 = vrot.slane %v985_v34, 1  ;;  %v1170_v48 = vrot.slane %v975_v32, 1 }
 0x223   : >> { %v982_v36 = vrot.slane %v980_v33, 1  ;;  %v1172_v50 = vsel %vm807_vm5, %v1170_v48, %v1171_v49  ;;  %v4789_v33 = vld [vmem:[#allocation10 + $0x78] sm:$0xff] (%p539_p12)   ;;  %v4802_v49 = vld [vmem:[#allocation10 + $0xa0] sm:$0xff] (%p539_p12)  }
 0x224   : > { %v4801_v48 = vld [vmem:[#allocation10 + $0x98] sm:$0xff] (%p539_p12)  }
 0x225   : >> { %v983_v37 = vor.u32 %v982_v36, %v978_v35  ;;  %v4790_v36 = vld [vmem:[#allocation10] sm:$0xff] (%p539_p12)  }
 0x227   : >> { %v988_v40 = vsel %vm613_vm4, %v983_v37, %v987_v38  ;;  %v4791_v38 = vld [vmem:[#allocation10 + $0x8] sm:$0xff] (%p539_p12)  }
 0x228   : >> { %3728 = vmatmul.mubr.bf16.vlgmr.msra.gmra.mrb[4].mxu1 %v988_v40  ;;  %v4793_v40 = vld [vmem:[#allocation10 + $0x18] sm:$0xff] (%p539_p12)  }
 0x229   : >> { %3752 = vmatpush3.bf16.msra.mxu1 %v4770_v39  ;;  %3767 = vmatprep.mubr.msk.bf16.mxu1 %vm5179_vm0, %v5178_v4  ;;  %v4792_v39 = vld [vmem:[#allocation10 + $0x10] sm:$0xff] (%p539_p12)  }
 0x22a   : >> { %3753 = vmatprep.subr.bf16.mxu1 %v5178_v4 }
 0x22d   : >> { %3754 = vmatpush3.bf16.msra.mxu1 %v4771_v41  ;;  %v4794_v41 = vld [vmem:[#allocation10 + $0x20] sm:$0xff] (%p539_p12)  }
 0x22e   : >> { %3755 = vmatprep.subr.bf16.mxu1 %v5178_v4 }
 0x231   : >> { %3756 = vmatpush3.bf16.msra.mxu1 %v4772_v42  ;;  %v4795_v42 = vld [vmem:[#allocation10 + $0x28] sm:$0xff] (%p539_p12)  }
 0x232   : >> { %3757 = vmatprep.subr.bf16.mxu1 %v5178_v4 }
 0x235   : >> { %3758 = vmatpush3.bf16.msra.mxu1 %v4773_v43  ;;  %v4796_v43 = vld [vmem:[#allocation10 + $0x30] sm:$0xff] (%p539_p12)  }
 0x236   : >> { %3759 = vmatprep.subr.bf16.mxu1 %v5178_v4 }
 0x239   : >> { %3760 = vmatpush3.bf16.msra.mxu1 %v4774_v44  ;;  %v4797_v44 = vld [vmem:[#allocation10 + $0x38] sm:$0xff] (%p539_p12)  }
 0x23a   : >> { %3761 = vmatprep.subr.bf16.mxu1 %v5178_v4 }
 0x23d   : >> { %3762 = vmatpush3.bf16.msra.mxu1 %v4775_v45  ;;  %v4798_v45 = vld [vmem:[#allocation10 + $0x80] sm:$0xff] (%p539_p12)  }
 0x23e   : >> { %3763 = vmatprep.subr.bf16.mxu1 %v5178_v4 }
 0x241   : >> { %3764 = vmatpush3.bf16.msra.mxu1 %v4776_v46  ;;  %v4799_v46 = vld [vmem:[#allocation10 + $0x88] sm:$0xff] (%p539_p12)  }
 0x242   : >> { %3765 = vmatprep.subr.bf16.mxu1 %v5178_v4  ;;  %v3301_v4 = vld [vmem:[%s963_s15] ss:$0 sm:$0xff]  ;;  %s3073_s15 = sshll.u32 (%p539_p12), %s5572_s26, 4  ;;  %s5950_s15 = int_to_ptr.vmem [resolvable:$true] %s3073_s15 }
 0x243   : > { %p5063_p8 = scmp.lt.s32.totalorder (%p539_p12), %s5950_s15, %s5061_s13 }
 0x245   : >> { %3766 = vmatpush3.bf16.msra.mxu1 %v4777_v47  ;;  %v4800_v47 = vld [vmem:[#allocation10 + $0x90] sm:$0xff] (%p539_p12)  }
 0x246   : > { %3771 = vmatprep.subr.bf16.mxu1 (%p539_p12), %v5180_v14 }
 0x248   : >> { %3768 = vmatmul.mubr.bf16.vlgmr.msra.gmra.mrb[8].mxu1 %v1172_v50  ;;  %v4803_v50 = vld [vmem:[#allocation10 + $0xa8] sm:$0xff] (%p539_p12)  }
 0x249   : > { %3772 = vmatpush3.bf16.msra.mxu1 (%p539_p12), %v4782_v12  ;;  %3787 = vmatprep.mubr.msk.bf16.mxu1 (%p539_p12), %vm5181_vm6, %v5180_v14 }
 0x24a   : > { %3773 = vmatprep.subr.bf16.mxu1 (%p539_p12), %v5180_v14 }
 0x2f4   : >> { %v1161_v51 = vpop.f32.mrb[8].mxu0 }
 0x2f5   : >> { %v3749_v52 = vpop.f32.mrb[9].mxu0 }
 0x2f6   : >> { %v1164_v53 = vpop.f32.mrb[10].mxu0  ;;  %v4805_v52 = vld [vmem:[#allocation10 + $0xb8] sm:$0xff] (%p539_p12)  }
 0x2f7   : >> { %v3750_v54 = vpop.f32.mrb[11].mxu0 }
 0x2f8   : > { %v4807_v54 = vld [vmem:[#allocation11 + $0x48] sm:$0xff] (%p539_p12)  }
 0x2fb   : >> { %v1072_v55 = vpop.f32.mrb[4].mxu1 }
 0x2fc   : >> { %v1162_v56 = vadd.f32 %v1161_v51, %v1072_v55  ;;  %v3729_v57 = vpop.f32.mrb[5].mxu1  ;;  %v4804_v51 = vld [vmem:[#allocation10 + $0xb0] sm:$0xff] (%p539_p12)  }
 0x2fd   : >> { %v1075_v58 = vpop.f32.mrb[6].mxu1  ;;  %v4808_v55 = vld [vmem:[#allocation11 + $0x50] sm:$0xff] (%p539_p12)   ;;  %v4810_v57 = vld [vmem:[#allocation11 + $0x60] sm:$0xff] (%p539_p12)  }
 0x2fe   : >> { %v1165_v59 = vadd.f32 %v1164_v53, %v1075_v58  ;;  %v3730_v60 = vpop.f32.mrb[7].mxu1  ;;  %v4806_v53 = vld [vmem:[#allocation11 + $0x40] sm:$0xff] (%p539_p12)   ;;  %v4811_v58 = vld [vmem:[#allocation11 + $0x68] sm:$0xff] (%p539_p12)  }
 0x2ff   : > { %v4813_v60 = vld [vmem:[#allocation11 + $0x78] sm:$0xff] (%p539_p12)  }
 0x31b   : >> { %v1256_v61 = vpop.f32.mrb[8].mxu1 }
 0x31c   : >> { %v1263_v62 = vadd.f32 %v1256_v61, %v1162_v56  ;;  %v3769_v63 = vpop.f32.mrb[9].mxu1  ;;  %v4809_v56 = vld [vmem:[#allocation11 + $0x58] sm:$0xff] (%p539_p12)  }
 0x31d   : >> { %v1259_v5 = vpop.f32.mrb[10].mxu1 }
 0x31e   : >> { %v1271_v6 = vadd.f32 %v3301_v4, %v1263_v62  ;;  %v1264_v7 = vadd.f32 %v1259_v5, %v1165_v59  ;;  %v3770_v8 = vpop.f32.mrb[11].mxu1  ;;  %541 = sbr.rel (!%p539_p12) target bundleno = 240 (0xf0), region = 164  ;;  %v4812_v59 = vld [vmem:[#allocation11 + $0x70] sm:$0xff] (%p539_p12)  }
 0x320   : >> { %v1273_v9 = vadd.f32 %v5158_v3, %v1271_v6   ;;  %v1272_v10 = vadd.f32 %v3301_v4, %v1264_v7 }
 0x322   : >> { %v1274_v11 = vadd.f32 %v5154_v2, %v1272_v10   ;;  %v6044_v3 = vmov %v1273_v9 }
 0x323   : > { %v4783_v3 = vld [vmem:[#allocation10 + $0x48] sm:$0xff] (%p539_p12)  }
 0x324   : >> { %v6043_v2 = vmov %v1274_v11  ;;  %v1276_v13 = vpack.c.bf16 (%p539_p12), %v1274_v11, %v1273_v9  ;;  %3774 = vmatpush3.bf16.msra.mxu1 (%p539_p12), %v4783_v3  ;;  %v3326_v11 = vld [vmem:[%s6045_s28] ss:$0 sm:$0xff] (%p539_p12)  ;;  %s6050_s28 = sld [smem:[#allocation26_spill]] (%p539_p12) }
 0x325   : > { %3775 = vmatprep.subr.bf16.mxu1 %v5180_v14 }
 0x326   : > { %v1278_v15 = vshrl.u32 %v1276_v13, 16  ;;  %v1281_v16 = vshll.u32 %v1276_v13, 16 }
 0x328   : > { %v1280_v17 = vrot.slane %v1278_v15, 7  ;;  %3776 = vmatpush3.bf16.msra.mxu1 %v4784_v19 }
 0x329   : > { %3777 = vmatprep.subr.bf16.mxu1 %v5180_v14 }
 0x32a   : > { %v1283_v2 = vor.u32 %v1281_v16, %v1280_v17  ;;  %v1290_v22 = vsel %vm5618_vm3, %v1280_v17, 0  ;;  %s5948_s30 = scalar_lea.hbm %s6050_s28, %s3357_s14 }
 0x32b   : > { %v1537_v24 = vrot.slane %v1290_v22, 1  ;;  %v1333_v29 = vshll.u32 %v1290_v22, 16 }
 0x32c   : > { %v1289_v21 = vsel %vm5618_vm3, 0, %v1283_v2  ;;  %3778 = vmatpush3.bf16.msra.mxu1 %v4785_v20 }
 0x32d   : > { %v1536_v23 = vrot.slane %v1289_v21, 1  ;;  %3779 = vmatprep.subr.bf16.mxu1 %v5180_v14  ;;  %v1328_v28 = vshll.u32 %v1289_v21, 16  ;;  %v1326_v31 = vshrl.u32 %v1289_v21, 16  ;;  %v1335_v34 = vrot.slane %v1333_v29, 1 }
 0x32f   : > { %v5762_v26 = vsel %vm807_vm5, %v1536_v23, %v1537_v24  ;;  %v1330_v32 = vrot.slane %v1328_v28, 1 }
 0x330   : > { %3780 = vmatpush3.bf16.msra.mxu1 %v4786_v25 }
 0x331   : > { %3781 = vmatprep.subr.bf16.mxu1 %v5180_v14  ;;  %v1331_v35 = vor.u32 %v1330_v32, %v1326_v31 }
 0x333   : > { %v1336_v37 = vsel %vm613_vm4, %v1331_v35, %v1335_v34 }
 0x334   : > { %3782 = vmatpush3.bf16.msra.mxu1 %v4787_v27 }
 0x335   : > { %3783 = vmatprep.subr.bf16.mxu1 %v5180_v14 }
 0x338   : > { %3784 = vmatpush3.bf16.msra.mxu1 %v4788_v30 }
 0x339   : > { %3785 = vmatprep.subr.bf16.mxu1 %v5180_v14 }
 0x33c   : > { %3786 = vmatpush3.bf16.msra.mxu1 %v4789_v33 }
 0x33d   : > { %3791 = vmatprep.subr.bf16.mxu1 %v5180_v14 }
 0x33f   : > { %3788 = vmatmul.mubr.bf16.vlgmr.msra.gmra.mrb[0].mxu1 %v1336_v37 }
 0x340   : > { %3792 = vmatpush3.bf16.msra.mxu1 %v4790_v36  ;;  %3807 = vmatprep.mubr.msk.bf16.mxu1 %vm5181_vm6, %v5180_v14  ;;  %v4814_v36 = vld [vmem:[#allocation11] sm:$0xff]  }
 0x341   : > { %3793 = vmatprep.subr.bf16.mxu1 %v5180_v14 }
 0x344   : > { %3794 = vmatpush3.bf16.msra.mxu1 %v4791_v38  ;;  %v4815_v38 = vld [vmem:[#allocation11 + $0x8] sm:$0xff]  }
 0x345   : > { %3795 = vmatprep.subr.bf16.mxu1 %v5180_v14 }
 0x348   : > { %3796 = vmatpush3.bf16.msra.mxu1 %v4792_v39  ;;  %v4817_v39 = vld [vmem:[#allocation11 + $0x18] sm:$0xff]  }
 0x349   : > { %3797 = vmatprep.subr.bf16.mxu1 %v5180_v14 }
 0x34c   : > { %3798 = vmatpush3.bf16.msra.mxu1 %v4793_v40  ;;  %v4818_v40 = vld [vmem:[#allocation11 + $0x20] sm:$0xff]  }
 0x34d   : > { %3799 = vmatprep.subr.bf16.mxu1 %v5180_v14 }
 0x350   : > { %3800 = vmatpush3.bf16.msra.mxu1 %v4794_v41  ;;  %v4819_v41 = vld [vmem:[#allocation11 + $0x28] sm:$0xff]  }
 0x351   : > { %3801 = vmatprep.subr.bf16.mxu1 %v5180_v14 }
 0x354   : > { %3802 = vmatpush3.bf16.msra.mxu1 %v4795_v42  ;;  %v4820_v42 = vld [vmem:[#allocation11 + $0x30] sm:$0xff]  }
 0x355   : > { %3803 = vmatprep.subr.bf16.mxu1 %v5180_v14 }
 0x358   : > { %3804 = vmatpush3.bf16.msra.mxu1 %v4796_v43  ;;  %v4821_v43 = vld [vmem:[#allocation11 + $0x38] sm:$0xff]  }
 0x359   : > { %3805 = vmatprep.subr.bf16.mxu1 %v5180_v14 }
 0x35c   : > { %3806 = vmatpush3.bf16.msra.mxu1 %v4797_v44  ;;  %v4822_v44 = vld [vmem:[#allocation11 + $0x80] sm:$0xff]  }
 0x35d   : > { %3811 = vmatprep.subr.bf16.mxu1 %v5180_v14 }
 0x35f   : > { %3808 = vmatmul.mubr.bf16.vlgmr.msra.gmra.mrb[4].mxu1 %v1289_v21 }
 0x360   : > { %3812 = vmatpush3.bf16.msra.mxu1 %v4798_v45  ;;  %3827 = vmatprep.mubr.msk.bf16.mxu1 %vm5181_vm6, %v5180_v14  ;;  %v4823_v45 = vld [vmem:[#allocation11 + $0x88] sm:$0xff]  }
 0x361   : > { %3813 = vmatprep.subr.bf16.mxu1 %v5180_v14 }
 0x364   : > { %3814 = vmatpush3.bf16.msra.mxu1 %v4799_v46  ;;  %v4824_v46 = vld [vmem:[#allocation11 + $0x90] sm:$0xff]  }
 0x365   : > { %3815 = vmatprep.subr.bf16.mxu1 %v5180_v14 }
 0x368   : > { %3816 = vmatpush3.bf16.msra.mxu1 %v4800_v47  ;;  %v4825_v47 = vld [vmem:[#allocation11 + $0x98] sm:$0xff]  }
 0x369   : > { %3817 = vmatprep.subr.bf16.mxu1 %v5180_v14 }
 0x36c   : > { %3818 = vmatpush3.bf16.msra.mxu1 %v4801_v48  ;;  %v4826_v48 = vld [vmem:[#allocation11 + $0xa0] sm:$0xff]  }
 0x36d   : > { %3819 = vmatprep.subr.bf16.mxu1 %v5180_v14 }
 0x370   : > { %3820 = vmatpush3.bf16.msra.mxu1 %v4802_v49  ;;  %v4827_v49 = vld [vmem:[#allocation11 + $0xa8] sm:$0xff]  }
 0x371   : > { %3821 = vmatprep.subr.bf16.mxu1 %v5180_v14 }
 0x374   : > { %3822 = vmatpush3.bf16.msra.mxu1 %v4803_v50  ;;  %v4828_v50 = vld [vmem:[#allocation11 + $0xb0] sm:$0xff]  }
 0x375   : > { %3823 = vmatprep.subr.bf16.mxu1 %v5180_v14 }
 0x378   : > { %3824 = vmatpush3.bf16.msra.mxu1 %v4804_v51  ;;  %v4829_v51 = vld [vmem:[#allocation11 + $0xb8] sm:$0xff]  }
 0x379   : > { %3825 = vmatprep.subr.bf16.mxu1 %v5180_v14 }
 0x37c   : > { %3826 = vmatpush3.bf16.msra.mxu1 %v4805_v52  ;;  %v2042_v52 = vld [vmem:[#allocation14] sm:$0xff] }
 0x37d   : > { %3831 = vmatprep.subr.bf16.mxu1 %v5180_v14 }
 0x37f   : > { %3828 = vmatmul.mubr.bf16.vlgmr.msra.gmra.mrb[8].mxu1 %v5762_v26 }
 0x380   : > { %3847 = vmatprep.mubr.msk.bf16.mxu1 %vm5181_vm6, %v5180_v14  ;;  %3832 = vmatpush3.bf16.msra.mxu1 %v4806_v53  ;;  %v2043_v53 = vld [vmem:[#allocation14 + $0x8] sm:$0xff] }
 0x381   : > { %3833 = vmatprep.subr.bf16.mxu1 %v5180_v14 }
 0x384   : > { %3834 = vmatpush3.bf16.msra.mxu1 %v4807_v54  ;;  %v2209_v54 = vld [vmem:[#allocation13 + $0x80] sm:$0xff] }
 0x385   : > { %3835 = vmatprep.subr.bf16.mxu1 %v5180_v14 }
 0x388   : > { %3836 = vmatpush3.bf16.msra.mxu1 %v4808_v55  ;;  %v4241_v55 = vpack.c.bf16 %v2043_v53, %v2042_v52  ;;  %v3351_v52 = vld [vmem:[%s6046_s29] ss:$0 sm:$0xff]  ;;  %s5056_s29 = scalar_lea.vmem %s5950_s15, 32 }
 0x389   : > { %3837 = vmatprep.subr.bf16.mxu1 %v5180_v14  ;;  %p5057_p1 = scmp.ne.s32.totalorder %s5950_s15, %s5056_s29  ;;  %p5064_p6 = scmp.lt.s32.totalorder %s5062_s18, %s5056_s29 }
 0x38b   : > { %p5058_p0 = pnand %p5057_p1, %p6051_p13  ;;  %p5065_p10 = por %p5064_p6, %p5063_p8 }
 0x38c   : > { %3838 = vmatpush3.bf16.msra.mxu1 %v4809_v56  ;;  %v2210_v56 = vld [vmem:[#allocation13 + $0x88] sm:$0xff] }
 0x38d   : > { %3839 = vmatprep.subr.bf16.mxu1 %v5180_v14  ;;  %p5059_p2 = pneg %p5058_p0 }
 0x38f   : > { %p5066_p11 = pnand %p5065_p10, %p5059_p2 }
 0x390   : > { %3840 = vmatpush3.bf16.msra.mxu1 %v4810_v57  ;;  %v2044_v57 = vld [vmem:[#allocation14 + $0x10] sm:$0xff] }
 0x391   : > { %3841 = vmatprep.subr.bf16.mxu1 %v5180_v14 }
 0x394   : > { %3842 = vmatpush3.bf16.msra.mxu1 %v4811_v58  ;;  %v2045_v58 = vld [vmem:[#allocation14 + $0x18] sm:$0xff] }
 0x395   : > { %3843 = vmatprep.subr.bf16.mxu1 %v5180_v14 }
 0x398   : > { %3844 = vmatpush3.bf16.msra.mxu1 %v4812_v59  ;;  %v4305_v59 = vpack.c.bf16 %v2210_v56, %v2209_v54 }
 0x399   : > { %3845 = vmatprep.subr.bf16.mxu1 %v5180_v14 }
 0x39a   : > { %4306 = vmatprep.subr.bf16.mxu0 %v4305_v59 }
 0x39b   : > { %4308 = vmatpush3.bf16.msra.mxu0 %v4305_v59 }
 0x39c   : > { %3846 = vmatpush3.bf16.msra.mxu1 %v4813_v60  ;;  %v4245_v60 = vpack.c.bf16 %v2045_v58, %v2044_v57 }
 0x39d   : > { %3851 = vmatprep.subr.bf16.mxu1 %v5180_v14 }
 0x412   : > { %v1420_v4 = vpop.f32.mrb[0].mxu1 }
 0x413   : > { %v3789_v61 = vpop.f32.mrb[1].mxu1 }
 0x414   : > { %v1423_v62 = vpop.f32.mrb[2].mxu1  ;;  %v2212_v61 = vld [vmem:[#allocation13 + $0x98] sm:$0xff] }
 0x415   : > { %v3790_v63 = vpop.f32.mrb[3].mxu1 }
 0x432   : > { %v1509_v5 = vpop.f32.mrb[4].mxu1 }
 0x433   : > { %v1510_v6 = vadd.f32 %v1509_v5, %v1420_v4  ;;  %v3809_v7 = vpop.f32.mrb[5].mxu1  ;;  %v2211_v4 = vld [vmem:[#allocation13 + $0x90] sm:$0xff]  ;;  %v2047_v5 = vld [vmem:[#allocation14 + $0x28] sm:$0xff] }
 0x434   : > { %v1512_v8 = vpop.f32.mrb[6].mxu1  ;;  %v4309_v63 = vpack.c.bf16 %v2212_v61, %v2211_v4  ;;  %v2214_v7 = vld [vmem:[#allocation13 + $0xa8] sm:$0xff]  ;;  %v2029_v4 = vld [vmem:[#allocation13 + $0x18] sm:$0xff]  ;;  %v2314_v61 = vld [vmem:[#allocation14 + $0x90] sm:$0xff] }
 0x435   : > { %v1513_v9 = vadd.f32 %v1512_v8, %v1423_v62  ;;  %v3810_v10 = vpop.f32.mrb[7].mxu1  ;;  %v2046_v62 = vld [vmem:[#allocation14 + $0x20] sm:$0xff] }
 0x436   : > { %4310 = vmatprep.subr.bf16.mxu0 %v4309_v63  ;;  %v2049_v10 = vld [vmem:[#allocation14 + $0x38] sm:$0xff] }
 0x437   : > { %4312 = vmatpush3.bf16.msra.mxu0 %v4309_v63 }
 0x452   : > { %v1622_v12 = vpop.f32.mrb[8].mxu1 }
 0x453   : > { %v1629_v13 = vadd.f32 %v1622_v12, %v1510_v6  ;;  %v3829_v3 = vpop.f32.mrb[9].mxu1  ;;  %v2213_v6 = vld [vmem:[#allocation13 + $0xa0] sm:$0xff]  ;;  %v2216_v12 = vld [vmem:[#allocation13 + $0xb8] sm:$0xff] }
 0x454   : > { %v1625_v15 = vpop.f32.mrb[10].mxu1  ;;  %v4313_v8 = vpack.c.bf16 %v2214_v7, %v2213_v6  ;;  %v2030_v6 = vld [vmem:[#allocation13 + $0x20] sm:$0xff]  ;;  %v2031_v7 = vld [vmem:[#allocation13 + $0x28] sm:$0xff] }
 0x455   : > { %v1637_v16 = vadd.f32 %v3326_v11, %v1629_v13  ;;  %v1630_v17 = vadd.f32 %v1625_v15, %v1513_v9  ;;  %v3830_v19 = vpop.f32.mrb[11].mxu1  ;;  %v2048_v9 = vld [vmem:[#allocation14 + $0x30] sm:$0xff]  ;;  %v2050_v15 = vld [vmem:[#allocation14 + $0x40] sm:$0xff] }
 0x456   : > { %v4253_v13 = vpack.c.bf16 %v2049_v10, %v2048_v9  ;;  %4314 = vmatprep.subr.bf16.mxu0 %v4313_v8  ;;  %v2218_v19 = vld [vmem:[#allocation13 + $0xc8] sm:$0xff] }
 0x457   : > { %v1638_v2 = vadd.f32 %v3326_v11, %v1630_v17  ;;  %v1639_v20 = vadd.f32 %v1637_v16, %v5568_v0  ;;  %v2215_v11 = vld [vmem:[#allocation13 + $0xb0] sm:$0xff]  ;;  %v2051_v16 = vld [vmem:[#allocation14 + $0x48] sm:$0xff]  ;;  %v2217_v17 = vld [vmem:[#allocation13 + $0xc0] sm:$0xff]  ;;  %4316 = vmatpush3.bf16.msra.mxu0 %v4313_v8 }
 0x458   : > { %v4317_v3 = vpack.c.bf16 %v2216_v12, %v2215_v11 }
 0x459   : > { %v1640_v21 = vadd.f32 %v1638_v2, %v5570_v1  ;;  %v4257_v2 = vpack.c.bf16 %v2051_v16, %v2050_v15 }
 0x45a   : > { %4318 = vmatprep.subr.bf16.mxu0 %v4317_v3 }
 0x45b   : > { %v1642_v22 = vpack.c.bf16 %v1640_v21, %v1639_v20  ;;  %v4321_v20 = vpack.c.bf16 %v2218_v19, %v2217_v17  ;;  %4320 = vmatpush3.bf16.msra.mxu0 %v4317_v3  ;;  %v2052_v21 = vld [vmem:[#allocation14 + $0x50] sm:$0xff]  ;;  %v5845_v3 = vpack.c.bf16 %v2031_v7, %v2030_v6 }
 0x45d   : > { %v1644_v23 = vshrl.u32 %v1642_v22, 16  ;;  %v1647_v25 = vshll.u32 %v1642_v22, 16  ;;  %4322 = vmatprep.subr.bf16.mxu0 %v4321_v20  ;;  %v2053_v22 = vld [vmem:[#allocation14 + $0x58] sm:$0xff] }
 0x45f   : > { %v1646_v24 = vrot.slane %v1644_v23, 7  ;;  %4324 = vmatpush3.bf16.msra.mxu0 %v4321_v20  ;;  %v4261_v23 = vpack.c.bf16 %v2053_v22, %v2052_v21 }
 0x461   : > { %v1649_v26 = vor.u32 %v1647_v25, %v1646_v24  ;;  %v1653_v27 = vsel %vm5618_vm3, %v1646_v24, 0  ;;  %v2219_v24 = vld [vmem:[#allocation13 + $0xd0] sm:$0xff]  ;;  %v2220_v25 = vld [vmem:[#allocation13 + $0xd8] sm:$0xff] }
 0x462   : > { %v1695_v30 = vshll.u32 %v1653_v27, 16  ;;  %v1898_v32 = vrot.slane %v1653_v27, 1  ;;  %v2054_v27 = vld [vmem:[#allocation14 + $0x60] sm:$0xff] }
 0x463   : > { %v1652_v28 = vsel %vm5618_vm3, 0, %v1649_v26  ;;  %v4325_v26 = vpack.c.bf16 %v2220_v25, %v2219_v24 }
 0x464   : > { %v1690_v29 = vshll.u32 %v1652_v28, 16  ;;  %v1897_v31 = vrot.slane %v1652_v28, 1  ;;  %v1688_v33 = vshrl.u32 %v1652_v28, 16  ;;  %v1697_v35 = vrot.slane %v1695_v30, 1  ;;  %v2221_v30 = vld [vmem:[#allocation13 + $0xe0] sm:$0xff] }
 0x465   : > { %4326 = vmatprep.subr.bf16.mxu0 %v4325_v26 }
 0x466   : > { %v1692_v34 = vrot.slane %v1690_v29, 1  ;;  %v1899_v0 = vsel %vm807_vm5, %v1897_v31, %v1898_v32  ;;  %4328 = vmatpush3.bf16.msra.mxu0 %v4325_v26  ;;  %v2222_v31 = vld [vmem:[#allocation13 + $0xe8] sm:$0xff] }
 0x467   : > { %v4329_v32 = vpack.c.bf16 %v2222_v31, %v2221_v30 }
 0x468   : > { %v1693_v1 = vor.u32 %v1692_v34, %v1688_v33  ;;  %v2056_v33 = vld [vmem:[#allocation14 + $0x70] sm:$0xff]  ;;  %v2057_v34 = vld [vmem:[#allocation14 + $0x78] sm:$0xff] }
 0x469   : > { %4330 = vmatprep.subr.bf16.mxu0 %v4329_v32 }
 0x46a   : > { %v1698_v37 = vsel %vm613_vm4, %v1693_v1, %v1697_v35  ;;  %4332 = vmatpush3.bf16.msra.mxu0 %v4329_v32  ;;  %v2223_v1 = vld [vmem:[#allocation13 + $0xf0] sm:$0xff]  ;;  %v2224_v35 = vld [vmem:[#allocation13 + $0xf8] sm:$0xff] }
 0x46b   : > { %3848 = vmatmul.mubr.bf16.vlgmr.msra.gmra.mrb[12].mxu1 %v1698_v37  ;;  %v2026_v37 = vld [vmem:[#allocation13] sm:$0xff] }
 0x46c   : > { %3852 = vmatpush3.bf16.msra.mxu1 %v4814_v36  ;;  %3867 = vmatprep.mubr.msk.bf16.mxu1 %vm5181_vm6, %v5180_v14  ;;  %v4333_v36 = vpack.c.bf16 %v2224_v35, %v2223_v1  ;;  %v2317_v1 = vld [vmem:[#allocation14 + $0xa8] sm:$0xff] }
 0x46d   : > { %3853 = vmatprep.subr.bf16.mxu1 %v5180_v14 }
 0x46e   : > { %4334 = vmatprep.subr.bf16.mxu0 %v4333_v36 }
 0x46f   : > { %4336 = vmatpush3.bf16.msra.mxu0 %v4333_v36 }
 0x470   : > { %3854 = vmatpush3.bf16.msra.mxu1 %v4815_v38  ;;  %v2027_v38 = vld [vmem:[#allocation13 + $0x8] sm:$0xff] }
 0x471   : > { %3855 = vmatprep.subr.bf16.mxu1 %v5180_v14 }
 0x474   : > { %3856 = vmatpush3.bf16.msra.mxu1 %v4816_v18  ;;  %v5830_v18 = vpack.c.bf16 %v2027_v38, %v2026_v37 }
 0x475   : > { %3857 = vmatprep.subr.bf16.mxu1 %v5180_v14 }
 0x478   : > { %3858 = vmatpush3.bf16.msra.mxu1 %v4817_v39  ;;  %v2312_v39 = vld [vmem:[#allocation14 + $0x80] sm:$0xff] }
 0x479   : > { %3859 = vmatprep.subr.bf16.mxu1 %v5180_v14 }
 0x47c   : > { %3860 = vmatpush3.bf16.msra.mxu1 %v4818_v40  ;;  %v2313_v40 = vld [vmem:[#allocation14 + $0x88] sm:$0xff] }
 0x47d   : > { %3861 = vmatprep.subr.bf16.mxu1 %v5180_v14 }
 0x480   : > { %3862 = vmatpush3.bf16.msra.mxu1 %v4819_v41  ;;  %v5833_v41 = vpack.c.bf16 %v2313_v40, %v2312_v39 }
 0x481   : > { %3863 = vmatprep.subr.bf16.mxu1 %v5180_v14 }
 0x482   : > { %4338 = vmatprep.subr.bf16.mxu0 %v5833_v41 }
 0x484   : > { %3864 = vmatpush3.bf16.msra.mxu1 %v4820_v42 }
 0x485   : > { %3865 = vmatprep.subr.bf16.mxu1 %v5180_v14 }
 0x488   : > { %3866 = vmatpush3.bf16.msra.mxu1 %v4821_v43 }
 0x489   : > { %3871 = vmatprep.subr.bf16.mxu1 %v5180_v14 }
 0x48b   : > { %3868 = vmatmul.mubr.bf16.vlgmr.msra.gmra.mrb[16].mxu1 %v1652_v28  ;;  %v2055_v28 = vld [vmem:[#allocation14 + $0x68] sm:$0xff] }
 0x48c   : > { %3872 = vmatpush3.bf16.msra.mxu1 %v4822_v44  ;;  %3887 = vmatprep.mubr.msk.bf16.mxu1 %vm5181_vm6, %v5180_v14  ;;  %v4265_v29 = vpack.c.bf16 %v2055_v28, %v2054_v27 }
 0x48d   : > { %3873 = vmatprep.subr.bf16.mxu1 %v5180_v14 }
 0x490   : > { %3874 = vmatpush3.bf16.msra.mxu1 %v4823_v45 }
 0x491   : > { %3875 = vmatprep.subr.bf16.mxu1 %v5180_v14 }
 0x494   : > { %3876 = vmatpush3.bf16.msra.mxu1 %v4824_v46 }
 0x495   : > { %3877 = vmatprep.subr.bf16.mxu1 %v5180_v14 }
 0x498   : > { %3878 = vmatpush3.bf16.msra.mxu1 %v4825_v47 }
 0x499   : > { %3879 = vmatprep.subr.bf16.mxu1 %v5180_v14 }
 0x49c   : > { %3880 = vmatpush3.bf16.msra.mxu1 %v4826_v48 }
 0x49d   : > { %3881 = vmatprep.subr.bf16.mxu1 %v5180_v14 }
 0x4a0   : > { %3882 = vmatpush3.bf16.msra.mxu1 %v4827_v49 }
 0x4a1   : > { %3883 = vmatprep.subr.bf16.mxu1 %v5180_v14 }
 0x4a4   : > { %3884 = vmatpush3.bf16.msra.mxu1 %v4828_v50 }
 0x4a5   : > { %3885 = vmatprep.subr.bf16.mxu1 %v5180_v14  ;;  %v4249_v14 = vpack.c.bf16 %v2047_v5, %v2046_v62  ;;  %v2315_v5 = vld [vmem:[#allocation14 + $0x98] sm:$0xff] }
 0x4a8   : > { %3886 = vmatpush3.bf16.msra.mxu1 %v4829_v51 }
 0x4a9   : > { %4242 = vmatprep.subr.bf16.mxu1 %v4241_v55 }
 0x4ab   : > { %3888 = vmatmul.mubr.bf16.vlgmr.msra.gmra.mrb[20].mxu1 %v1899_v0  ;;  %v4269_v0 = vpack.c.bf16 %v2057_v34, %v2056_v33 }
 0x4ac   : > { %4244 = vmatpush3.bf16.msra.mxu1 %v4241_v55 }
 0x4ad   : > { %4246 = vmatprep.subr.bf16.mxu1 %v4245_v60 }
 0x4b0   : > { %4248 = vmatpush3.bf16.msra.mxu1 %v4245_v60  ;;  %v2028_v60 = vld [vmem:[#allocation13 + $0x10] sm:$0xff] }
 0x4b1   : > { %4250 = vmatprep.subr.bf16.mxu1 %v4249_v14 }
 0x4b4   : > { %4252 = vmatpush3.bf16.msra.mxu1 %v4249_v14  ;;  %v4277_v14 = vpack.c.bf16 %v2029_v4, %v2028_v60 }
 0x4b5   : > { %4254 = vmatprep.subr.bf16.mxu1 %v4253_v13 }
 0x4b8   : > { %4256 = vmatpush3.bf16.msra.mxu1 %v4253_v13  ;;  %v5843_v13 = vpack.c.bf16 %v2315_v5, %v2314_v61  ;;  %v2035_v5 = vld [vmem:[#allocation13 + $0x48] sm:$0xff] }
 0x4b9   : > { %4258 = vmatprep.subr.bf16.mxu1 %v4257_v2 }
 0x4bc   : > { %4260 = vmatpush3.bf16.msra.mxu1 %v4257_v2  ;;  %v2323_v2 = vld [vmem:[#allocation14 + $0xd8] sm:$0xff] }
 0x4bd   : > { %4262 = vmatprep.subr.bf16.mxu1 %v4261_v23 }
 0x4c0   : > { %4264 = vmatpush3.bf16.msra.mxu1 %v4261_v23 }
 0x4c1   : > { %4266 = vmatprep.subr.bf16.mxu1 %v4265_v29 }
 0x4c4   : > { %4268 = vmatpush3.bf16.msra.mxu1 %v4265_v29 }
 0x4c5   : > { %4270 = vmatprep.subr.bf16.mxu1 %v4269_v0 }
 0x4c8   : > { %4272 = vmatpush3.bf16.msra.mxu1 %v4269_v0  ;;  %v2316_v0 = vld [vmem:[#allocation14 + $0xa0] sm:$0xff] }
 0x4c9   : > { %4274 = vmatprep.subr.bf16.mxu1 %v5830_v18 }
 0x53e   : > { %v1782_v42 = vpop.f32.mrb[12].mxu1 }
 0x53f   : > { %v3849_v43 = vpop.f32.mrb[13].mxu1 }
 0x540   : > { %v1785_v44 = vpop.f32.mrb[14].mxu1 }
 0x541   : > { %v3850_v45 = vpop.f32.mrb[15].mxu1 }
 0x55e   : > { %v1871_v46 = vpop.f32.mrb[16].mxu1 }
 0x55f   : > { %v1872_v47 = vadd.f32 %v1871_v46, %v1782_v42  ;;  %v3869_v48 = vpop.f32.mrb[17].mxu1  ;;  %v4345_v46 = vpack.c.bf16 %v2317_v1, %v2316_v0  ;;  %v2416_v0 = vld [vmem:[#allocation13 + $0x108] sm:$0xff] }
 0x560   : > { %v1874_v49 = vpop.f32.mrb[18].mxu1  ;;  %v2033_v48 = vld [vmem:[#allocation13 + $0x38] sm:$0xff] }
 0x561   : > { %v1875_v50 = vadd.f32 %v1874_v49, %v1785_v44  ;;  %v3870_v51 = vpop.f32.mrb[19].mxu1 }
 0x57e   : > { %v1983_v53 = vpop.f32.mrb[20].mxu1 }
 0x57f   : > { %v1990_v54 = vadd.f32 %v1983_v53, %v1872_v47  ;;  %v3889_v55 = vpop.f32.mrb[21].mxu1  ;;  %v2032_v47 = vld [vmem:[#allocation13 + $0x30] sm:$0xff] }
 0x580   : > { %v1986_v56 = vpop.f32.mrb[22].mxu1  ;;  %v2319_v55 = vld [vmem:[#allocation14 + $0xb8] sm:$0xff]  ;;  %v4285_v60 = vpack.c.bf16 %v2033_v48, %v2032_v47  ;;  %v2423_v48 = vld [vmem:[#allocation13 + $0x140] sm:$0xff] }
 0x581   : > { %v1998_v57 = vadd.f32 %v3351_v52, %v1990_v54  ;;  %v1991_v58 = vadd.f32 %v1986_v56, %v1875_v50  ;;  %v3890_v59 = vpop.f32.mrb[23].mxu1  ;;  %v2318_v54 = vld [vmem:[#allocation14 + $0xb0] sm:$0xff] }
 0x583   : > { %v2003_v62 = vrot.slane %v1998_v57, 6  ;;  %v1999_v63 = vadd.f32 %v3351_v52, %v1991_v58  ;;  %v2012_v8 = vrot.slane %v1998_v57, 1 }
 0x585   : > { %v2004_v9 = vrot.slane %v1999_v63, 6  ;;  %v2013_v10 = vrot.slane %v1999_v63, 1  ;;  %v5840_v11 = vsel %vm2002_vm7, 0.0, %v2003_v62  ;;  %v2034_v63 = vld [vmem:[#allocation13 + $0x40] sm:$0xff] }
 0x586   : > { %v2227_v12 = vrot.slane %v5840_v11, 1  ;;  %v2432_v15 = vrot.slane %v5840_v11, 2  ;;  %v2635_v27 = vrot.slane %v5840_v11, 3 }
 0x587   : > { %v5849_v16 = vsel %vm2002_vm7, %v2004_v9, 0.0  ;;  %v2014_v17 = vsel %vm807_vm5, %v2012_v8, %v2013_v10  ;;  %v2016_v19 = vsel %vm807_vm5, %v2013_v10, 0.0  ;;  %v5859_v20 = vsel %vm2002_vm7, %v2003_v62, %v2004_v9 }
 0x588   : > { %v2018_v21 = vrot.slane %v2014_v17, 6  ;;  %v2019_v22 = vrot.slane %v2016_v19, 6  ;;  %v2228_v23 = vrot.slane %v5859_v20, 1  ;;  %v2230_v24 = vrot.slane %v5849_v16, 1  ;;  %v2322_v19 = vld [vmem:[#allocation14 + $0xd0] sm:$0xff] }
 0x589   : > { %v2433_v25 = vrot.slane %v5859_v20, 2  ;;  %v2435_v26 = vrot.slane %v5849_v16, 2  ;;  %v2636_v28 = vrot.slane %v5859_v20, 3  ;;  %v2839_v57 = vrot.slane %v5859_v20, 4 }
 0x58a   : > { %v2025_v29 = vsel %vm2002_vm7, %v2019_v22, 0.0  ;;  %3923 = vmatprep.mubr.msk.f32.mxu1 %vm5854_vm10, %v2018_v21  ;;  %v2020_v30 = vsel %vm2002_vm7, %v2018_v21, %v2019_v22  ;;  %v2229_v31 = vsel %vm807_vm5, %v2227_v12, %v2228_v23  ;;  %v2231_v32 = vsel %vm807_vm5, %v2228_v23, %v2230_v24  ;;  %v2321_v12 = vld [vmem:[#allocation14 + $0xc8] sm:$0xff]  ;;  %v2038_v22 = vld [vmem:[#allocation13 + $0x60] sm:$0xff] }
 0x58b   : > { %3924 = vmatmul.mubr.f32.vlgmr.msra.gmra.mrb[24].mxu1 %v2020_v30  ;;  %3993 = vmatprep.mubr.f32.mxu0 %v2229_v31  ;;  %v2024_v33 = vsel %vm2002_vm7, 0.0, %v2018_v21  ;;  %v2331_v34 = vrot.slane %v2020_v30, 1  ;;  %v2333_v35 = vrot.slane %v2025_v29, 1  ;;  %v5875_v36 = vsel %vm2431_vm8, %v2432_v15, %v2433_v25  ;;  %v2036_v15 = vld [vmem:[#allocation13 + $0x50] sm:$0xff]  ;;  %v2039_v23 = vld [vmem:[#allocation13 + $0x68] sm:$0xff]  ;;  %v2327_v31 = vld [vmem:[#allocation14 + $0xf8] sm:$0xff] }
 0x58c   : > { %4276 = vmatpush3.bf16.msra.mxu1 %v5830_v18  ;;  %3958 = vmatprep.mubr.msk.f32.mxu1 %vm5854_vm10, %v2003_v62  ;;  %v2330_v37 = vrot.slane %v2024_v33, 1  ;;  %v5881_v38 = vsel %vm2431_vm8, %v2433_v25, %v2435_v26  ;;  %v2533_v39 = vrot.slane %v2024_v33, 2  ;;  %v2534_v40 = vrot.slane %v2020_v30, 2  ;;  %v2325_v25 = vld [vmem:[#allocation14 + $0xe8] sm:$0xff] }
 0x58d   : > { %3994 = vmatmul.mubr.f32.vlgmr.msra.gmra.mrb[0].mxu0 %v2231_v32  ;;  %4278 = vmatprep.subr.bf16.mxu1 %v4277_v14  ;;  %v5884_v42 = vsel %vm807_vm5, %v2331_v34, %v2333_v35  ;;  %v2536_v43 = vrot.slane %v2025_v29, 2  ;;  %v5887_v44 = vsel %vm2634_vm9, %v2635_v27, %v2636_v28  ;;  %v2638_v18 = vrot.slane %v5849_v16, 3  ;;  %v2040_v27 = vld [vmem:[#allocation13 + $0x70] sm:$0xff] }
 0x58e   : > { %4340 = vmatpush3.bf16.msra.mxu0 %v5833_v41  ;;  %v2332_v45 = vsel %vm807_vm5, %v2330_v37, %v2331_v34  ;;  %v5893_v49 = vsel %vm2431_vm8, %v2533_v39, %v2534_v40  ;;  %v2736_v50 = vrot.slane %v2024_v33, 3  ;;  %v2737_v53 = vrot.slane %v2020_v30, 3  ;;  %v2415_v34 = vld [vmem:[#allocation13 + $0x100] sm:$0xff]  ;;  %v2417_v35 = vld [vmem:[#allocation13 + $0x110] sm:$0xff]  ;;  %v2418_v37 = vld [vmem:[#allocation13 + $0x118] sm:$0xff] }
 0x58f   : > { %4028 = vmatprep.mubr.f32.mxu0 %v2332_v45  ;;  %4342 = vmatprep.subr.bf16.mxu0 %v5843_v13  ;;  %v5897_v51 = vsel %vm2431_vm8, %v2534_v40, %v2536_v43  ;;  %v5900_v52 = vsel %vm2634_vm9, %v2636_v28, %v2638_v18  ;;  %v2838_v41 = vrot.slane %v5840_v11, 4  ;;  %v2739_v56 = vrot.slane %v2025_v29, 3  ;;  %v2320_v11 = vld [vmem:[#allocation14 + $0xc0] sm:$0xff]  ;;  %v2041_v28 = vld [vmem:[#allocation13 + $0x78] sm:$0xff]  ;;  %v2420_v43 = vld [vmem:[#allocation13 + $0x128] sm:$0xff] }
 0x590   : > { %4280 = vmatpush3.bf16.msra.mxu1 %v4277_v14  ;;  %v2841_v58 = vrot.slane %v5849_v16, 4  ;;  %v2939_v59 = vrot.slane %v2024_v33, 4  ;;  %v5907_v4 = vsel %vm2634_vm9, %v2736_v50, %v2737_v53  ;;  %v2940_v61 = vrot.slane %v2020_v30, 4  ;;  %v2037_v16 = vld [vmem:[#allocation13 + $0x58] sm:$0xff]  ;;  %v2326_v30 = vld [vmem:[#allocation14 + $0xf0] sm:$0xff]  ;;  %v2419_v40 = vld [vmem:[#allocation13 + $0x120] sm:$0xff] }
 0x591   : > { %4282 = vmatprep.subr.bf16.mxu1 %v5845_v3  ;;  %v2942_v62 = vrot.slane %v2025_v29, 4  ;;  %v5911_v6 = vsel %vm2634_vm9, %v2737_v53, %v2739_v56  ;;  %v5914_v7 = vsel %vm2837_vm11, %v2838_v41, %v2839_v57  ;;  %v4349_v8 = vpack.c.bf16 %v2319_v55, %v2318_v54  ;;  %v2421_v45 = vld [vmem:[#allocation13 + $0x130] sm:$0xff]  ;;  %v2424_v50 = vld [vmem:[#allocation13 + $0x148] sm:$0xff]  ;;  %v2426_v41 = vld [vmem:[#allocation13 + $0x158] sm:$0xff] }
 0x592   : > { %4344 = vmatpush3.bf16.msra.mxu0 %v5843_v13  ;;  %v5917_v14 = vsel %vm2837_vm11, %v2839_v57, %v2841_v58  ;;  %v5920_v9 = vsel %vm2837_vm11, %v2939_v59, %v2940_v61  ;;  %v4289_v13 = vpack.c.bf16 %v2035_v5, %v2034_v63  ;;  %v4353_v17 = vpack.c.bf16 %v2321_v12, %v2320_v11  ;;  %v2425_v53 = vld [vmem:[#allocation13 + $0x150] sm:$0xff]  ;;  %v2427_v54 = vld [vmem:[#allocation13 + $0x160] sm:$0xff]  ;;  %v2428_v55 = vld [vmem:[#allocation13 + $0x168] sm:$0xff] }
 0x593   : > { %4346 = vmatprep.subr.bf16.mxu0 %v4345_v46  ;;  %v5923_v10 = vsel %vm2837_vm11, %v2940_v61, %v2942_v62  ;;  %v4293_v21 = vpack.c.bf16 %v2037_v16, %v2036_v15  ;;  %v4357_v24 = vpack.c.bf16 %v2323_v2, %v2322_v19  ;;  %v4297_v26 = vpack.c.bf16 %v2039_v23, %v2038_v22  ;;  %v2429_v56 = vld [vmem:[#allocation13 + $0x170] sm:$0xff]  ;;  %v2430_v57 = vld [vmem:[#allocation13 + $0x178] sm:$0xff]  ;;  %v2517_v59 = vld [vmem:[#allocation14 + $0x100] sm:$0xff] }
 0x594   : > { %4284 = vmatpush3.bf16.msra.mxu1 %v5845_v3  ;;  %v2324_v3 = vld [vmem:[#allocation14 + $0xe0] sm:$0xff]  ;;  %v4301_v32 = vpack.c.bf16 %v2041_v28, %v2040_v27  ;;  %v4365_v33 = vpack.c.bf16 %v2327_v31, %v2326_v30  ;;  %v4369_v1 = vpack.c.bf16 %v2416_v0, %v2415_v34  ;;  %v4373_v39 = vpack.c.bf16 %v2418_v37, %v2417_v35  ;;  %v2519_v62 = vld [vmem:[#allocation14 + $0x110] sm:$0xff]  ;;  %v2520_v63 = vld [vmem:[#allocation14 + $0x118] sm:$0xff] }
 0x595   : > { %4286 = vmatprep.subr.bf16.mxu1 %v4285_v60  ;;  %v4361_v29 = vpack.c.bf16 %v2325_v25, %v2324_v3  ;;  %v4377_v18 = vpack.c.bf16 %v2420_v43, %v2419_v40  ;;  %v4397_v58 = vpack.c.bf16 %v2430_v57, %v2429_v56  ;;  %v4405_v5 = vpack.c.bf16 %v2520_v63, %v2519_v62  ;;  %v2522_v11 = vld [vmem:[#allocation14 + $0x128] sm:$0xff]  ;;  %v2524_v15 = vld [vmem:[#allocation14 + $0x138] sm:$0xff]  ;;  %v2529_v23 = vld [vmem:[#allocation14 + $0x160] sm:$0xff] }
 0x596   : > { %4348 = vmatpush3.bf16.msra.mxu0 %v4345_v46  ;;  %v2422_v46 = vld [vmem:[#allocation13 + $0x138] sm:$0xff]  ;;  %v2526_v19 = vld [vmem:[#allocation14 + $0x148] sm:$0xff]  ;;  %v2531_v3 = vld [vmem:[#allocation14 + $0x170] sm:$0xff] }
 0x597   : > { %4350 = vmatprep.subr.bf16.mxu0 %v4349_v8  ;;  %v4381_v47 = vpack.c.bf16 %v2422_v46, %v2421_v45  ;;  %v2528_v22 = vld [vmem:[#allocation14 + $0x158] sm:$0xff]  ;;  %v2618_v27 = vld [vmem:[#allocation13 + $0x180] sm:$0xff]  ;;  %v2619_v28 = vld [vmem:[#allocation13 + $0x188] sm:$0xff] }
 0x598   : > { %4288 = vmatpush3.bf16.msra.mxu1 %v4285_v60  ;;  %v2518_v60 = vld [vmem:[#allocation14 + $0x108] sm:$0xff]  ;;  %v2532_v25 = vld [vmem:[#allocation14 + $0x178] sm:$0xff]  ;;  %v2620_v30 = vld [vmem:[#allocation13 + $0x190] sm:$0xff] }
 0x599   : > { %4290 = vmatprep.subr.bf16.mxu1 %v4289_v13  ;;  %v4401_v61 = vpack.c.bf16 %v2518_v60, %v2517_v59  ;;  %v2621_v31 = vld [vmem:[#allocation13 + $0x198] sm:$0xff]  ;;  %v2623_v34 = vld [vmem:[#allocation13 + $0x1a8] sm:$0xff]  ;;  %v2630_v46 = vld [vmem:[#allocation13 + $0x1e0] sm:$0xff] }
 0x59a   : > { %4352 = vmatpush3.bf16.msra.mxu0 %v4349_v8  ;;  %v2521_v8 = vld [vmem:[#allocation14 + $0x120] sm:$0xff]  ;;  %v2625_v35 = vld [vmem:[#allocation13 + $0x1b8] sm:$0xff]  ;;  %v2627_v40 = vld [vmem:[#allocation13 + $0x1c8] sm:$0xff] }
 0x59b   : > { %4354 = vmatprep.subr.bf16.mxu0 %v4353_v17  ;;  %v4409_v12 = vpack.c.bf16 %v2522_v11, %v2521_v8  ;;  %v2629_v45 = vld [vmem:[#allocation13 + $0x1d8] sm:$0xff]  ;;  %v2724_v56 = vld [vmem:[#allocation14 + $0x1a0] sm:$0xff]  ;;  %v2725_v57 = vld [vmem:[#allocation14 + $0x1a8] sm:$0xff] }
 0x59c   : > { %4292 = vmatpush3.bf16.msra.mxu1 %v4289_v13  ;;  %v2523_v13 = vld [vmem:[#allocation14 + $0x130] sm:$0xff]  ;;  %v2727_v60 = vld [vmem:[#allocation14 + $0x1b8] sm:$0xff]  ;;  %v2728_v62 = vld [vmem:[#allocation14 + $0x1c0] sm:$0xff] }
 0x59d   : > { %4294 = vmatprep.subr.bf16.mxu1 %v4293_v21  ;;  %v4413_v16 = vpack.c.bf16 %v2524_v15, %v2523_v13  ;;  %v2726_v59 = vld [vmem:[#allocation14 + $0x1b0] sm:$0xff]  ;;  %v2729_v63 = vld [vmem:[#allocation14 + $0x1c8] sm:$0xff]  ;;  %v2731_v11 = vld [vmem:[#allocation14 + $0x1d8] sm:$0xff] }
 0x59e   : > { %4356 = vmatpush3.bf16.msra.mxu0 %v4353_v17  ;;  %v2525_v17 = vld [vmem:[#allocation14 + $0x140] sm:$0xff]  ;;  %v2730_v8 = vld [vmem:[#allocation14 + $0x1d0] sm:$0xff]  ;;  %v2733_v13 = vld [vmem:[#allocation14 + $0x1e8] sm:$0xff] }
 0x59f   : > { %4358 = vmatprep.subr.bf16.mxu0 %v4357_v24  ;;  %v4417_v2 = vpack.c.bf16 %v2526_v19, %v2525_v17  ;;  %v2734_v15 = vld [vmem:[#allocation14 + $0x1f0] sm:$0xff]  ;;  %v2821_v19 = vld [vmem:[#allocation13 + $0x200] sm:$0xff] }
 0x5a0   : > { %4296 = vmatpush3.bf16.msra.mxu1 %v4293_v21  ;;  %v2527_v21 = vld [vmem:[#allocation14 + $0x150] sm:$0xff] }
 0x5a1   : > { %4298 = vmatprep.subr.bf16.mxu1 %v4297_v26 }
 0x5a2   : > { %4360 = vmatpush3.bf16.msra.mxu0 %v4357_v24  ;;  %v2530_v24 = vld [vmem:[#allocation14 + $0x168] sm:$0xff] }
 0x5a3   : > { %4362 = vmatprep.subr.bf16.mxu0 %v4361_v29 }
 0x5a4   : > { %4300 = vmatpush3.bf16.msra.mxu1 %v4297_v26  ;;  %v4429_v26 = vpack.c.bf16 %v2532_v25, %v2531_v3  ;;  %v2827_v25 = vld [vmem:[#allocation13 + $0x230] sm:$0xff] }
 0x5a5   : > { %4302 = vmatprep.subr.bf16.mxu1 %v4301_v32 }
 0x5a6   : > { %4364 = vmatpush3.bf16.msra.mxu0 %v4361_v29  ;;  %v4433_v29 = vpack.c.bf16 %v2619_v28, %v2618_v27  ;;  %v2829_v28 = vld [vmem:[#allocation13 + $0x240] sm:$0xff] }
 0x5a7   : > { %4366 = vmatprep.subr.bf16.mxu0 %v4365_v33 }
 0x5a8   : > { %4304 = vmatpush3.bf16.msra.mxu1 %v4301_v32  ;;  %v4437_v32 = vpack.c.bf16 %v2621_v31, %v2620_v30  ;;  %v2831_v31 = vld [vmem:[#allocation13 + $0x250] sm:$0xff] }
 0x5aa   : > { %4368 = vmatpush3.bf16.msra.mxu0 %v4365_v33  ;;  %v2622_v33 = vld [vmem:[#allocation13 + $0x1a0] sm:$0xff] }
 0x5ab   : > { %3959 = vmatmul.mubr.f32.vlgmr.msra.gmra.mrb[24].mxu1 %v5859_v20  ;;  %4370 = vmatprep.subr.bf16.mxu0 %v4369_v1  ;;  %v4385_v20 = vpack.c.bf16 %v2424_v50, %v2423_v48  ;;  %v4441_v0 = vpack.c.bf16 %v2623_v34, %v2622_v33  ;;  %v2632_v48 = vld [vmem:[#allocation13 + $0x1f0] sm:$0xff]  ;;  %v2633_v50 = vld [vmem:[#allocation13 + $0x1f8] sm:$0xff]  ;;  %v2833_v33 = vld [vmem:[#allocation13 + $0x260] sm:$0xff] }
 0x5ac   : > { %v2834_v34 = vld [vmem:[#allocation13 + $0x268] sm:$0xff] }
 0x5ad   : > { %4029 = vmatmul.mubr.f32.vlgmr.msra.gmra.mrb[0].mxu0 %v5884_v42  ;;  %v4389_v42 = vpack.c.bf16 %v2426_v41, %v2425_v53  ;;  %v2720_v53 = vld [vmem:[#allocation14 + $0x180] sm:$0xff]  ;;  %v2721_v41 = vld [vmem:[#allocation14 + $0x188] sm:$0xff] }
 0x5ae   : > { %4372 = vmatpush3.bf16.msra.mxu0 %v4369_v1  ;;  %4063 = vmatprep.mubr.f32.mxu0 %v5875_v36  ;;  %v4393_v36 = vpack.c.bf16 %v2428_v55, %v2427_v54  ;;  %v2624_v1 = vld [vmem:[#allocation13 + $0x1b0] sm:$0xff]  ;;  %v2723_v55 = vld [vmem:[#allocation14 + $0x198] sm:$0xff] }
 0x5af   : > { %4374 = vmatprep.subr.bf16.mxu0 %v4373_v39  ;;  %v4445_v37 = vpack.c.bf16 %v2625_v35, %v2624_v1  ;;  %v2722_v54 = vld [vmem:[#allocation14 + $0x190] sm:$0xff]  ;;  %v2836_v1 = vld [vmem:[#allocation13 + $0x278] sm:$0xff] }
 0x5b2   : > { %4376 = vmatpush3.bf16.msra.mxu0 %v4373_v39  ;;  %v2626_v39 = vld [vmem:[#allocation13 + $0x1c0] sm:$0xff] }
 0x5b3   : > { %4378 = vmatprep.subr.bf16.mxu0 %v4377_v18  ;;  %v4449_v43 = vpack.c.bf16 %v2627_v40, %v2626_v39  ;;  %v2924_v39 = vld [vmem:[#allocation14 + $0x208] sm:$0xff] }
 0x5b6   : > { %4380 = vmatpush3.bf16.msra.mxu0 %v4377_v18  ;;  %v2628_v18 = vld [vmem:[#allocation13 + $0x1d0] sm:$0xff] }
 0x5b7   : > { %4382 = vmatprep.subr.bf16.mxu0 %v4381_v47 }
 0x5ba   : > { %4384 = vmatpush3.bf16.msra.mxu0 %v4381_v47  ;;  %v2631_v47 = vld [vmem:[#allocation13 + $0x1e8] sm:$0xff] }
 0x5bb   : > { %4386 = vmatprep.subr.bf16.mxu0 %v4385_v20 }
 0x5be   : > { %4388 = vmatpush3.bf16.msra.mxu0 %v4385_v20  ;;  %v4461_v20 = vpack.c.bf16 %v2633_v50, %v2632_v48  ;;  %v2930_v48 = vld [vmem:[#allocation14 + $0x238] sm:$0xff] }
 0x5bf   : > { %4390 = vmatprep.subr.bf16.mxu0 %v4389_v42 }
 0x5c2   : > { %4392 = vmatpush3.bf16.msra.mxu0 %v4389_v42  ;;  %v4465_v42 = vpack.c.bf16 %v2721_v41, %v2720_v53  ;;  %v2932_v53 = vld [vmem:[#allocation14 + $0x248] sm:$0xff] }
 0x5c3   : > { %4394 = vmatprep.subr.bf16.mxu0 %v4393_v36 }
 0x5c6   : > { %4396 = vmatpush3.bf16.msra.mxu0 %v4393_v36  ;;  %v4469_v36 = vpack.c.bf16 %v2723_v55, %v2722_v54  ;;  %v2934_v54 = vld [vmem:[#allocation14 + $0x258] sm:$0xff]  ;;  %v2935_v55 = vld [vmem:[#allocation14 + $0x260] sm:$0xff] }
 0x5c7   : > { %4398 = vmatprep.subr.bf16.mxu0 %v4397_v58 }
 0x5ca   : > { %4400 = vmatpush3.bf16.msra.mxu0 %v4397_v58  ;;  %v4473_v58 = vpack.c.bf16 %v2725_v57, %v2724_v56  ;;  %v2937_v56 = vld [vmem:[#allocation14 + $0x270] sm:$0xff]  ;;  %v2938_v57 = vld [vmem:[#allocation14 + $0x278] sm:$0xff] }
 0x5cb   : > { %4402 = vmatprep.subr.bf16.mxu0 %v4401_v61 }
 0x5cd   : > { %4064 = vmatmul.mubr.f32.vlgmr.msra.gmra.mrb[0].mxu0 %v5881_v38  ;;  %v4421_v38 = vpack.c.bf16 %v2528_v22, %v2527_v21  ;;  %v2823_v22 = vld [vmem:[#allocation13 + $0x210] sm:$0xff] }
 0x5ce   : > { %4404 = vmatpush3.bf16.msra.mxu0 %v4401_v61  ;;  %4098 = vmatprep.mubr.f32.mxu0 %v5893_v49  ;;  %v4425_v49 = vpack.c.bf16 %v2530_v24, %v2529_v23  ;;  %v4477_v61 = vpack.c.bf16 %v2727_v60, %v2726_v59  ;;  %v2825_v24 = vld [vmem:[#allocation13 + $0x220] sm:$0xff] }
 0x5cf   : > { %4406 = vmatprep.subr.bf16.mxu0 %v4405_v5 }
 0x5d2   : > { %4408 = vmatpush3.bf16.msra.mxu0 %v4405_v5  ;;  %v4481_v5 = vpack.c.bf16 %v2729_v63, %v2728_v62 }
 0x5d3   : > { %4410 = vmatprep.subr.bf16.mxu0 %v4409_v12 }
 0x5d6   : > { %4412 = vmatpush3.bf16.msra.mxu0 %v4409_v12  ;;  %v2732_v12 = vld [vmem:[#allocation14 + $0x1e0] sm:$0xff] }
 0x5d7   : > { %4414 = vmatprep.subr.bf16.mxu0 %v4413_v16 }
 0x5da   : > { %4416 = vmatpush3.bf16.msra.mxu0 %v4413_v16  ;;  %v2735_v16 = vld [vmem:[#allocation14 + $0x1f8] sm:$0xff] }
 0x5db   : > { %4418 = vmatprep.subr.bf16.mxu0 %v4417_v2  ;;  %v4493_v17 = vpack.c.bf16 %v2735_v16, %v2734_v15 }
 0x5de   : > { %4420 = vmatpush3.bf16.msra.mxu0 %v4417_v2  ;;  %v2822_v2 = vld [vmem:[#allocation13 + $0x208] sm:$0xff] }
 0x5df   : > { %4422 = vmatprep.subr.bf16.mxu0 %v4421_v38  ;;  %v4497_v21 = vpack.c.bf16 %v2822_v2, %v2821_v19 }
 0x5e2   : > { %4424 = vmatpush3.bf16.msra.mxu0 %v4421_v38  ;;  %v2824_v38 = vld [vmem:[#allocation13 + $0x218] sm:$0xff] }
 0x5e3   : > { %4426 = vmatprep.subr.bf16.mxu0 %v4425_v49  ;;  %v4501_v23 = vpack.c.bf16 %v2824_v38, %v2823_v22 }
 0x5e6   : > { %4428 = vmatpush3.bf16.msra.mxu0 %v4425_v49  ;;  %v2826_v49 = vld [vmem:[#allocation13 + $0x228] sm:$0xff] }
 0x5e7   : > { %4430 = vmatprep.subr.bf16.mxu0 %v4429_v26  ;;  %v4505_v3 = vpack.c.bf16 %v2826_v49, %v2825_v24 }
 0x5ea   : > { %4432 = vmatpush3.bf16.msra.mxu0 %v4429_v26  ;;  %v2828_v26 = vld [vmem:[#allocation13 + $0x238] sm:$0xff] }
 0x5eb   : > { %4434 = vmatprep.subr.bf16.mxu0 %v4433_v29  ;;  %v4509_v27 = vpack.c.bf16 %v2828_v26, %v2827_v25 }
 0x5ed   : > { %4099 = vmatmul.mubr.f32.vlgmr.msra.gmra.mrb[0].mxu0 %v5897_v51  ;;  %v4453_v51 = vpack.c.bf16 %v2629_v45, %v2628_v18  ;;  %v2926_v18 = vld [vmem:[#allocation14 + $0x218] sm:$0xff] }
 0x5ee   : > { %4436 = vmatpush3.bf16.msra.mxu0 %v4433_v29  ;;  %4133 = vmatprep.mubr.f32.mxu0 %v5887_v44  ;;  %v4457_v44 = vpack.c.bf16 %v2631_v47, %v2630_v46  ;;  %v2830_v29 = vld [vmem:[#allocation13 + $0x248] sm:$0xff] }
 0x5ef   : > { %4438 = vmatprep.subr.bf16.mxu0 %v4437_v32  ;;  %v4513_v30 = vpack.c.bf16 %v2830_v29, %v2829_v28  ;;  %v2928_v46 = vld [vmem:[#allocation14 + $0x228] sm:$0xff] }
 0x5f2   : > { %4440 = vmatpush3.bf16.msra.mxu0 %v4437_v32  ;;  %v2832_v32 = vld [vmem:[#allocation13 + $0x258] sm:$0xff] }
 0x5f3   : > { %4442 = vmatprep.subr.bf16.mxu0 %v4441_v0 }
 0x5f6   : > { %4444 = vmatpush3.bf16.msra.mxu0 %v4441_v0  ;;  %v2835_v0 = vld [vmem:[#allocation13 + $0x270] sm:$0xff] }
 0x5f7   : > { %4446 = vmatprep.subr.bf16.mxu0 %v4445_v37  ;;  %v4525_v35 = vpack.c.bf16 %v2836_v1, %v2835_v0 }
 0x5fa   : > { %4448 = vmatpush3.bf16.msra.mxu0 %v4445_v37  ;;  %v2923_v37 = vld [vmem:[#allocation14 + $0x200] sm:$0xff] }
 0x5fb   : > { %4450 = vmatprep.subr.bf16.mxu0 %v4449_v43  ;;  %v4529_v40 = vpack.c.bf16 %v2924_v39, %v2923_v37 }
 0x5fe   : > { %4452 = vmatpush3.bf16.msra.mxu0 %v4449_v43  ;;  %v2925_v43 = vld [vmem:[#allocation14 + $0x210] sm:$0xff] }
 0x5ff   : > { %4454 = vmatprep.subr.bf16.mxu0 %v4453_v51  ;;  %v4533_v45 = vpack.c.bf16 %v2926_v18, %v2925_v43 }
 0x602   : > { %4456 = vmatpush3.bf16.msra.mxu0 %v4453_v51  ;;  %v2927_v51 = vld [vmem:[#allocation14 + $0x220] sm:$0xff] }
 0x603   : > { %4458 = vmatprep.subr.bf16.mxu0 %v4457_v44  ;;  %v4537_v47 = vpack.c.bf16 %v2928_v46, %v2927_v51 }
 0x606   : > { %4460 = vmatpush3.bf16.msra.mxu0 %v4457_v44  ;;  %v2929_v44 = vld [vmem:[#allocation14 + $0x230] sm:$0xff] }
 0x607   : > { %4462 = vmatprep.subr.bf16.mxu0 %v4461_v20  ;;  %v4541_v50 = vpack.c.bf16 %v2930_v48, %v2929_v44 }
 0x60a   : > { %4464 = vmatpush3.bf16.msra.mxu0 %v4461_v20  ;;  %v2931_v20 = vld [vmem:[#allocation14 + $0x240] sm:$0xff] }
 0x60b   : > { %4466 = vmatprep.subr.bf16.mxu0 %v4465_v42  ;;  %v4545_v41 = vpack.c.bf16 %v2932_v53, %v2931_v20 }
 0x60d   : > { %4134 = vmatmul.mubr.f32.vlgmr.msra.gmra.mrb[0].mxu0 %v5900_v52  ;;  %v4485_v52 = vpack.c.bf16 %v2731_v11, %v2730_v8  ;;  %v3055_v8 = vld [vmem:[%s6049_s17] sm:$0x3] }
 0x60e   : > { %4468 = vmatpush3.bf16.msra.mxu0 %v4465_v42  ;;  %4168 = vmatprep.mubr.f32.mxu0 %v5907_v4  ;;  %v4489_v4 = vpack.c.bf16 %v2733_v13, %v2732_v12  ;;  %v2933_v42 = vld [vmem:[#allocation14 + $0x250] sm:$0xff] }
 0x60f   : > { %4470 = vmatprep.subr.bf16.mxu0 %v4469_v36 }
 0x612   : > { %4472 = vmatpush3.bf16.msra.mxu0 %v4469_v36  ;;  %v2936_v36 = vld [vmem:[#allocation14 + $0x268] sm:$0xff] }
 0x613   : > { %4474 = vmatprep.subr.bf16.mxu0 %v4473_v58 }
 0x616   : > { %4476 = vmatpush3.bf16.msra.mxu0 %v4473_v58  ;;  %v4557_v58 = vpack.c.bf16 %v2938_v57, %v2937_v56 }
 0x617   : > { %4478 = vmatprep.subr.bf16.mxu0 %v4477_v61 }
 0x61a   : > { %4480 = vmatpush3.bf16.msra.mxu0 %v4477_v61 }
 0x61b   : > { %4482 = vmatprep.subr.bf16.mxu0 %v4481_v5 }
 0x61e   : > { %4484 = vmatpush3.bf16.msra.mxu0 %v4481_v5 }
 0x61f   : > { %4486 = vmatprep.subr.bf16.mxu0 %v4485_v52 }
 0x622   : > { %4488 = vmatpush3.bf16.msra.mxu0 %v4485_v52 }
 0x623   : > { %4490 = vmatprep.subr.bf16.mxu0 %v4489_v4 }
 0x626   : > { %4492 = vmatpush3.bf16.msra.mxu0 %v4489_v4 }
 0x627   : > { %4494 = vmatprep.subr.bf16.mxu0 %v4493_v17 }
 0x62a   : > { %4496 = vmatpush3.bf16.msra.mxu0 %v4493_v17 }
 0x62b   : > { %4498 = vmatprep.subr.bf16.mxu0 %v4497_v21 }
 0x62d   : > { %4169 = vmatmul.mubr.f32.vlgmr.msra.gmra.mrb[0].mxu0 %v5911_v6  ;;  %v4517_v6 = vpack.c.bf16 %v2832_v32, %v2831_v31 }
 0x62e   : > { %4500 = vmatpush3.bf16.msra.mxu0 %v4497_v21  ;;  %4203 = vmatprep.mubr.f32.mxu0 %v5914_v7  ;;  %v4521_v7 = vpack.c.bf16 %v2834_v34, %v2833_v33 }
 0x62f   : > { %4502 = vmatprep.subr.bf16.mxu0 %v4501_v23 }
 0x632   : > { %4504 = vmatpush3.bf16.msra.mxu0 %v4501_v23 }
 0x633   : > { %4506 = vmatprep.subr.bf16.mxu0 %v4505_v3 }
 0x636   : > { %4508 = vmatpush3.bf16.msra.mxu0 %v4505_v3 }
 0x637   : > { %4510 = vmatprep.subr.bf16.mxu0 %v4509_v27 }
 0x63a   : > { %4512 = vmatpush3.bf16.msra.mxu0 %v4509_v27 }
 0x63b   : > { %4514 = vmatprep.subr.bf16.mxu0 %v4513_v30 }
 0x63e   : > { %4516 = vmatpush3.bf16.msra.mxu0 %v4513_v30 }
 0x63f   : > { %4518 = vmatprep.subr.bf16.mxu0 %v4517_v6 }
 0x642   : > { %4520 = vmatpush3.bf16.msra.mxu0 %v4517_v6 }
 0x643   : > { %4522 = vmatprep.subr.bf16.mxu0 %v4521_v7 }
 0x646   : > { %4524 = vmatpush3.bf16.msra.mxu0 %v4521_v7 }
 0x647   : > { %4526 = vmatprep.subr.bf16.mxu0 %v4525_v35 }
 0x64a   : > { %4528 = vmatpush3.bf16.msra.mxu0 %v4525_v35 }
 0x64b   : > { %4530 = vmatprep.subr.bf16.mxu0 %v4529_v40 }
 0x64d   : > { %4204 = vmatmul.mubr.f32.vlgmr.msra.gmra.mrb[0].mxu0 %v5917_v14  ;;  %v4549_v14 = vpack.c.bf16 %v2934_v54, %v2933_v42 }
 0x64e   : > { %4532 = vmatpush3.bf16.msra.mxu0 %v4529_v40  ;;  %4238 = vmatprep.mubr.f32.mxu0 %v5920_v9  ;;  %v4553_v9 = vpack.c.bf16 %v2936_v36, %v2935_v55 }
 0x64f   : > { %4534 = vmatprep.subr.bf16.mxu0 %v4533_v45 }
 0x652   : > { %4536 = vmatpush3.bf16.msra.mxu0 %v4533_v45 }
 0x653   : > { %4538 = vmatprep.subr.bf16.mxu0 %v4537_v47 }
 0x656   : > { %4540 = vmatpush3.bf16.msra.mxu0 %v4537_v47 }
 0x657   : > { %4542 = vmatprep.subr.bf16.mxu0 %v4541_v50 }
 0x65a   : > { %4544 = vmatpush3.bf16.msra.mxu0 %v4541_v50 }
 0x65b   : > { %4546 = vmatprep.subr.bf16.mxu0 %v4545_v41 }
 0x65e   : > { %4548 = vmatpush3.bf16.msra.mxu0 %v4545_v41 }
 0x65f   : > { %4550 = vmatprep.subr.bf16.mxu0 %v4549_v14 }
 0x662   : > { %4552 = vmatpush3.bf16.msra.mxu0 %v4549_v14 }
 0x663   : > { %4554 = vmatprep.subr.bf16.mxu0 %v4553_v9 }
 0x666   : > { %4556 = vmatpush3.bf16.msra.mxu0 %v4553_v9 }
 0x667   : > { %4558 = vmatprep.subr.bf16.mxu0 %v4557_v58 }
 0x66a   : > { %4560 = vmatpush3.bf16.msra.mxu0 %v4557_v58 }
 0x66d   : > { %4239 = vmatmul.mubr.f32.vlgmr.msra.gmra.mrb[0].mxu0 %v5923_v10 }
 0x67e   : > { %v3960_v59 = vpop.f32.mrb[24].mxu1 }
 0x67f   : > { %v2199_v60 = vpop.f32.mrb[25].mxu1 }
 0x740   : > { %v4240_v61 = vpop.f32.mrb[0].mxu0 }
 0x741   : > { %v4561_v62 = vadd.f32 %v4240_v61, %v3960_v59  ;;  %v3012_v63 = vpop.f32.mrb[1].mxu0 }
 0x742   : > { %v4562_v5 = vadd.f32 %v3012_v63, %v2199_v60 }
 0x744   : > { %3023 = vxpose.xlu0.b32.start [1/2] (short) (narrow) %v4562_v5, 8 }
 0x748   : > { %3024 = vxpose.xlu0.b32.end [2/2] (short) (narrow) %v4561_v62, 8 }
 0x7c4   : > { %v3039_v11 = vpop.trf.xlu0 }
 0x7c5   : > { %v3056_v10 = vadd.f32 %v3055_v8, %v3039_v11 }
 0x7c7   : > { %3058 = vst.msk [vmem:[%s5572_s26] sm:$0x3] %vm3057_vm12, %v3056_v10 }
 0x7c8   : > { %5069 = shalt.err (!%p5066_p11)
}
 0x7c9   : > { %s5070_s12 = scalar_lea.hbm %s5948_s30, 32  ;;  %s5074_s14 = scalar_lea.hbm %s6050_s28, 64 }
 0x7ca   : > { %p5071_p3 = scmp.ne.s32.totalorder %s5948_s30, %s5070_s12  ;;  %p5075_p7 = scmp.lt.u32.totalorder %s5948_s30, %s6050_s28 }
 0x7cb   : > { %p5076_p4 = scmp.lt.u32.totalorder %s5074_s14, %s5070_s12  ;;  %p5078_p1 = scmp.lt.u32.totalorder %s5070_s12, %s5948_s30 }
 0x7cc   : > { %p5072_p5 = pnand %p5071_p3, %p6051_p13 }
 0x7cd   : > { %p5077_p12 = por %p5076_p4, %p5075_p7 }
 0x7ce   : > { %p5073_p9 = pneg %p5072_p5 }
 0x7cf   : > { %p5079_p0 = por %p5078_p1, %p5077_p12 }
 0x7d1   : > { %p5080_p2 = pnand %p5079_p0, %p5073_p9 }
 0x7d3   : > { %5083 = shalt.err (!%p5080_p2)
}
 0x7d4   : > { %4609 = dma.vmem_to_hbm [thread:$0]  (%p6051_p13), %s5950_s15, 32, %s5948_s30, %s3060_s6  }
 0x7d5 PF: > { %s3085_s29 = sand.u32 1, %s5138_s21   ;;  %p6052_p8 = scmp.ne.s32.totalorder %s6026_s8, 0 }
 0x7d6   : > { %p6053_p6 = scmp.ge.s32.totalorder %s5150_s24, 2  ;;  %s3086_s27 = scalar_lea.sflag [#allocation4], %s3085_s29 }
 0x7d8   : > { %p4638_p10 = pnand %p6053_p6, %p6052_p8 }
 0x7da   : > { %5133 = dma.done.wait (!%p4638_p10), %s3086_s27, 32  }
 0x7db   : > { %5135 = vsyncadd (!%p4638_p10), %s3086_s27, 4294967264  ;;  %p29_p11 = scmp.ge.s32.totalorder %s5467_s25, 4   ;;  %s6054_s21 = smov %s5142_s22 }
 0x7dc   : > { %s6055_s22 = smov %s5146_s23  ;;  %s6056_s23 = smov %s5479_s16 }
 0x7dd   : > { %s6057_s24 = smov %s5467_s25  ;;  %31 = sbr.rel (!%p29_p11) target bundleno = 14 (0xe), region = 175 }
 0x7e4   :  { %3091 = vsyncpa [#allocation3], 1 }
 0x7e5   :  { %3093 = vsyncpa [#allocation3 + $0x1], 1 }
 0x7e6   :  { %3094 = vsyncpa [#allocation6], 1 }
 0x7e7   :  { %3095 = vsyncpa [#allocation9], 1 }
 0x7e8   :  { %3096 = vsyncpa [#allocation12], 1 }
 0x7e9   :  { %3097 = vsyncpa [#allocation15], 1 }
 0x7ea   :  { %3098 = vsyncpa [#allocation4], 1 }
 0x7eb   :  { %3100 = vsyncpa [#allocation4 + $0x1], 1 }

</bundles_post_ra>
